<compile_context>
chip_gen: v7x
topology: tpu7x:2x2x1
jax: 0.10.0
libtpu: 0.0.40
codegen_flags: <defaults>
</compile_context>

<pallas_src>
import functools
import math

import jax
import jax.numpy as jnp
from jax import lax
from jax.experimental import pallas as pl
from jax.experimental.pallas import tpu as pltpu

# ---- module hyper-parameters (small, consistent with the module's __init__) ----
D_MODEL = 32
D_K = 8
D_V = 8
N_HEADS = 4
D_FF = 64
N_LAYERS = 2
PADDING_IDX = 0
LN_EPS = 1e-5
QKV_DIM = 2 * N_HEADS * D_K + N_HEADS * D_V     # fused q|k|v projection width
NEG_BIG = -1e30                                  # finite "minus infinity"

# ----------------------------------------------------------------------------
# Packed-weight layout: every parameter of every layer lives in one
# (N_LAYERS * PROWS, 128) f32 buffer (rows 8-aligned, columns lane-aligned).
# ----------------------------------------------------------------------------
PCOLS = 128

_PARAM_SHAPES = [
    ("mha_wqkv", (D_MODEL, QKV_DIM)),
    ("mha_bqkv", (1, QKV_DIM)),
    ("mha_wo",   (N_HEADS * D_V, D_MODEL)),
    ("mha_bo",   (1, D_MODEL)),
    ("mha_ln",   (2, D_MODEL)),          # row 0 = gamma, row 1 = beta
    ("ch_wqkv",  (D_MODEL, QKV_DIM)),
    ("ch_bqkv",  (1, QKV_DIM)),
    ("ch_wo",    (N_HEADS * D_V, D_MODEL)),
    ("ch_bo",    (1, D_MODEL)),
    ("ch_ln",    (2, D_MODEL)),
    ("ln1",      (2, D_MODEL)),
    ("ff_w1",    (D_MODEL, D_FF)),
    ("ff_b1",    (1, D_FF)),
    ("ff_w2",    (D_FF, D_MODEL)),
    ("ff_b2",    (1, D_MODEL)),
    ("ff_ln",    (2, D_MODEL)),
]


def _round8(n):
    return (n + 7) // 8 * 8


def _build_layout():
    layout = {}
    off = 0
    for name, shape in _PARAM_SHAPES:
        layout[name] = (off, shape)
        off += _round8(shape[0])          # keep every block sublane (8) aligned
    return layout, off


PARAM_LAYOUT, PROWS = _build_layout()


def pack_params(layer_params):
    """All weights of all layers -> one (N_LAYERS*PROWS, 128) f32 buffer."""
    buf = jnp.zeros((len(layer_params) * PROWS, PCOLS), jnp.float32)
    for l, p in enumerate(layer_params):
        base = l * PROWS
        for name, (off, shape) in PARAM_LAYOUT.items():
            r, c = shape
            buf = buf.at[base + off: base + off + r, :c].set(
                p[name].astype(jnp.float32))
    return buf


# ----------------------------------------------------------------------------
# Pure-jnp math shared by the Pallas kernel body and the pure-JAX reference.
# ----------------------------------------------------------------------------
def _layer_norm(x, gamma, beta):
    mu = jnp.mean(x, axis=-1, keepdims=True)
    var = jnp.mean((x - mu) ** 2, axis=-1, keepdims=True)
    return (x - mu) * lax.rsqrt(var + LN_EPS) * gamma + beta


def _softmax_last(x, reciprocal_fn):
    m = jnp.max(x, axis=-1, keepdims=True)
    e = jnp.exp(x - m)
    return e * reciprocal_fn(jnp.sum(e, axis=-1, keepdims=True))


def _split_heads(mat, dh):
    """(S, h*dh) -> (h, S, dh): lane slices stacked on a new leading axis."""
    return jnp.stack(
        [mat[:, i * dh:(i + 1) * dh] for i in range(N_HEADS)], axis=0)


def _head_output_proj(o_heads, wo, bo):
    """sum_h o_h @ Wo_h  ==  concat(heads) @ Wo   (one batched matmul).

    o_heads: (h, S, dv); wo: (h*dv, D); bo: (1, D)  ->  (S, D)
    """
    wo_heads = jnp.stack(
        [wo[i * D_V:(i + 1) * D_V, :] for i in range(N_HEADS)], axis=0)  # (h,dv,D)
    proj = jnp.einsum("nqd,nde->nqe", o_heads, wo_heads,
                      preferred_element_type=jnp.float32)                # (h,S,D)
    return jnp.sum(proj, axis=0) + bo


def _padding_neg_mask(x):
    """(1, S) additive mask row: NEG_BIG where sum_d x[s, d] == padding_idx."""
    f32 = jnp.float32
    ones_row = jnp.ones((1, x.shape[-1]), f32)
    row_sums = lax.dot_general(ones_row, x.astype(f32),
                               (((1,), (1,)), ((), ())),
                               preferred_element_type=f32)               # (1, S)
    return jnp.where(row_sums == float(PADDING_IDX),
                     jnp.float32(NEG_BIG), jnp.float32(0.0))


def encoder_layer_math(x, neg_mask, w, reciprocal_fn):
    """One EncoderLayer (eval mode). x: (S, D) f32, neg_mask: (1, S) f32."""
    f32 = jnp.float32
    S = x.shape[0]
    h, dk, dv = N_HEADS, D_K, D_V

    # ---- MultiHeadAttention over sequence positions (batched over heads) ----
    qkv = jnp.dot(x, w["mha_wqkv"], preferred_element_type=f32) + w["mha_bqkv"]
    q = _split_heads(qkv[:, :h * dk], dk)                       # (h, S, dk)
    k = _split_heads(qkv[:, h * dk:2 * h * dk], dk)             # (h, S, dk)
    v = _split_heads(qkv[:, 2 * h * dk:], dv)                   # (h, S, dv)
    logits = jnp.einsum("nqd,nkd->nqk", q, k,
                        preferred_element_type=f32) * (1.0 / math.sqrt(dk))
    logits = logits + neg_mask[None, :, :]                      # masked_fill(pad keys)
    p = _softmax_last(logits, reciprocal_fn)
    o = jnp.einsum("nqk,nkd->nqd", p, v, preferred_element_type=f32)     # (h,S,dv)
    att_o = _head_output_proj(o, w["mha_wo"], w["mha_bo"])
    mha_out = _layer_norm(x + att_o, w["mha_ln"][0:1, :], w["mha_ln"][1:2, :])

    # ---- ChannelAttention ----------------------------------------------------
    # TODO(synk): exact SDATR ChannelAttention source is not provided; kept as
    # per-head channel-wise scaled dot-product attention (affinity over the
    # feature axis) with residual + LayerNorm, same as the previous version.
    qkv_c = jnp.dot(x, w["ch_wqkv"], preferred_element_type=f32) + w["ch_bqkv"]
    vc = _split_heads(qkv_c[:, 2 * h * dk:], dv)                # (h, S, dv)
    lg_list = []
    for i in range(h):        # channel logits contract over the sequence axis
        qh = qkv_c[:, i * dk:(i + 1) * dk]
        kh = qkv_c[:, h * dk + i * dk: h * dk + (i + 1) * dk]
        lg_list.append(lax.dot_general(qh, kh, (((0,), (0,)), ((), ())),
                                       preferred_element_type=f32))      # (dk,dk)
    lg_c = jnp.stack(lg_list, axis=0) * (1.0 / math.sqrt(S))             # (h,dk,dk)
    pc = _softmax_last(lg_c, reciprocal_fn)
    oc = jnp.einsum("nse,nde->nsd", vc, pc, preferred_element_type=f32)  # (h,S,dv)
    catt_o = _head_output_proj(oc, w["ch_wo"], w["ch_bo"])
    ch_out = _layer_norm(x + catt_o, w["ch_ln"][0:1, :], w["ch_ln"][1:2, :])

    # ---- EncoderLayer combine (dropout1/dropout2 are identity in eval) -------
    att = _layer_norm(x + mha_out + ch_out, w["ln1"][0:1, :], w["ln1"][1:2, :])

    # ---- PositionWiseFeedForward ---------------------------------------------
    hdn = jnp.maximum(
        jnp.dot(att, w["ff_w1"], preferred_element_type=f32) + w["ff_b1"], 0.0)
    ff = jnp.dot(hdn, w["ff_w2"], preferred_element_type=f32) + w["ff_b2"]
    return _layer_norm(att + ff, w["ff_ln"][0:1, :], w["ff_ln"][1:2, :])


# ----------------------------------------------------------------------------
# Pallas kernel: one grid step = one batch element; BOTH layers fused in VMEM.
# ----------------------------------------------------------------------------
def _load_layer_weights(w_ref, layer_idx):
    base = layer_idx * PROWS
    w = {}
    for name, (off, shape) in PARAM_LAYOUT.items():
        r, c = shape
        w[name] = w_ref[base + off: base + off + r, 0:c]   # static slices, no copies
    return w


def fused_encoder_kernel(x_ref, w_ref, o_ref, *, reciprocal_fn):
    x = x_ref[0].astype(jnp.float32)          # (S, D)
    neg_mask = _padding_neg_mask(x)           # computed once from the *input*
    out = x
    for l in range(N_LAYERS):                 # both layers fused; activations stay on-chip
        w = _load_layer_weights(w_ref, l)
        out = encoder_layer_math(out, neg_mask, w, reciprocal_fn)
    o_ref[0] = out.astype(o_ref.dtype)


def multi_level_encoder(x, layer_params):
    """MultiLevelEncoder.forward: returns (out, attention_mask)."""
    B, S, D = x.shape
    attention_mask = (jnp.sum(x, axis=-1) == PADDING_IDX)[:, None, None, :]  # (B,1,1,S)
    w_packed = pack_params(layer_params)                                     # one buffer

    # approx reciprocal lowers to the EUP (free slot) but needs TPU v5+.
    kind = jax.devices()[0].device_kind.lower()
    approx = any(v in kind for v in ("v5", "v6", "v7"))
    kernel = functools.partial(
        fused_encoder_kernel,
        reciprocal_fn=lambda t: pl.reciprocal(t, approx=approx))

    out = pl.pallas_call(
        kernel,
        out_shape=jax.ShapeDtypeStruct((B, S, D), x.dtype),
        grid=(B,),
        in_specs=[
            # Per-batch activation block. (At real d_model=512 this is already
            # lane-dense; at the toy D=32 flattening would need an in-kernel
            # sublane<->lane relayout costing more than it saves.)
            pl.BlockSpec((1, S, D), lambda b: (b, 0, 0)),
            # Whole packed-weight buffer; constant index_map => fetched once and
            # kept resident in VMEM across all grid steps.
            pl.BlockSpec((N_LAYERS * PROWS, PCOLS), lambda b: (0, 0)),
        ],
        out_specs=pl.BlockSpec((1, S, D), lambda b: (b, 0, 0)),
        compiler_params=pltpu.CompilerParams(
            dimension_semantics=("parallel",)),   # v7x: one batch element per TC
    )(x, w_packed)
    return out, attention_mask


# ----------------------------------------------------------------------------
# Deterministic parameter initialization (synthetic; no checkpoint loading).
# ----------------------------------------------------------------------------
def init_layer_params(key):
    ks = jax.random.split(key, 6)

    def lin(k, fan_in, shape):
        bound = 1.0 / math.sqrt(fan_in)
        return jax.random.uniform(k, shape, jnp.float32, -bound, bound)

    D = D_MODEL
    ln = jnp.concatenate(
        [jnp.ones((1, D), jnp.float32), jnp.zeros((1, D), jnp.float32)], axis=0)
    return {
        "mha_wqkv": lin(ks[0], D, (D, QKV_DIM)),
        "mha_bqkv": jnp.zeros((1, QKV_DIM), jnp.float32),
        "mha_wo": lin(ks[1], N_HEADS * D_V, (N_HEADS * D_V, D)),
        "mha_bo": jnp.zeros((1, D), jnp.float32),
        "mha_ln": ln,
        "ch_wqkv": lin(ks[2], D, (D, QKV_DIM)),
        "ch_bqkv": jnp.zeros((1, QKV_DIM), jnp.float32),
        "ch_wo": lin(ks[3], N_HEADS * D_V, (N_HEADS * D_V, D)),
        "ch_bo": jnp.zeros((1, D), jnp.float32),
        "ch_ln": ln,
        "ln1": ln,
        "ff_w1": lin(ks[4], D, (D, D_FF)),
        "ff_b1": jnp.zeros((1, D_FF), jnp.float32),
        "ff_w2": lin(ks[5], D_FF, (D_FF, D)),
        "ff_b2": jnp.zeros((1, D), jnp.float32),
        "ff_ln": ln,
    }


def reference_forward(x, layer_params):
    attention_mask = (jnp.sum(x, axis=-1) == PADDING_IDX)[:, None, None, :]

    def per_example(xb):
        neg_mask = _padding_neg_mask(xb)
        out = xb.astype(jnp.float32)
        for w in layer_params:
            out = encoder_layer_math(out, neg_mask, w, lambda t: 1.0 / t)
        return out

    out = jax.vmap(per_example)(x).astype(x.dtype)
    return out, attention_mask


if __name__ == "__main__":
    key = jax.random.PRNGKey(0)
    k_in, *k_layers = jax.random.split(key, 1 + N_LAYERS)

    B, S = 2, 8
    x = jax.random.normal(k_in, (B, S, D_MODEL), jnp.float32)
    layer_params = [init_layer_params(k) for k in k_layers]

    out, attn_mask = multi_level_encoder(x, layer_params)
    out = jax.block_until_ready(out)
    attn_mask = jax.block_until_ready(attn_mask)

    ref_out, ref_mask = reference_forward(x, layer_params)
    assert out.shape == (B, S, D_MODEL)
    assert attn_mask.shape == (B, 1, 1, S) and attn_mask.dtype == jnp.bool_
    # 5e-3 slack covers the approx (EUP) reciprocal used for the in-kernel
    # softmax normalization vs. the exact divide in the pure-JAX reference.
    max_diff = float(jnp.max(jnp.abs(out - ref_out)))
    assert jnp.allclose(out, ref_out, rtol=5e-3, atol=5e-3), max_diff
    assert bool(jnp.all(attn_mask == ref_mask))

    print("KERNEL_OK")
</pallas_src>

<mosaic_0001>
module attributes {stable_mosaic.version = 11 : i64} {
  func.func @fused_encoder_kernel(%arg0: i32, %arg1: memref<1x8x32xf32, #tpu.memory_space<vmem>>, %arg2: memref<608x128xf32, #tpu.memory_space<vmem>>, %arg3: memref<1x8x32xf32, #tpu.memory_space<vmem>>) attributes {dimension_semantics = [#tpu.dimension_semantics<parallel>], iteration_bounds = array<i64: 2>, scalar_prefetch = 0 : i64, scratch_operands = 0 : i64, tpu.core_type = #tpu.core_type<tc>, window_params = [{transform_indices = @transform_0, window_bounds = array<i64: 1, 8, 32>}, {pipeline_mode = #tpu.pipeline_mode<synchronous>, transform_indices = @transform_1, window_bounds = array<i64: 608, 128>}, {transform_indices = @transform_2, window_bounds = array<i64: 1, 8, 32>}]} {
    %c0 = arith.constant 0 : index
    %c0_0 = arith.constant 0 : index
    %c0_1 = arith.constant 0 : index
    %0 = vector.load %arg1[%c0, %c0_0, %c0_1] : memref<1x8x32xf32, #tpu.memory_space<vmem>>, vector<1x8x32xf32>
    %1 = vector.shape_cast %0 : vector<1x8x32xf32> to vector<8x32xf32>
    %cst = arith.constant 1.000000e+00 : f32
    %2 = vector.broadcast %cst : f32 to vector<1x32xf32>
    %cst_2 = arith.constant dense<0.000000e+00> : vector<1x8xf32>
    %3 = tpu.matmul %2, %1, %cst_2 {dimension_numbers = #tpu.dot_dimension_numbers<[1], [1], [0], [0], [0, 0, 1, 0], [], []>} : vector<1x32xf32>, vector<8x32xf32>, vector<1x8xf32> -> vector<1x8xf32>
    %cst_3 = arith.constant 0.000000e+00 : f32
    %4 = vector.broadcast %cst_3 : f32 to vector<1x8xf32>
    %5 = arith.cmpf oeq, %3, %4 : vector<1x8xf32>
    %cst_4 = arith.constant -1.000000e+30 : f32
    %cst_5 = arith.constant 0.000000e+00 : f32
    %6 = vector.broadcast %cst_4 : f32 to vector<1x8xf32>
    %7 = vector.broadcast %cst_5 : f32 to vector<1x8xf32>
    %8 = arith.select %5, %6, %7 : vector<1x8xi1>, vector<1x8xf32>
    %c0_6 = arith.constant 0 : index
    %c0_7 = arith.constant 0 : index
    %9 = vector.load %arg2[%c0_6, %c0_7] : memref<608x128xf32, #tpu.memory_space<vmem>>, vector<32x96xf32>
    %c32 = arith.constant 32 : index
    %c0_8 = arith.constant 0 : index
    %10 = vector.load %arg2[%c32, %c0_8] : memref<608x128xf32, #tpu.memory_space<vmem>>, vector<1x96xf32>
    %c40 = arith.constant 40 : index
    %c0_9 = arith.constant 0 : index
    %11 = vector.load %arg2[%c40, %c0_9] : memref<608x128xf32, #tpu.memory_space<vmem>>, vector<32x32xf32>
    %c72 = arith.constant 72 : index
    %c0_10 = arith.constant 0 : index
    %12 = vector.load %arg2[%c72, %c0_10] : memref<608x128xf32, #tpu.memory_space<vmem>>, vector<1x32xf32>
    %c80 = arith.constant 80 : index
    %c0_11 = arith.constant 0 : index
    %13 = vector.load %arg2[%c80, %c0_11] : memref<608x128xf32, #tpu.memory_space<vmem>>, vector<2x32xf32>
    %c88 = arith.constant 88 : index
    %c0_12 = arith.constant 0 : index
    %14 = vector.load %arg2[%c88, %c0_12] : memref<608x128xf32, #tpu.memory_space<vmem>>, vector<32x96xf32>
    %c120 = arith.constant 120 : index
    %c0_13 = arith.constant 0 : index
    %15 = vector.load %arg2[%c120, %c0_13] : memref<608x128xf32, #tpu.memory_space<vmem>>, vector<1x96xf32>
    %c128 = arith.constant 128 : index
    %c0_14 = arith.constant 0 : index
    %16 = vector.load %arg2[%c128, %c0_14] : memref<608x128xf32, #tpu.memory_space<vmem>>, vector<32x32xf32>
    %c160 = arith.constant 160 : index
    %c0_15 = arith.constant 0 : index
    %17 = vector.load %arg2[%c160, %c0_15] : memref<608x128xf32, #tpu.memory_space<vmem>>, vector<1x32xf32>
    %c168 = arith.constant 168 : index
    %c0_16 = arith.constant 0 : index
    %18 = vector.load %arg2[%c168, %c0_16] : memref<608x128xf32, #tpu.memory_space<vmem>>, vector<2x32xf32>
    %c176 = arith.constant 176 : index
    %c0_17 = arith.constant 0 : index
    %19 = vector.load %arg2[%c176, %c0_17] : memref<608x128xf32, #tpu.memory_space<vmem>>, vector<2x32xf32>
    %c184 = arith.constant 184 : index
    %c0_18 = arith.constant 0 : index
    %20 = vector.load %arg2[%c184, %c0_18] : memref<608x128xf32, #tpu.memory_space<vmem>>, vector<32x64xf32>
    %c216 = arith.constant 216 : index
    %c0_19 = arith.constant 0 : index
    %21 = vector.load %arg2[%c216, %c0_19] : memref<608x128xf32, #tpu.memory_space<vmem>>, vector<1x64xf32>
    %c224 = arith.constant 224 : index
    %c0_20 = arith.constant 0 : index
    %22 = vector.load %arg2[%c224, %c0_20] : memref<608x128xf32, #tpu.memory_space<vmem>>, vector<64x32xf32>
    %c288 = arith.constant 288 : index
    %c0_21 = arith.constant 0 : index
    %23 = vector.load %arg2[%c288, %c0_21] : memref<608x128xf32, #tpu.memory_space<vmem>>, vector<1x32xf32>
    %c296 = arith.constant 296 : index
    %c0_22 = arith.constant 0 : index
    %24 = vector.load %arg2[%c296, %c0_22] : memref<608x128xf32, #tpu.memory_space<vmem>>, vector<2x32xf32>
    %cst_23 = arith.constant dense<0.000000e+00> : vector<8x96xf32>
    %25 = tpu.matmul %1, %9, %cst_23 {dimension_numbers = #tpu.dot_dimension_numbers<[1], [0], [0], [1], [0, 0, 1, 1], [], []>} : vector<8x32xf32>, vector<32x96xf32>, vector<8x96xf32> -> vector<8x96xf32>
    %26 = vector.broadcast %10 : vector<1x96xf32> to vector<8x96xf32>
    %27 = arith.addf %25, %26 : vector<8x96xf32>
    %28 = vector.extract_strided_slice %27 {offsets = [0, 0], sizes = [8, 32], strides = [1, 1]} : vector<8x96xf32> to vector<8x32xf32>
    %29 = vector.extract_strided_slice %28 {offsets = [0, 0], sizes = [8, 8], strides = [1, 1]} : vector<8x32xf32> to vector<8x8xf32>
    %30 = vector.extract_strided_slice %28 {offsets = [0, 8], sizes = [8, 8], strides = [1, 1]} : vector<8x32xf32> to vector<8x8xf32>
    %31 = vector.extract_strided_slice %28 {offsets = [0, 16], sizes = [8, 8], strides = [1, 1]} : vector<8x32xf32> to vector<8x8xf32>
    %32 = vector.extract_strided_slice %28 {offsets = [0, 24], sizes = [8, 8], strides = [1, 1]} : vector<8x32xf32> to vector<8x8xf32>
    %33 = vector.shape_cast %29 : vector<8x8xf32> to vector<1x8x8xf32>
    %34 = vector.shape_cast %30 : vector<8x8xf32> to vector<1x8x8xf32>
    %35 = vector.shape_cast %31 : vector<8x8xf32> to vector<1x8x8xf32>
    %36 = vector.shape_cast %32 : vector<8x8xf32> to vector<1x8x8xf32>
    %37 = tpu.concatenate %33, %34, %35, %36 in 0 : vector<1x8x8xf32>, vector<1x8x8xf32>, vector<1x8x8xf32>, vector<1x8x8xf32> -> vector<4x8x8xf32>
    %38 = vector.extract_strided_slice %27 {offsets = [0, 32], sizes = [8, 32], strides = [1, 1]} : vector<8x96xf32> to vector<8x32xf32>
    %39 = vector.extract_strided_slice %38 {offsets = [0, 0], sizes = [8, 8], strides = [1, 1]} : vector<8x32xf32> to vector<8x8xf32>
    %40 = vector.extract_strided_slice %38 {offsets = [0, 8], sizes = [8, 8], strides = [1, 1]} : vector<8x32xf32> to vector<8x8xf32>
    %41 = vector.extract_strided_slice %38 {offsets = [0, 16], sizes = [8, 8], strides = [1, 1]} : vector<8x32xf32> to vector<8x8xf32>
    %42 = vector.extract_strided_slice %38 {offsets = [0, 24], sizes = [8, 8], strides = [1, 1]} : vector<8x32xf32> to vector<8x8xf32>
    %43 = vector.shape_cast %39 : vector<8x8xf32> to vector<1x8x8xf32>
    %44 = vector.shape_cast %40 : vector<8x8xf32> to vector<1x8x8xf32>
    %45 = vector.shape_cast %41 : vector<8x8xf32> to vector<1x8x8xf32>
    %46 = vector.shape_cast %42 : vector<8x8xf32> to vector<1x8x8xf32>
    %47 = tpu.concatenate %43, %44, %45, %46 in 0 : vector<1x8x8xf32>, vector<1x8x8xf32>, vector<1x8x8xf32>, vector<1x8x8xf32> -> vector<4x8x8xf32>
    %48 = vector.extract_strided_slice %27 {offsets = [0, 64], sizes = [8, 32], strides = [1, 1]} : vector<8x96xf32> to vector<8x32xf32>
    %49 = vector.extract_strided_slice %48 {offsets = [0, 0], sizes = [8, 8], strides = [1, 1]} : vector<8x32xf32> to vector<8x8xf32>
    %50 = vector.extract_strided_slice %48 {offsets = [0, 8], sizes = [8, 8], strides = [1, 1]} : vector<8x32xf32> to vector<8x8xf32>
    %51 = vector.extract_strided_slice %48 {offsets = [0, 16], sizes = [8, 8], strides = [1, 1]} : vector<8x32xf32> to vector<8x8xf32>
    %52 = vector.extract_strided_slice %48 {offsets = [0, 24], sizes = [8, 8], strides = [1, 1]} : vector<8x32xf32> to vector<8x8xf32>
    %53 = vector.shape_cast %49 : vector<8x8xf32> to vector<1x8x8xf32>
    %54 = vector.shape_cast %50 : vector<8x8xf32> to vector<1x8x8xf32>
    %55 = vector.shape_cast %51 : vector<8x8xf32> to vector<1x8x8xf32>
    %56 = vector.shape_cast %52 : vector<8x8xf32> to vector<1x8x8xf32>
    %57 = tpu.concatenate %53, %54, %55, %56 in 0 : vector<1x8x8xf32>, vector<1x8x8xf32>, vector<1x8x8xf32>, vector<1x8x8xf32> -> vector<4x8x8xf32>
    "tpu.trace_start"() <{level = 10 : i32, message = "nqd,nkd->nqk"}> : () -> ()
    %cst_24 = arith.constant dense<0.000000e+00> : vector<4x8x8xf32>
    %58 = tpu.matmul %37, %47, %cst_24 {dimension_numbers = #tpu.dot_dimension_numbers<[2], [2], [1], [1], [0, 0, 0, 1, 1, 1], [0], [0]>} : vector<4x8x8xf32>, vector<4x8x8xf32>, vector<4x8x8xf32> -> vector<4x8x8xf32>
    "tpu.trace_stop"() : () -> ()
    %cst_25 = arith.constant 0.353553385 : f32
    %59 = vector.broadcast %cst_25 : f32 to vector<4x8x8xf32>
    %60 = arith.mulf %58, %59 : vector<4x8x8xf32>
    %61 = vector.shape_cast %8 : vector<1x8xf32> to vector<1x1x8xf32>
    %62 = vector.broadcast %61 : vector<1x1x8xf32> to vector<4x8x8xf32>
    %63 = arith.addf %60, %62 : vector<4x8x8xf32>
    %cst_26 = arith.constant dense<0xFF800000> : vector<4x8xf32>
    %64 = vector.multi_reduction <maximumf>, %63, %cst_26 [2] : vector<4x8x8xf32> to vector<4x8xf32>
    %65 = vector.shape_cast %64 : vector<4x8xf32> to vector<4x8x1xf32>
    %66 = vector.broadcast %65 : vector<4x8x1xf32> to vector<4x8x8xf32>
    %67 = arith.subf %63, %66 : vector<4x8x8xf32>
    %68 = math.exp %67 : vector<4x8x8xf32>
    %cst_27 = arith.constant dense<0.000000e+00> : vector<4x8xf32>
    %69 = vector.multi_reduction <add>, %68, %cst_27 [2] : vector<4x8x8xf32> to vector<4x8xf32>
    %70 = vector.shape_cast %69 : vector<4x8xf32> to vector<4x8x1xf32>
    %71 = tpu.reciprocal %70 : vector<4x8x1xf32> -> vector<4x8x1xf32>
    %72 = vector.broadcast %71 : vector<4x8x1xf32> to vector<4x8x8xf32>
    %73 = arith.mulf %68, %72 : vector<4x8x8xf32>
    "tpu.trace_start"() <{level = 10 : i32, message = "nqk,nkd->nqd"}> : () -> ()
    %cst_28 = arith.constant dense<0.000000e+00> : vector<4x8x8xf32>
    %74 = tpu.matmul %73, %57, %cst_28 {dimension_numbers = #tpu.dot_dimension_numbers<[2], [1], [1], [2], [0, 0, 0, 1, 1, 2], [0], [0]>} : vector<4x8x8xf32>, vector<4x8x8xf32>, vector<4x8x8xf32> -> vector<4x8x8xf32>
    "tpu.trace_stop"() : () -> ()
    %75 = vector.extract_strided_slice %11 {offsets = [0, 0], sizes = [8, 32], strides = [1, 1]} : vector<32x32xf32> to vector<8x32xf32>
    %76 = vector.extract_strided_slice %11 {offsets = [8, 0], sizes = [8, 32], strides = [1, 1]} : vector<32x32xf32> to vector<8x32xf32>
    %77 = vector.extract_strided_slice %11 {offsets = [16, 0], sizes = [8, 32], strides = [1, 1]} : vector<32x32xf32> to vector<8x32xf32>
    %78 = vector.extract_strided_slice %11 {offsets = [24, 0], sizes = [8, 32], strides = [1, 1]} : vector<32x32xf32> to vector<8x32xf32>
    %79 = vector.shape_cast %75 : vector<8x32xf32> to vector<1x8x32xf32>
    %80 = vector.shape_cast %76 : vector<8x32xf32> to vector<1x8x32xf32>
    %81 = vector.shape_cast %77 : vector<8x32xf32> to vector<1x8x32xf32>
    %82 = vector.shape_cast %78 : vector<8x32xf32> to vector<1x8x32xf32>
    %83 = tpu.concatenate %79, %80, %81, %82 in 0 : vector<1x8x32xf32>, vector<1x8x32xf32>, vector<1x8x32xf32>, vector<1x8x32xf32> -> vector<4x8x32xf32>
    "tpu.trace_start"() <{level = 10 : i32, message = "nqd,nde->nqe"}> : () -> ()
    %cst_29 = arith.constant dense<0.000000e+00> : vector<4x8x32xf32>
    %84 = tpu.matmul %74, %83, %cst_29 {dimension_numbers = #tpu.dot_dimension_numbers<[2], [1], [1], [2], [0, 0, 0, 1, 1, 2], [0], [0]>} : vector<4x8x8xf32>, vector<4x8x32xf32>, vector<4x8x32xf32> -> vector<4x8x32xf32>
    "tpu.trace_stop"() : () -> ()
    %cst_30 = arith.constant dense<0.000000e+00> : vector<8x32xf32>
    %85 = vector.multi_reduction <add>, %84, %cst_30 [0] : vector<4x8x32xf32> to vector<8x32xf32>
    %86 = vector.broadcast %12 : vector<1x32xf32> to vector<8x32xf32>
    %87 = arith.addf %85, %86 : vector<8x32xf32>
    %88 = arith.addf %1, %87 : vector<8x32xf32>
    %89 = vector.extract_strided_slice %13 {offsets = [0, 0], sizes = [1, 32], strides = [1, 1]} : vector<2x32xf32> to vector<1x32xf32>
    %90 = vector.extract_strided_slice %13 {offsets = [1, 0], sizes = [1, 32], strides = [1, 1]} : vector<2x32xf32> to vector<1x32xf32>
    %cst_31 = arith.constant dense<0.000000e+00> : vector<8xf32>
    %91 = vector.multi_reduction <add>, %88, %cst_31 [1] : vector<8x32xf32> to vector<8xf32>
    %92 = vector.shape_cast %91 : vector<8xf32> to vector<8x1xf32>
    %cst_32 = arith.constant 3.200000e+01 : f32
    %93 = vector.broadcast %cst_32 : f32 to vector<8x1xf32>
    %94 = arith.divf %92, %93 : vector<8x1xf32>
    %95 = vector.broadcast %94 : vector<8x1xf32> to vector<8x32xf32>
    %96 = arith.subf %88, %95 : vector<8x32xf32>
    %97 = arith.mulf %96, %96 : vector<8x32xf32>
    %cst_33 = arith.constant dense<0.000000e+00> : vector<8xf32>
    %98 = vector.multi_reduction <add>, %97, %cst_33 [1] : vector<8x32xf32> to vector<8xf32>
    %99 = vector.shape_cast %98 : vector<8xf32> to vector<8x1xf32>
    %cst_34 = arith.constant 3.200000e+01 : f32
    %100 = vector.broadcast %cst_34 : f32 to vector<8x1xf32>
    %101 = arith.divf %99, %100 : vector<8x1xf32>
    %102 = vector.broadcast %94 : vector<8x1xf32> to vector<8x32xf32>
    %103 = arith.subf %88, %102 : vector<8x32xf32>
    %cst_35 = arith.constant 9.99999974E-6 : f32
    %104 = vector.broadcast %cst_35 : f32 to vector<8x1xf32>
    %105 = arith.addf %101, %104 : vector<8x1xf32>
    %106 = math.rsqrt %105 : vector<8x1xf32>
    %107 = vector.broadcast %106 : vector<8x1xf32> to vector<8x32xf32>
    %108 = arith.mulf %103, %107 : vector<8x32xf32>
    %109 = vector.broadcast %89 : vector<1x32xf32> to vector<8x32xf32>
    %110 = arith.mulf %108, %109 : vector<8x32xf32>
    %111 = vector.broadcast %90 : vector<1x32xf32> to vector<8x32xf32>
    %112 = arith.addf %110, %111 : vector<8x32xf32>
    %cst_36 = arith.constant dense<0.000000e+00> : vector<8x96xf32>
    %113 = tpu.matmul %1, %14, %cst_36 {dimension_numbers = #tpu.dot_dimension_numbers<[1], [0], [0], [1], [0, 0, 1, 1], [], []>} : vector<8x32xf32>, vector<32x96xf32>, vector<8x96xf32> -> vector<8x96xf32>
    %114 = vector.broadcast %15 : vector<1x96xf32> to vector<8x96xf32>
    %115 = arith.addf %113, %114 : vector<8x96xf32>
    %116 = vector.extract_strided_slice %115 {offsets = [0, 64], sizes = [8, 32], strides = [1, 1]} : vector<8x96xf32> to vector<8x32xf32>
    %117 = vector.extract_strided_slice %116 {offsets = [0, 0], sizes = [8, 8], strides = [1, 1]} : vector<8x32xf32> to vector<8x8xf32>
    %118 = vector.extract_strided_slice %116 {offsets = [0, 8], sizes = [8, 8], strides = [1, 1]} : vector<8x32xf32> to vector<8x8xf32>
    %119 = vector.extract_strided_slice %116 {offsets = [0, 16], sizes = [8, 8], strides = [1, 1]} : vector<8x32xf32> to vector<8x8xf32>
    %120 = vector.extract_strided_slice %116 {offsets = [0, 24], sizes = [8, 8], strides = [1, 1]} : vector<8x32xf32> to vector<8x8xf32>
    %121 = vector.shape_cast %117 : vector<8x8xf32> to vector<1x8x8xf32>
    %122 = vector.shape_cast %118 : vector<8x8xf32> to vector<1x8x8xf32>
    %123 = vector.shape_cast %119 : vector<8x8xf32> to vector<1x8x8xf32>
    %124 = vector.shape_cast %120 : vector<8x8xf32> to vector<1x8x8xf32>
    %125 = tpu.concatenate %121, %122, %123, %124 in 0 : vector<1x8x8xf32>, vector<1x8x8xf32>, vector<1x8x8xf32>, vector<1x8x8xf32> -> vector<4x8x8xf32>
    %126 = vector.extract_strided_slice %115 {offsets = [0, 0], sizes = [8, 8], strides = [1, 1]} : vector<8x96xf32> to vector<8x8xf32>
    %127 = vector.extract_strided_slice %115 {offsets = [0, 32], sizes = [8, 8], strides = [1, 1]} : vector<8x96xf32> to vector<8x8xf32>
    %cst_37 = arith.constant dense<0.000000e+00> : vector<8x8xf32>
    %128 = tpu.matmul %126, %127, %cst_37 {dimension_numbers = #tpu.dot_dimension_numbers<[0], [0], [1], [1], [0, 1, 1, 1], [], []>} : vector<8x8xf32>, vector<8x8xf32>, vector<8x8xf32> -> vector<8x8xf32>
    %129 = vector.extract_strided_slice %115 {offsets = [0, 8], sizes = [8, 8], strides = [1, 1]} : vector<8x96xf32> to vector<8x8xf32>
    %130 = vector.extract_strided_slice %115 {offsets = [0, 40], sizes = [8, 8], strides = [1, 1]} : vector<8x96xf32> to vector<8x8xf32>
    %cst_38 = arith.constant dense<0.000000e+00> : vector<8x8xf32>
    %131 = tpu.matmul %129, %130, %cst_38 {dimension_numbers = #tpu.dot_dimension_numbers<[0], [0], [1], [1], [0, 1, 1, 1], [], []>} : vector<8x8xf32>, vector<8x8xf32>, vector<8x8xf32> -> vector<8x8xf32>
    %132 = vector.extract_strided_slice %115 {offsets = [0, 16], sizes = [8, 8], strides = [1, 1]} : vector<8x96xf32> to vector<8x8xf32>
    %133 = vector.extract_strided_slice %115 {offsets = [0, 48], sizes = [8, 8], strides = [1, 1]} : vector<8x96xf32> to vector<8x8xf32>
    %cst_39 = arith.constant dense<0.000000e+00> : vector<8x8xf32>
    %134 = tpu.matmul %132, %133, %cst_39 {dimension_numbers = #tpu.dot_dimension_numbers<[0], [0], [1], [1], [0, 1, 1, 1], [], []>} : vector<8x8xf32>, vector<8x8xf32>, vector<8x8xf32> -> vector<8x8xf32>
    %135 = vector.extract_strided_slice %115 {offsets = [0, 24], sizes = [8, 8], strides = [1, 1]} : vector<8x96xf32> to vector<8x8xf32>
    %136 = vector.extract_strided_slice %115 {offsets = [0, 56], sizes = [8, 8], strides = [1, 1]} : vector<8x96xf32> to vector<8x8xf32>
    %cst_40 = arith.constant dense<0.000000e+00> : vector<8x8xf32>
    %137 = tpu.matmul %135, %136, %cst_40 {dimension_numbers = #tpu.dot_dimension_numbers<[0], [0], [1], [1], [0, 1, 1, 1], [], []>} : vector<8x8xf32>, vector<8x8xf32>, vector<8x8xf32> -> vector<8x8xf32>
    %138 = vector.shape_cast %128 : vector<8x8xf32> to vector<1x8x8xf32>
    %139 = vector.shape_cast %131 : vector<8x8xf32> to vector<1x8x8xf32>
    %140 = vector.shape_cast %134 : vector<8x8xf32> to vector<1x8x8xf32>
    %141 = vector.shape_cast %137 : vector<8x8xf32> to vector<1x8x8xf32>
    %142 = tpu.concatenate %138, %139, %140, %141 in 0 : vector<1x8x8xf32>, vector<1x8x8xf32>, vector<1x8x8xf32>, vector<1x8x8xf32> -> vector<4x8x8xf32>
    %cst_41 = arith.constant 0.353553385 : f32
    %143 = vector.broadcast %cst_41 : f32 to vector<4x8x8xf32>
    %144 = arith.mulf %142, %143 : vector<4x8x8xf32>
    %cst_42 = arith.constant dense<0xFF800000> : vector<4x8xf32>
    %145 = vector.multi_reduction <maximumf>, %144, %cst_42 [2] : vector<4x8x8xf32> to vector<4x8xf32>
    %146 = vector.shape_cast %145 : vector<4x8xf32> to vector<4x8x1xf32>
    %147 = vector.broadcast %146 : vector<4x8x1xf32> to vector<4x8x8xf32>
    %148 = arith.subf %144, %147 : vector<4x8x8xf32>
    %149 = math.exp %148 : vector<4x8x8xf32>
    %cst_43 = arith.constant dense<0.000000e+00> : vector<4x8xf32>
    %150 = vector.multi_reduction <add>, %149, %cst_43 [2] : vector<4x8x8xf32> to vector<4x8xf32>
    %151 = vector.shape_cast %150 : vector<4x8xf32> to vector<4x8x1xf32>
    %152 = tpu.reciprocal %151 : vector<4x8x1xf32> -> vector<4x8x1xf32>
    %153 = vector.broadcast %152 : vector<4x8x1xf32> to vector<4x8x8xf32>
    %154 = arith.mulf %149, %153 : vector<4x8x8xf32>
    "tpu.trace_start"() <{level = 10 : i32, message = "nse,nde->nsd"}> : () -> ()
    %cst_44 = arith.constant dense<0.000000e+00> : vector<4x8x8xf32>
    %155 = tpu.matmul %125, %154, %cst_44 {dimension_numbers = #tpu.dot_dimension_numbers<[2], [2], [1], [1], [0, 0, 0, 1, 1, 1], [0], [0]>} : vector<4x8x8xf32>, vector<4x8x8xf32>, vector<4x8x8xf32> -> vector<4x8x8xf32>
    "tpu.trace_stop"() : () -> ()
    %156 = vector.extract_strided_slice %16 {offsets = [0, 0], sizes = [8, 32], strides = [1, 1]} : vector<32x32xf32> to vector<8x32xf32>
    %157 = vector.extract_strided_slice %16 {offsets = [8, 0], sizes = [8, 32], strides = [1, 1]} : vector<32x32xf32> to vector<8x32xf32>
    %158 = vector.extract_strided_slice %16 {offsets = [16, 0], sizes = [8, 32], strides = [1, 1]} : vector<32x32xf32> to vector<8x32xf32>
    %159 = vector.extract_strided_slice %16 {offsets = [24, 0], sizes = [8, 32], strides = [1, 1]} : vector<32x32xf32> to vector<8x32xf32>
    %160 = vector.shape_cast %156 : vector<8x32xf32> to vector<1x8x32xf32>
    %161 = vector.shape_cast %157 : vector<8x32xf32> to vector<1x8x32xf32>
    %162 = vector.shape_cast %158 : vector<8x32xf32> to vector<1x8x32xf32>
    %163 = vector.shape_cast %159 : vector<8x32xf32> to vector<1x8x32xf32>
    %164 = tpu.concatenate %160, %161, %162, %163 in 0 : vector<1x8x32xf32>, vector<1x8x32xf32>, vector<1x8x32xf32>, vector<1x8x32xf32> -> vector<4x8x32xf32>
    "tpu.trace_start"() <{level = 10 : i32, message = "nqd,nde->nqe"}> : () -> ()
    %cst_45 = arith.constant dense<0.000000e+00> : vector<4x8x32xf32>
    %165 = tpu.matmul %155, %164, %cst_45 {dimension_numbers = #tpu.dot_dimension_numbers<[2], [1], [1], [2], [0, 0, 0, 1, 1, 2], [0], [0]>} : vector<4x8x8xf32>, vector<4x8x32xf32>, vector<4x8x32xf32> -> vector<4x8x32xf32>
    "tpu.trace_stop"() : () -> ()
    %cst_46 = arith.constant dense<0.000000e+00> : vector<8x32xf32>
    %166 = vector.multi_reduction <add>, %165, %cst_46 [0] : vector<4x8x32xf32> to vector<8x32xf32>
    %167 = vector.broadcast %17 : vector<1x32xf32> to vector<8x32xf32>
    %168 = arith.addf %166, %167 : vector<8x32xf32>
    %169 = arith.addf %1, %168 : vector<8x32xf32>
    %170 = vector.extract_strided_slice %18 {offsets = [0, 0], sizes = [1, 32], strides = [1, 1]} : vector<2x32xf32> to vector<1x32xf32>
    %171 = vector.extract_strided_slice %18 {offsets = [1, 0], sizes = [1, 32], strides = [1, 1]} : vector<2x32xf32> to vector<1x32xf32>
    %cst_47 = arith.constant dense<0.000000e+00> : vector<8xf32>
    %172 = vector.multi_reduction <add>, %169, %cst_47 [1] : vector<8x32xf32> to vector<8xf32>
    %173 = vector.shape_cast %172 : vector<8xf32> to vector<8x1xf32>
    %cst_48 = arith.constant 3.200000e+01 : f32
    %174 = vector.broadcast %cst_48 : f32 to vector<8x1xf32>
    %175 = arith.divf %173, %174 : vector<8x1xf32>
    %176 = vector.broadcast %175 : vector<8x1xf32> to vector<8x32xf32>
    %177 = arith.subf %169, %176 : vector<8x32xf32>
    %178 = arith.mulf %177, %177 : vector<8x32xf32>
    %cst_49 = arith.constant dense<0.000000e+00> : vector<8xf32>
    %179 = vector.multi_reduction <add>, %178, %cst_49 [1] : vector<8x32xf32> to vector<8xf32>
    %180 = vector.shape_cast %179 : vector<8xf32> to vector<8x1xf32>
    %cst_50 = arith.constant 3.200000e+01 : f32
    %181 = vector.broadcast %cst_50 : f32 to vector<8x1xf32>
    %182 = arith.divf %180, %181 : vector<8x1xf32>
    %183 = vector.broadcast %175 : vector<8x1xf32> to vector<8x32xf32>
    %184 = arith.subf %169, %183 : vector<8x32xf32>
    %cst_51 = arith.constant 9.99999974E-6 : f32
    %185 = vector.broadcast %cst_51 : f32 to vector<8x1xf32>
    %186 = arith.addf %182, %185 : vector<8x1xf32>
    %187 = math.rsqrt %186 : vector<8x1xf32>
    %188 = vector.broadcast %187 : vector<8x1xf32> to vector<8x32xf32>
    %189 = arith.mulf %184, %188 : vector<8x32xf32>
    %190 = vector.broadcast %170 : vector<1x32xf32> to vector<8x32xf32>
    %191 = arith.mulf %189, %190 : vector<8x32xf32>
    %192 = vector.broadcast %171 : vector<1x32xf32> to vector<8x32xf32>
    %193 = arith.addf %191, %192 : vector<8x32xf32>
    %194 = arith.addf %1, %112 : vector<8x32xf32>
    %195 = arith.addf %194, %193 : vector<8x32xf32>
    %196 = vector.extract_strided_slice %19 {offsets = [0, 0], sizes = [1, 32], strides = [1, 1]} : vector<2x32xf32> to vector<1x32xf32>
    %197 = vector.extract_strided_slice %19 {offsets = [1, 0], sizes = [1, 32], strides = [1, 1]} : vector<2x32xf32> to vector<1x32xf32>
    %cst_52 = arith.constant dense<0.000000e+00> : vector<8xf32>
    %198 = vector.multi_reduction <add>, %195, %cst_52 [1] : vector<8x32xf32> to vector<8xf32>
    %199 = vector.shape_cast %198 : vector<8xf32> to vector<8x1xf32>
    %cst_53 = arith.constant 3.200000e+01 : f32
    %200 = vector.broadcast %cst_53 : f32 to vector<8x1xf32>
    %201 = arith.divf %199, %200 : vector<8x1xf32>
    %202 = vector.broadcast %201 : vector<8x1xf32> to vector<8x32xf32>
    %203 = arith.subf %195, %202 : vector<8x32xf32>
    %204 = arith.mulf %203, %203 : vector<8x32xf32>
    %cst_54 = arith.constant dense<0.000000e+00> : vector<8xf32>
    %205 = vector.multi_reduction <add>, %204, %cst_54 [1] : vector<8x32xf32> to vector<8xf32>
    %206 = vector.shape_cast %205 : vector<8xf32> to vector<8x1xf32>
    %cst_55 = arith.constant 3.200000e+01 : f32
    %207 = vector.broadcast %cst_55 : f32 to vector<8x1xf32>
    %208 = arith.divf %206, %207 : vector<8x1xf32>
    %209 = vector.broadcast %201 : vector<8x1xf32> to vector<8x32xf32>
    %210 = arith.subf %195, %209 : vector<8x32xf32>
    %cst_56 = arith.constant 9.99999974E-6 : f32
    %211 = vector.broadcast %cst_56 : f32 to vector<8x1xf32>
    %212 = arith.addf %208, %211 : vector<8x1xf32>
    %213 = math.rsqrt %212 : vector<8x1xf32>
    %214 = vector.broadcast %213 : vector<8x1xf32> to vector<8x32xf32>
    %215 = arith.mulf %210, %214 : vector<8x32xf32>
    %216 = vector.broadcast %196 : vector<1x32xf32> to vector<8x32xf32>
    %217 = arith.mulf %215, %216 : vector<8x32xf32>
    %218 = vector.broadcast %197 : vector<1x32xf32> to vector<8x32xf32>
    %219 = arith.addf %217, %218 : vector<8x32xf32>
    %cst_57 = arith.constant dense<0.000000e+00> : vector<8x64xf32>
    %220 = tpu.matmul %219, %20, %cst_57 {dimension_numbers = #tpu.dot_dimension_numbers<[1], [0], [0], [1], [0, 0, 1, 1], [], []>} : vector<8x32xf32>, vector<32x64xf32>, vector<8x64xf32> -> vector<8x64xf32>
    %221 = vector.broadcast %21 : vector<1x64xf32> to vector<8x64xf32>
    %222 = arith.addf %220, %221 : vector<8x64xf32>
    %cst_58 = arith.constant 0.000000e+00 : f32
    %223 = vector.broadcast %cst_58 : f32 to vector<8x64xf32>
    %224 = arith.maximumf %222, %223 : vector<8x64xf32>
    %cst_59 = arith.constant dense<0.000000e+00> : vector<8x32xf32>
    %225 = tpu.matmul %224, %22, %cst_59 {dimension_numbers = #tpu.dot_dimension_numbers<[1], [0], [0], [1], [0, 0, 1, 1], [], []>} : vector<8x64xf32>, vector<64x32xf32>, vector<8x32xf32> -> vector<8x32xf32>
    %226 = vector.broadcast %23 : vector<1x32xf32> to vector<8x32xf32>
    %227 = arith.addf %225, %226 : vector<8x32xf32>
    %228 = arith.addf %219, %227 : vector<8x32xf32>
    %229 = vector.extract_strided_slice %24 {offsets = [0, 0], sizes = [1, 32], strides = [1, 1]} : vector<2x32xf32> to vector<1x32xf32>
    %230 = vector.extract_strided_slice %24 {offsets = [1, 0], sizes = [1, 32], strides = [1, 1]} : vector<2x32xf32> to vector<1x32xf32>
    %cst_60 = arith.constant dense<0.000000e+00> : vector<8xf32>
    %231 = vector.multi_reduction <add>, %228, %cst_60 [1] : vector<8x32xf32> to vector<8xf32>
    %232 = vector.shape_cast %231 : vector<8xf32> to vector<8x1xf32>
    %cst_61 = arith.constant 3.200000e+01 : f32
    %233 = vector.broadcast %cst_61 : f32 to vector<8x1xf32>
    %234 = arith.divf %232, %233 : vector<8x1xf32>
    %235 = vector.broadcast %234 : vector<8x1xf32> to vector<8x32xf32>
    %236 = arith.subf %228, %235 : vector<8x32xf32>
    %237 = arith.mulf %236, %236 : vector<8x32xf32>
    %cst_62 = arith.constant dense<0.000000e+00> : vector<8xf32>
    %238 = vector.multi_reduction <add>, %237, %cst_62 [1] : vector<8x32xf32> to vector<8xf32>
    %239 = vector.shape_cast %238 : vector<8xf32> to vector<8x1xf32>
    %cst_63 = arith.constant 3.200000e+01 : f32
    %240 = vector.broadcast %cst_63 : f32 to vector<8x1xf32>
    %241 = arith.divf %239, %240 : vector<8x1xf32>
    %242 = vector.broadcast %234 : vector<8x1xf32> to vector<8x32xf32>
    %243 = arith.subf %228, %242 : vector<8x32xf32>
    %cst_64 = arith.constant 9.99999974E-6 : f32
    %244 = vector.broadcast %cst_64 : f32 to vector<8x1xf32>
    %245 = arith.addf %241, %244 : vector<8x1xf32>
    %246 = math.rsqrt %245 : vector<8x1xf32>
    %247 = vector.broadcast %246 : vector<8x1xf32> to vector<8x32xf32>
    %248 = arith.mulf %243, %247 : vector<8x32xf32>
    %249 = vector.broadcast %229 : vector<1x32xf32> to vector<8x32xf32>
    %250 = arith.mulf %248, %249 : vector<8x32xf32>
    %251 = vector.broadcast %230 : vector<1x32xf32> to vector<8x32xf32>
    %252 = arith.addf %250, %251 : vector<8x32xf32>
    %c304 = arith.constant 304 : index
    %c0_65 = arith.constant 0 : index
    %253 = vector.load %arg2[%c304, %c0_65] : memref<608x128xf32, #tpu.memory_space<vmem>>, vector<32x96xf32>
    %c336 = arith.constant 336 : index
    %c0_66 = arith.constant 0 : index
    %254 = vector.load %arg2[%c336, %c0_66] : memref<608x128xf32, #tpu.memory_space<vmem>>, vector<1x96xf32>
    %c344 = arith.constant 344 : index
    %c0_67 = arith.constant 0 : index
    %255 = vector.load %arg2[%c344, %c0_67] : memref<608x128xf32, #tpu.memory_space<vmem>>, vector<32x32xf32>
    %c376 = arith.constant 376 : index
    %c0_68 = arith.constant 0 : index
    %256 = vector.load %arg2[%c376, %c0_68] : memref<608x128xf32, #tpu.memory_space<vmem>>, vector<1x32xf32>
    %c384 = arith.constant 384 : index
    %c0_69 = arith.constant 0 : index
    %257 = vector.load %arg2[%c384, %c0_69] : memref<608x128xf32, #tpu.memory_space<vmem>>, vector<2x32xf32>
    %c392 = arith.constant 392 : index
    %c0_70 = arith.constant 0 : index
    %258 = vector.load %arg2[%c392, %c0_70] : memref<608x128xf32, #tpu.memory_space<vmem>>, vector<32x96xf32>
    %c424 = arith.constant 424 : index
    %c0_71 = arith.constant 0 : index
    %259 = vector.load %arg2[%c424, %c0_71] : memref<608x128xf32, #tpu.memory_space<vmem>>, vector<1x96xf32>
    %c432 = arith.constant 432 : index
    %c0_72 = arith.constant 0 : index
    %260 = vector.load %arg2[%c432, %c0_72] : memref<608x128xf32, #tpu.memory_space<vmem>>, vector<32x32xf32>
    %c464 = arith.constant 464 : index
    %c0_73 = arith.constant 0 : index
    %261 = vector.load %arg2[%c464, %c0_73] : memref<608x128xf32, #tpu.memory_space<vmem>>, vector<1x32xf32>
    %c472 = arith.constant 472 : index
    %c0_74 = arith.constant 0 : index
    %262 = vector.load %arg2[%c472, %c0_74] : memref<608x128xf32, #tpu.memory_space<vmem>>, vector<2x32xf32>
    %c480 = arith.constant 480 : index
    %c0_75 = arith.constant 0 : index
    %263 = vector.load %arg2[%c480, %c0_75] : memref<608x128xf32, #tpu.memory_space<vmem>>, vector<2x32xf32>
    %c488 = arith.constant 488 : index
    %c0_76 = arith.constant 0 : index
    %264 = vector.load %arg2[%c488, %c0_76] : memref<608x128xf32, #tpu.memory_space<vmem>>, vector<32x64xf32>
    %c520 = arith.constant 520 : index
    %c0_77 = arith.constant 0 : index
    %265 = vector.load %arg2[%c520, %c0_77] : memref<608x128xf32, #tpu.memory_space<vmem>>, vector<1x64xf32>
    %c528 = arith.constant 528 : index
    %c0_78 = arith.constant 0 : index
    %266 = vector.load %arg2[%c528, %c0_78] : memref<608x128xf32, #tpu.memory_space<vmem>>, vector<64x32xf32>
    %c592 = arith.constant 592 : index
    %c0_79 = arith.constant 0 : index
    %267 = vector.load %arg2[%c592, %c0_79] : memref<608x128xf32, #tpu.memory_space<vmem>>, vector<1x32xf32>
    %c600 = arith.constant 600 : index
    %c0_80 = arith.constant 0 : index
    %268 = vector.load %arg2[%c600, %c0_80] : memref<608x128xf32, #tpu.memory_space<vmem>>, vector<2x32xf32>
    %cst_81 = arith.constant dense<0.000000e+00> : vector<8x96xf32>
    %269 = tpu.matmul %252, %253, %cst_81 {dimension_numbers = #tpu.dot_dimension_numbers<[1], [0], [0], [1], [0, 0, 1, 1], [], []>} : vector<8x32xf32>, vector<32x96xf32>, vector<8x96xf32> -> vector<8x96xf32>
    %270 = vector.broadcast %254 : vector<1x96xf32> to vector<8x96xf32>
    %271 = arith.addf %269, %270 : vector<8x96xf32>
    %272 = vector.extract_strided_slice %271 {offsets = [0, 0], sizes = [8, 32], strides = [1, 1]} : vector<8x96xf32> to vector<8x32xf32>
    %273 = vector.extract_strided_slice %272 {offsets = [0, 0], sizes = [8, 8], strides = [1, 1]} : vector<8x32xf32> to vector<8x8xf32>
    %274 = vector.extract_strided_slice %272 {offsets = [0, 8], sizes = [8, 8], strides = [1, 1]} : vector<8x32xf32> to vector<8x8xf32>
    %275 = vector.extract_strided_slice %272 {offsets = [0, 16], sizes = [8, 8], strides = [1, 1]} : vector<8x32xf32> to vector<8x8xf32>
    %276 = vector.extract_strided_slice %272 {offsets = [0, 24], sizes = [8, 8], strides = [1, 1]} : vector<8x32xf32> to vector<8x8xf32>
    %277 = vector.shape_cast %273 : vector<8x8xf32> to vector<1x8x8xf32>
    %278 = vector.shape_cast %274 : vector<8x8xf32> to vector<1x8x8xf32>
    %279 = vector.shape_cast %275 : vector<8x8xf32> to vector<1x8x8xf32>
    %280 = vector.shape_cast %276 : vector<8x8xf32> to vector<1x8x8xf32>
    %281 = tpu.concatenate %277, %278, %279, %280 in 0 : vector<1x8x8xf32>, vector<1x8x8xf32>, vector<1x8x8xf32>, vector<1x8x8xf32> -> vector<4x8x8xf32>
    %282 = vector.extract_strided_slice %271 {offsets = [0, 32], sizes = [8, 32], strides = [1, 1]} : vector<8x96xf32> to vector<8x32xf32>
    %283 = vector.extract_strided_slice %282 {offsets = [0, 0], sizes = [8, 8], strides = [1, 1]} : vector<8x32xf32> to vector<8x8xf32>
    %284 = vector.extract_strided_slice %282 {offsets = [0, 8], sizes = [8, 8], strides = [1, 1]} : vector<8x32xf32> to vector<8x8xf32>
    %285 = vector.extract_strided_slice %282 {offsets = [0, 16], sizes = [8, 8], strides = [1, 1]} : vector<8x32xf32> to vector<8x8xf32>
    %286 = vector.extract_strided_slice %282 {offsets = [0, 24], sizes = [8, 8], strides = [1, 1]} : vector<8x32xf32> to vector<8x8xf32>
    %287 = vector.shape_cast %283 : vector<8x8xf32> to vector<1x8x8xf32>
    %288 = vector.shape_cast %284 : vector<8x8xf32> to vector<1x8x8xf32>
    %289 = vector.shape_cast %285 : vector<8x8xf32> to vector<1x8x8xf32>
    %290 = vector.shape_cast %286 : vector<8x8xf32> to vector<1x8x8xf32>
    %291 = tpu.concatenate %287, %288, %289, %290 in 0 : vector<1x8x8xf32>, vector<1x8x8xf32>, vector<1x8x8xf32>, vector<1x8x8xf32> -> vector<4x8x8xf32>
    %292 = vector.extract_strided_slice %271 {offsets = [0, 64], sizes = [8, 32], strides = [1, 1]} : vector<8x96xf32> to vector<8x32xf32>
    %293 = vector.extract_strided_slice %292 {offsets = [0, 0], sizes = [8, 8], strides = [1, 1]} : vector<8x32xf32> to vector<8x8xf32>
    %294 = vector.extract_strided_slice %292 {offsets = [0, 8], sizes = [8, 8], strides = [1, 1]} : vector<8x32xf32> to vector<8x8xf32>
    %295 = vector.extract_strided_slice %292 {offsets = [0, 16], sizes = [8, 8], strides = [1, 1]} : vector<8x32xf32> to vector<8x8xf32>
    %296 = vector.extract_strided_slice %292 {offsets = [0, 24], sizes = [8, 8], strides = [1, 1]} : vector<8x32xf32> to vector<8x8xf32>
    %297 = vector.shape_cast %293 : vector<8x8xf32> to vector<1x8x8xf32>
    %298 = vector.shape_cast %294 : vector<8x8xf32> to vector<1x8x8xf32>
    %299 = vector.shape_cast %295 : vector<8x8xf32> to vector<1x8x8xf32>
    %300 = vector.shape_cast %296 : vector<8x8xf32> to vector<1x8x8xf32>
    %301 = tpu.concatenate %297, %298, %299, %300 in 0 : vector<1x8x8xf32>, vector<1x8x8xf32>, vector<1x8x8xf32>, vector<1x8x8xf32> -> vector<4x8x8xf32>
    "tpu.trace_start"() <{level = 10 : i32, message = "nqd,nkd->nqk"}> : () -> ()
    %cst_82 = arith.constant dense<0.000000e+00> : vector<4x8x8xf32>
    %302 = tpu.matmul %281, %291, %cst_82 {dimension_numbers = #tpu.dot_dimension_numbers<[2], [2], [1], [1], [0, 0, 0, 1, 1, 1], [0], [0]>} : vector<4x8x8xf32>, vector<4x8x8xf32>, vector<4x8x8xf32> -> vector<4x8x8xf32>
    "tpu.trace_stop"() : () -> ()
    %cst_83 = arith.constant 0.353553385 : f32
    %303 = vector.broadcast %cst_83 : f32 to vector<4x8x8xf32>
    %304 = arith.mulf %302, %303 : vector<4x8x8xf32>
    %305 = vector.shape_cast %8 : vector<1x8xf32> to vector<1x1x8xf32>
    %306 = vector.broadcast %305 : vector<1x1x8xf32> to vector<4x8x8xf32>
    %307 = arith.addf %304, %306 : vector<4x8x8xf32>
    %cst_84 = arith.constant dense<0xFF800000> : vector<4x8xf32>
    %308 = vector.multi_reduction <maximumf>, %307, %cst_84 [2] : vector<4x8x8xf32> to vector<4x8xf32>
    %309 = vector.shape_cast %308 : vector<4x8xf32> to vector<4x8x1xf32>
    %310 = vector.broadcast %309 : vector<4x8x1xf32> to vector<4x8x8xf32>
    %311 = arith.subf %307, %310 : vector<4x8x8xf32>
    %312 = math.exp %311 : vector<4x8x8xf32>
    %cst_85 = arith.constant dense<0.000000e+00> : vector<4x8xf32>
    %313 = vector.multi_reduction <add>, %312, %cst_85 [2] : vector<4x8x8xf32> to vector<4x8xf32>
    %314 = vector.shape_cast %313 : vector<4x8xf32> to vector<4x8x1xf32>
    %315 = tpu.reciprocal %314 : vector<4x8x1xf32> -> vector<4x8x1xf32>
    %316 = vector.broadcast %315 : vector<4x8x1xf32> to vector<4x8x8xf32>
    %317 = arith.mulf %312, %316 : vector<4x8x8xf32>
    "tpu.trace_start"() <{level = 10 : i32, message = "nqk,nkd->nqd"}> : () -> ()
    %cst_86 = arith.constant dense<0.000000e+00> : vector<4x8x8xf32>
    %318 = tpu.matmul %317, %301, %cst_86 {dimension_numbers = #tpu.dot_dimension_numbers<[2], [1], [1], [2], [0, 0, 0, 1, 1, 2], [0], [0]>} : vector<4x8x8xf32>, vector<4x8x8xf32>, vector<4x8x8xf32> -> vector<4x8x8xf32>
    "tpu.trace_stop"() : () -> ()
    %319 = vector.extract_strided_slice %255 {offsets = [0, 0], sizes = [8, 32], strides = [1, 1]} : vector<32x32xf32> to vector<8x32xf32>
    %320 = vector.extract_strided_slice %255 {offsets = [8, 0], sizes = [8, 32], strides = [1, 1]} : vector<32x32xf32> to vector<8x32xf32>
    %321 = vector.extract_strided_slice %255 {offsets = [16, 0], sizes = [8, 32], strides = [1, 1]} : vector<32x32xf32> to vector<8x32xf32>
    %322 = vector.extract_strided_slice %255 {offsets = [24, 0], sizes = [8, 32], strides = [1, 1]} : vector<32x32xf32> to vector<8x32xf32>
    %323 = vector.shape_cast %319 : vector<8x32xf32> to vector<1x8x32xf32>
    %324 = vector.shape_cast %320 : vector<8x32xf32> to vector<1x8x32xf32>
    %325 = vector.shape_cast %321 : vector<8x32xf32> to vector<1x8x32xf32>
    %326 = vector.shape_cast %322 : vector<8x32xf32> to vector<1x8x32xf32>
    %327 = tpu.concatenate %323, %324, %325, %326 in 0 : vector<1x8x32xf32>, vector<1x8x32xf32>, vector<1x8x32xf32>, vector<1x8x32xf32> -> vector<4x8x32xf32>
    "tpu.trace_start"() <{level = 10 : i32, message = "nqd,nde->nqe"}> : () -> ()
    %cst_87 = arith.constant dense<0.000000e+00> : vector<4x8x32xf32>
    %328 = tpu.matmul %318, %327, %cst_87 {dimension_numbers = #tpu.dot_dimension_numbers<[2], [1], [1], [2], [0, 0, 0, 1, 1, 2], [0], [0]>} : vector<4x8x8xf32>, vector<4x8x32xf32>, vector<4x8x32xf32> -> vector<4x8x32xf32>
    "tpu.trace_stop"() : () -> ()
    %cst_88 = arith.constant dense<0.000000e+00> : vector<8x32xf32>
    %329 = vector.multi_reduction <add>, %328, %cst_88 [0] : vector<4x8x32xf32> to vector<8x32xf32>
    %330 = vector.broadcast %256 : vector<1x32xf32> to vector<8x32xf32>
    %331 = arith.addf %329, %330 : vector<8x32xf32>
    %332 = arith.addf %252, %331 : vector<8x32xf32>
    %333 = vector.extract_strided_slice %257 {offsets = [0, 0], sizes = [1, 32], strides = [1, 1]} : vector<2x32xf32> to vector<1x32xf32>
    %334 = vector.extract_strided_slice %257 {offsets = [1, 0], sizes = [1, 32], strides = [1, 1]} : vector<2x32xf32> to vector<1x32xf32>
    %cst_89 = arith.constant dense<0.000000e+00> : vector<8xf32>
    %335 = vector.multi_reduction <add>, %332, %cst_89 [1] : vector<8x32xf32> to vector<8xf32>
    %336 = vector.shape_cast %335 : vector<8xf32> to vector<8x1xf32>
    %cst_90 = arith.constant 3.200000e+01 : f32
    %337 = vector.broadcast %cst_90 : f32 to vector<8x1xf32>
    %338 = arith.divf %336, %337 : vector<8x1xf32>
    %339 = vector.broadcast %338 : vector<8x1xf32> to vector<8x32xf32>
    %340 = arith.subf %332, %339 : vector<8x32xf32>
    %341 = arith.mulf %340, %340 : vector<8x32xf32>
    %cst_91 = arith.constant dense<0.000000e+00> : vector<8xf32>
    %342 = vector.multi_reduction <add>, %341, %cst_91 [1] : vector<8x32xf32> to vector<8xf32>
    %343 = vector.shape_cast %342 : vector<8xf32> to vector<8x1xf32>
    %cst_92 = arith.constant 3.200000e+01 : f32
    %344 = vector.broadcast %cst_92 : f32 to vector<8x1xf32>
    %345 = arith.divf %343, %344 : vector<8x1xf32>
    %346 = vector.broadcast %338 : vector<8x1xf32> to vector<8x32xf32>
    %347 = arith.subf %332, %346 : vector<8x32xf32>
    %cst_93 = arith.constant 9.99999974E-6 : f32
    %348 = vector.broadcast %cst_93 : f32 to vector<8x1xf32>
    %349 = arith.addf %345, %348 : vector<8x1xf32>
    %350 = math.rsqrt %349 : vector<8x1xf32>
    %351 = vector.broadcast %350 : vector<8x1xf32> to vector<8x32xf32>
    %352 = arith.mulf %347, %351 : vector<8x32xf32>
    %353 = vector.broadcast %333 : vector<1x32xf32> to vector<8x32xf32>
    %354 = arith.mulf %352, %353 : vector<8x32xf32>
    %355 = vector.broadcast %334 : vector<1x32xf32> to vector<8x32xf32>
    %356 = arith.addf %354, %355 : vector<8x32xf32>
    %cst_94 = arith.constant dense<0.000000e+00> : vector<8x96xf32>
    %357 = tpu.matmul %252, %258, %cst_94 {dimension_numbers = #tpu.dot_dimension_numbers<[1], [0], [0], [1], [0, 0, 1, 1], [], []>} : vector<8x32xf32>, vector<32x96xf32>, vector<8x96xf32> -> vector<8x96xf32>
    %358 = vector.broadcast %259 : vector<1x96xf32> to vector<8x96xf32>
    %359 = arith.addf %357, %358 : vector<8x96xf32>
    %360 = vector.extract_strided_slice %359 {offsets = [0, 64], sizes = [8, 32], strides = [1, 1]} : vector<8x96xf32> to vector<8x32xf32>
    %361 = vector.extract_strided_slice %360 {offsets = [0, 0], sizes = [8, 8], strides = [1, 1]} : vector<8x32xf32> to vector<8x8xf32>
    %362 = vector.extract_strided_slice %360 {offsets = [0, 8], sizes = [8, 8], strides = [1, 1]} : vector<8x32xf32> to vector<8x8xf32>
    %363 = vector.extract_strided_slice %360 {offsets = [0, 16], sizes = [8, 8], strides = [1, 1]} : vector<8x32xf32> to vector<8x8xf32>
    %364 = vector.extract_strided_slice %360 {offsets = [0, 24], sizes = [8, 8], strides = [1, 1]} : vector<8x32xf32> to vector<8x8xf32>
    %365 = vector.shape_cast %361 : vector<8x8xf32> to vector<1x8x8xf32>
    %366 = vector.shape_cast %362 : vector<8x8xf32> to vector<1x8x8xf32>
    %367 = vector.shape_cast %363 : vector<8x8xf32> to vector<1x8x8xf32>
    %368 = vector.shape_cast %364 : vector<8x8xf32> to vector<1x8x8xf32>
    %369 = tpu.concatenate %365, %366, %367, %368 in 0 : vector<1x8x8xf32>, vector<1x8x8xf32>, vector<1x8x8xf32>, vector<1x8x8xf32> -> vector<4x8x8xf32>
    %370 = vector.extract_strided_slice %359 {offsets = [0, 0], sizes = [8, 8], strides = [1, 1]} : vector<8x96xf32> to vector<8x8xf32>
    %371 = vector.extract_strided_slice %359 {offsets = [0, 32], sizes = [8, 8], strides = [1, 1]} : vector<8x96xf32> to vector<8x8xf32>
    %cst_95 = arith.constant dense<0.000000e+00> : vector<8x8xf32>
    %372 = tpu.matmul %370, %371, %cst_95 {dimension_numbers = #tpu.dot_dimension_numbers<[0], [0], [1], [1], [0, 1, 1, 1], [], []>} : vector<8x8xf32>, vector<8x8xf32>, vector<8x8xf32> -> vector<8x8xf32>
    %373 = vector.extract_strided_slice %359 {offsets = [0, 8], sizes = [8, 8], strides = [1, 1]} : vector<8x96xf32> to vector<8x8xf32>
    %374 = vector.extract_strided_slice %359 {offsets = [0, 40], sizes = [8, 8], strides = [1, 1]} : vector<8x96xf32> to vector<8x8xf32>
    %cst_96 = arith.constant dense<0.000000e+00> : vector<8x8xf32>
    %375 = tpu.matmul %373, %374, %cst_96 {dimension_numbers = #tpu.dot_dimension_numbers<[0], [0], [1], [1], [0, 1, 1, 1], [], []>} : vector<8x8xf32>, vector<8x8xf32>, vector<8x8xf32> -> vector<8x8xf32>
    %376 = vector.extract_strided_slice %359 {offsets = [0, 16], sizes = [8, 8], strides = [1, 1]} : vector<8x96xf32> to vector<8x8xf32>
    %377 = vector.extract_strided_slice %359 {offsets = [0, 48], sizes = [8, 8], strides = [1, 1]} : vector<8x96xf32> to vector<8x8xf32>
    %cst_97 = arith.constant dense<0.000000e+00> : vector<8x8xf32>
    %378 = tpu.matmul %376, %377, %cst_97 {dimension_numbers = #tpu.dot_dimension_numbers<[0], [0], [1], [1], [0, 1, 1, 1], [], []>} : vector<8x8xf32>, vector<8x8xf32>, vector<8x8xf32> -> vector<8x8xf32>
    %379 = vector.extract_strided_slice %359 {offsets = [0, 24], sizes = [8, 8], strides = [1, 1]} : vector<8x96xf32> to vector<8x8xf32>
    %380 = vector.extract_strided_slice %359 {offsets = [0, 56], sizes = [8, 8], strides = [1, 1]} : vector<8x96xf32> to vector<8x8xf32>
    %cst_98 = arith.constant dense<0.000000e+00> : vector<8x8xf32>
    %381 = tpu.matmul %379, %380, %cst_98 {dimension_numbers = #tpu.dot_dimension_numbers<[0], [0], [1], [1], [0, 1, 1, 1], [], []>} : vector<8x8xf32>, vector<8x8xf32>, vector<8x8xf32> -> vector<8x8xf32>
    %382 = vector.shape_cast %372 : vector<8x8xf32> to vector<1x8x8xf32>
    %383 = vector.shape_cast %375 : vector<8x8xf32> to vector<1x8x8xf32>
    %384 = vector.shape_cast %378 : vector<8x8xf32> to vector<1x8x8xf32>
    %385 = vector.shape_cast %381 : vector<8x8xf32> to vector<1x8x8xf32>
    %386 = tpu.concatenate %382, %383, %384, %385 in 0 : vector<1x8x8xf32>, vector<1x8x8xf32>, vector<1x8x8xf32>, vector<1x8x8xf32> -> vector<4x8x8xf32>
    %cst_99 = arith.constant 0.353553385 : f32
    %387 = vector.broadcast %cst_99 : f32 to vector<4x8x8xf32>
    %388 = arith.mulf %386, %387 : vector<4x8x8xf32>
    %cst_100 = arith.constant dense<0xFF800000> : vector<4x8xf32>
    %389 = vector.multi_reduction <maximumf>, %388, %cst_100 [2] : vector<4x8x8xf32> to vector<4x8xf32>
    %390 = vector.shape_cast %389 : vector<4x8xf32> to vector<4x8x1xf32>
    %391 = vector.broadcast %390 : vector<4x8x1xf32> to vector<4x8x8xf32>
    %392 = arith.subf %388, %391 : vector<4x8x8xf32>
    %393 = math.exp %392 : vector<4x8x8xf32>
    %cst_101 = arith.constant dense<0.000000e+00> : vector<4x8xf32>
    %394 = vector.multi_reduction <add>, %393, %cst_101 [2] : vector<4x8x8xf32> to vector<4x8xf32>
    %395 = vector.shape_cast %394 : vector<4x8xf32> to vector<4x8x1xf32>
    %396 = tpu.reciprocal %395 : vector<4x8x1xf32> -> vector<4x8x1xf32>
    %397 = vector.broadcast %396 : vector<4x8x1xf32> to vector<4x8x8xf32>
    %398 = arith.mulf %393, %397 : vector<4x8x8xf32>
    "tpu.trace_start"() <{level = 10 : i32, message = "nse,nde->nsd"}> : () -> ()
    %cst_102 = arith.constant dense<0.000000e+00> : vector<4x8x8xf32>
    %399 = tpu.matmul %369, %398, %cst_102 {dimension_numbers = #tpu.dot_dimension_numbers<[2], [2], [1], [1], [0, 0, 0, 1, 1, 1], [0], [0]>} : vector<4x8x8xf32>, vector<4x8x8xf32>, vector<4x8x8xf32> -> vector<4x8x8xf32>
    "tpu.trace_stop"() : () -> ()
    %400 = vector.extract_strided_slice %260 {offsets = [0, 0], sizes = [8, 32], strides = [1, 1]} : vector<32x32xf32> to vector<8x32xf32>
    %401 = vector.extract_strided_slice %260 {offsets = [8, 0], sizes = [8, 32], strides = [1, 1]} : vector<32x32xf32> to vector<8x32xf32>
    %402 = vector.extract_strided_slice %260 {offsets = [16, 0], sizes = [8, 32], strides = [1, 1]} : vector<32x32xf32> to vector<8x32xf32>
    %403 = vector.extract_strided_slice %260 {offsets = [24, 0], sizes = [8, 32], strides = [1, 1]} : vector<32x32xf32> to vector<8x32xf32>
    %404 = vector.shape_cast %400 : vector<8x32xf32> to vector<1x8x32xf32>
    %405 = vector.shape_cast %401 : vector<8x32xf32> to vector<1x8x32xf32>
    %406 = vector.shape_cast %402 : vector<8x32xf32> to vector<1x8x32xf32>
    %407 = vector.shape_cast %403 : vector<8x32xf32> to vector<1x8x32xf32>
    %408 = tpu.concatenate %404, %405, %406, %407 in 0 : vector<1x8x32xf32>, vector<1x8x32xf32>, vector<1x8x32xf32>, vector<1x8x32xf32> -> vector<4x8x32xf32>
    "tpu.trace_start"() <{level = 10 : i32, message = "nqd,nde->nqe"}> : () -> ()
    %cst_103 = arith.constant dense<0.000000e+00> : vector<4x8x32xf32>
    %409 = tpu.matmul %399, %408, %cst_103 {dimension_numbers = #tpu.dot_dimension_numbers<[2], [1], [1], [2], [0, 0, 0, 1, 1, 2], [0], [0]>} : vector<4x8x8xf32>, vector<4x8x32xf32>, vector<4x8x32xf32> -> vector<4x8x32xf32>
    "tpu.trace_stop"() : () -> ()
    %cst_104 = arith.constant dense<0.000000e+00> : vector<8x32xf32>
    %410 = vector.multi_reduction <add>, %409, %cst_104 [0] : vector<4x8x32xf32> to vector<8x32xf32>
    %411 = vector.broadcast %261 : vector<1x32xf32> to vector<8x32xf32>
    %412 = arith.addf %410, %411 : vector<8x32xf32>
    %413 = arith.addf %252, %412 : vector<8x32xf32>
    %414 = vector.extract_strided_slice %262 {offsets = [0, 0], sizes = [1, 32], strides = [1, 1]} : vector<2x32xf32> to vector<1x32xf32>
    %415 = vector.extract_strided_slice %262 {offsets = [1, 0], sizes = [1, 32], strides = [1, 1]} : vector<2x32xf32> to vector<1x32xf32>
    %cst_105 = arith.constant dense<0.000000e+00> : vector<8xf32>
    %416 = vector.multi_reduction <add>, %413, %cst_105 [1] : vector<8x32xf32> to vector<8xf32>
    %417 = vector.shape_cast %416 : vector<8xf32> to vector<8x1xf32>
    %cst_106 = arith.constant 3.200000e+01 : f32
    %418 = vector.broadcast %cst_106 : f32 to vector<8x1xf32>
    %419 = arith.divf %417, %418 : vector<8x1xf32>
    %420 = vector.broadcast %419 : vector<8x1xf32> to vector<8x32xf32>
    %421 = arith.subf %413, %420 : vector<8x32xf32>
    %422 = arith.mulf %421, %421 : vector<8x32xf32>
    %cst_107 = arith.constant dense<0.000000e+00> : vector<8xf32>
    %423 = vector.multi_reduction <add>, %422, %cst_107 [1] : vector<8x32xf32> to vector<8xf32>
    %424 = vector.shape_cast %423 : vector<8xf32> to vector<8x1xf32>
    %cst_108 = arith.constant 3.200000e+01 : f32
    %425 = vector.broadcast %cst_108 : f32 to vector<8x1xf32>
    %426 = arith.divf %424, %425 : vector<8x1xf32>
    %427 = vector.broadcast %419 : vector<8x1xf32> to vector<8x32xf32>
    %428 = arith.subf %413, %427 : vector<8x32xf32>
    %cst_109 = arith.constant 9.99999974E-6 : f32
    %429 = vector.broadcast %cst_109 : f32 to vector<8x1xf32>
    %430 = arith.addf %426, %429 : vector<8x1xf32>
    %431 = math.rsqrt %430 : vector<8x1xf32>
    %432 = vector.broadcast %431 : vector<8x1xf32> to vector<8x32xf32>
    %433 = arith.mulf %428, %432 : vector<8x32xf32>
    %434 = vector.broadcast %414 : vector<1x32xf32> to vector<8x32xf32>
    %435 = arith.mulf %433, %434 : vector<8x32xf32>
    %436 = vector.broadcast %415 : vector<1x32xf32> to vector<8x32xf32>
    %437 = arith.addf %435, %436 : vector<8x32xf32>
    %438 = arith.addf %252, %356 : vector<8x32xf32>
    %439 = arith.addf %438, %437 : vector<8x32xf32>
    %440 = vector.extract_strided_slice %263 {offsets = [0, 0], sizes = [1, 32], strides = [1, 1]} : vector<2x32xf32> to vector<1x32xf32>
    %441 = vector.extract_strided_slice %263 {offsets = [1, 0], sizes = [1, 32], strides = [1, 1]} : vector<2x32xf32> to vector<1x32xf32>
    %cst_110 = arith.constant dense<0.000000e+00> : vector<8xf32>
    %442 = vector.multi_reduction <add>, %439, %cst_110 [1] : vector<8x32xf32> to vector<8xf32>
    %443 = vector.shape_cast %442 : vector<8xf32> to vector<8x1xf32>
    %cst_111 = arith.constant 3.200000e+01 : f32
    %444 = vector.broadcast %cst_111 : f32 to vector<8x1xf32>
    %445 = arith.divf %443, %444 : vector<8x1xf32>
    %446 = vector.broadcast %445 : vector<8x1xf32> to vector<8x32xf32>
    %447 = arith.subf %439, %446 : vector<8x32xf32>
    %448 = arith.mulf %447, %447 : vector<8x32xf32>
    %cst_112 = arith.constant dense<0.000000e+00> : vector<8xf32>
    %449 = vector.multi_reduction <add>, %448, %cst_112 [1] : vector<8x32xf32> to vector<8xf32>
    %450 = vector.shape_cast %449 : vector<8xf32> to vector<8x1xf32>
    %cst_113 = arith.constant 3.200000e+01 : f32
    %451 = vector.broadcast %cst_113 : f32 to vector<8x1xf32>
    %452 = arith.divf %450, %451 : vector<8x1xf32>
    %453 = vector.broadcast %445 : vector<8x1xf32> to vector<8x32xf32>
    %454 = arith.subf %439, %453 : vector<8x32xf32>
    %cst_114 = arith.constant 9.99999974E-6 : f32
    %455 = vector.broadcast %cst_114 : f32 to vector<8x1xf32>
    %456 = arith.addf %452, %455 : vector<8x1xf32>
    %457 = math.rsqrt %456 : vector<8x1xf32>
    %458 = vector.broadcast %457 : vector<8x1xf32> to vector<8x32xf32>
    %459 = arith.mulf %454, %458 : vector<8x32xf32>
    %460 = vector.broadcast %440 : vector<1x32xf32> to vector<8x32xf32>
    %461 = arith.mulf %459, %460 : vector<8x32xf32>
    %462 = vector.broadcast %441 : vector<1x32xf32> to vector<8x32xf32>
    %463 = arith.addf %461, %462 : vector<8x32xf32>
    %cst_115 = arith.constant dense<0.000000e+00> : vector<8x64xf32>
    %464 = tpu.matmul %463, %264, %cst_115 {dimension_numbers = #tpu.dot_dimension_numbers<[1], [0], [0], [1], [0, 0, 1, 1], [], []>} : vector<8x32xf32>, vector<32x64xf32>, vector<8x64xf32> -> vector<8x64xf32>
    %465 = vector.broadcast %265 : vector<1x64xf32> to vector<8x64xf32>
    %466 = arith.addf %464, %465 : vector<8x64xf32>
    %cst_116 = arith.constant 0.000000e+00 : f32
    %467 = vector.broadcast %cst_116 : f32 to vector<8x64xf32>
    %468 = arith.maximumf %466, %467 : vector<8x64xf32>
    %cst_117 = arith.constant dense<0.000000e+00> : vector<8x32xf32>
    %469 = tpu.matmul %468, %266, %cst_117 {dimension_numbers = #tpu.dot_dimension_numbers<[1], [0], [0], [1], [0, 0, 1, 1], [], []>} : vector<8x64xf32>, vector<64x32xf32>, vector<8x32xf32> -> vector<8x32xf32>
    %470 = vector.broadcast %267 : vector<1x32xf32> to vector<8x32xf32>
    %471 = arith.addf %469, %470 : vector<8x32xf32>
    %472 = arith.addf %463, %471 : vector<8x32xf32>
    %473 = vector.extract_strided_slice %268 {offsets = [0, 0], sizes = [1, 32], strides = [1, 1]} : vector<2x32xf32> to vector<1x32xf32>
    %474 = vector.extract_strided_slice %268 {offsets = [1, 0], sizes = [1, 32], strides = [1, 1]} : vector<2x32xf32> to vector<1x32xf32>
    %cst_118 = arith.constant dense<0.000000e+00> : vector<8xf32>
    %475 = vector.multi_reduction <add>, %472, %cst_118 [1] : vector<8x32xf32> to vector<8xf32>
    %476 = vector.shape_cast %475 : vector<8xf32> to vector<8x1xf32>
    %cst_119 = arith.constant 3.200000e+01 : f32
    %477 = vector.broadcast %cst_119 : f32 to vector<8x1xf32>
    %478 = arith.divf %476, %477 : vector<8x1xf32>
    %479 = vector.broadcast %478 : vector<8x1xf32> to vector<8x32xf32>
    %480 = arith.subf %472, %479 : vector<8x32xf32>
    %481 = arith.mulf %480, %480 : vector<8x32xf32>
    %cst_120 = arith.constant dense<0.000000e+00> : vector<8xf32>
    %482 = vector.multi_reduction <add>, %481, %cst_120 [1] : vector<8x32xf32> to vector<8xf32>
    %483 = vector.shape_cast %482 : vector<8xf32> to vector<8x1xf32>
    %cst_121 = arith.constant 3.200000e+01 : f32
    %484 = vector.broadcast %cst_121 : f32 to vector<8x1xf32>
    %485 = arith.divf %483, %484 : vector<8x1xf32>
    %486 = vector.broadcast %478 : vector<8x1xf32> to vector<8x32xf32>
    %487 = arith.subf %472, %486 : vector<8x32xf32>
    %cst_122 = arith.constant 9.99999974E-6 : f32
    %488 = vector.broadcast %cst_122 : f32 to vector<8x1xf32>
    %489 = arith.addf %485, %488 : vector<8x1xf32>
    %490 = math.rsqrt %489 : vector<8x1xf32>
    %491 = vector.broadcast %490 : vector<8x1xf32> to vector<8x32xf32>
    %492 = arith.mulf %487, %491 : vector<8x32xf32>
    %493 = vector.broadcast %473 : vector<1x32xf32> to vector<8x32xf32>
    %494 = arith.mulf %492, %493 : vector<8x32xf32>
    %495 = vector.broadcast %474 : vector<1x32xf32> to vector<8x32xf32>
    %496 = arith.addf %494, %495 : vector<8x32xf32>
    %c0_123 = arith.constant 0 : index
    %c0_124 = arith.constant 0 : index
    %c0_125 = arith.constant 0 : index
    %497 = vector.load %arg3[%c0_123, %c0_124, %c0_125] : memref<1x8x32xf32, #tpu.memory_space<vmem>>, vector<1x8x32xf32>
    %498 = vector.shape_cast %497 : vector<1x8x32xf32> to vector<8x32xf32>
    %499 = vector.shape_cast %496 : vector<8x32xf32> to vector<1x8x32xf32>
    tpu.vector_store %arg3[%c0_123, %c0_124, %c0_125], %499 {strides = array<i32>} : memref<1x8x32xf32, #tpu.memory_space<vmem>>, vector<1x8x32xf32>,
    return
  }
  func.func @transform_0(%arg0: i32) -> (i32, i32, i32) {
    %c0_i32 = arith.constant 0 : i32
    %c0_i32_0 = arith.constant 0 : i32
    %c0_i32_1 = arith.constant 0 : i32
    return %arg0, %c0_i32, %c0_i32_0 : i32, i32, i32
  }
  func.func @transform_1(%arg0: i32) -> (i32, i32) {
    %c0_i32 = arith.constant 0 : i32
    %c0_i32_0 = arith.constant 0 : i32
    %c0_i32_1 = arith.constant 0 : i32
    return %c0_i32, %c0_i32_0 : i32, i32
  }
  func.func @transform_2(%arg0: i32) -> (i32, i32, i32) {
    %c0_i32 = arith.constant 0 : i32
    %c0_i32_0 = arith.constant 0 : i32
    %c0_i32_1 = arith.constant 0 : i32
    return %arg0, %c0_i32, %c0_i32_0 : i32, i32, i32
  }
}

</mosaic_0001>

<bundles_post_ra>
// kernel: tpu_custom_call.1
= control target key start
LH: loop header
LB: loop body
LE: loop exit
PB: predicated region body
PF: predicated region fallthrough
CT: control target
= control target key end

     0   :  { %7 = vsyncpa [#allocation3], 0  ;;  %s7059_s0 = inlined_call_operand.hbm [shape: f32[2,8,32], index: 0, kind: input, shape index: {}]   ;;  %s7060_s1 = inlined_call_operand.hbm [shape: f32[608,128], index: 1, kind: input, shape index: {}]   ;;  %s7061_s2 = inlined_call_operand.hbm [shape: f32[2,8,32], index: 2, kind: output, shape index: {}]  }
   0x1   :  { %9 = vsyncpa [#allocation3 + $0x1], 0 }
   0x2   :  { %10 = vsyncpa [#allocation6], 0 }
   0x3   :  { %11 = vsyncpa [#allocation4], 0 }
   0x4   :  { %13 = vsyncpa [#allocation4 + $0x1], 0  ;;  %s6349_s9 = smov 0   ;;  %s6351_s10 = smov 0  }
   0x5   :  { %s6353_s11 = smov 0   ;;  %s6355_s12 = smov 0  }
   0x6 LB: > { %s6370_s13 = sadd.s32 4294967295, %s6315_s12   ;;  %s5381_s14 = sadd.s32 4294967294, %s6315_s12   ;;  %s6315_s12 = sphi %s6355_s12, %s7081_s12   ;;  %s6311_s11 = sphi %s6353_s11, %s7080_s11   ;;  %s6307_s10 = sphi %s6351_s10, %s7079_s10   ;;  %s6303_s9 = sphi %s6349_s9, %s7078_s9  }
   0x7   : > { %p39_p0 = scmp.ne.s32.totalorder %s6307_s10, %s6303_s9  ;;  %p7062_p1 = scmp.eq.s32.totalorder %s6370_s13, 0 }
   0x8   : > { %p90_p3 = scmp.eq.s32.totalorder %s5381_s14, 1  ;;  %p5382_p5 = scmp.ge.s32.totalorder %s6315_s12, 1 }
   0x9   : > { %p6379_p4 = por %p7062_p1, %p39_p0  ;;  %p97_p7 = scmp.lt.s32.totalorder %s6315_s12, 3 }
   0xa   : > { %p6384_p6 = por %p90_p3, %p39_p0  ;;  %s6317_s18 = smov [#allocation5]  }
   0xb   : > { %s7065_s15 = scalar_select %p6379_p4, 1, 0 }
   0xc   : > { %s7066_s16 = scalar_select %p6384_p6, 1, 0 }
   0xd   : > { %p6389_p8 = pnand %p5382_p5, %p97_p7  ;;  %s109_s19 = sshll.u32 %s6317_s18, 4  ;;  %s6393_s19 = int_to_ptr.vmem [resolvable:$true] %s109_s19 }
   0xe   : > { %s6405_s21 = sadd.s32 1, %s6315_s12   ;;  %s26_s22 = sadd.s32 1, %s6311_s11 }
   0xf   : > { %s7067_s17 = scalar_select %p6389_p8, 1, 0 }
  0x10   : > { %p6044_p9 = pneg %p6389_p8  ;;  %s23_s23 = ssub.s32 %s6315_s12, %s6405_s21 }
  0x11   : > { %s6187_s26 = scalar_lea.hbm %s7060_s1, 9728 }
  0x12   : > { %p6400_p11 = pnand %p6044_p9, %p7062_p1  ;;  %p6188_p12 = scmp.ne.s32.totalorder %s7060_s1, %s6187_s26 }
  0x13   : > { %p6194_p5 = scmp.lt.u32.totalorder %s6187_s26, %s7060_s1 }
  0x14   : > { %p6189_p13 = pneg %p6400_p11 }
  0x16   : > { %p6190_p0 = pnand %p6189_p13, %p6188_p12 }
  0x18   : > { %p6191_p3 = pneg %p6190_p0 }
  0x1a   : > { %p6196_p7 = pnand %p6194_p5, %p6191_p3 }
  0x1c   : > { %6199 = shalt.err (!%p6196_p7)
}
  0x1d   : > { %s6200_s3 = scalar_lea.vmem %s6393_s19, 9728  ;;  %p6208_p2 = scmp.lt.s32.totalorder %s6393_s19, %s6393_s19 }
  0x1e   : > { %p6201_p9 = scmp.ne.s32.totalorder %s6393_s19, %s6200_s3  ;;  %p6209_p6 = scmp.lt.s32.totalorder %s6200_s3, %s6200_s3 }
  0x20   : > { %p6203_p10 = pnand %p6201_p9, %p6189_p13  ;;  %p6210_p4 = por %p6209_p6, %p6208_p2 }
  0x22   : > { %p6204_p1 = pneg %p6203_p10 }
  0x24   : > { %p6211_p8 = pnand %p6210_p4, %p6204_p1 }
  0x26   : > { %6214 = shalt.err (!%p6211_p8)
}
  0x27   : > { %s6318_s4 = smov 128   ;;  %s6319_s5 = smov 8  }
  0x28   : > { %6047 = dma.hbm_to_vmem [thread:$0]  (!%p6400_p11), %s7060_s1, 9728, %s6393_s19, [#allocation6], %s6318_s4, %s6318_s4, %s6319_s5  }
  0x29   : > { %p24_p2 = scmp.eq.s32.totalorder %s23_s23, 0  ;;  %p33_p1 = scmp.ne.s32.totalorder %s6311_s11, %s6307_s10 }
  0x2a   : > { %p34_p4 = scmp.eq.s32.totalorder %s6315_s12, 0  ;;  %p6057_p6 = scmp.lt.s32.totalorder %s6315_s12, 2 }
  0x2b   : > { %s6436_s8 = scalar_select %p24_p2, %s6311_s11, %s26_s22  }
  0x2c   : > { %p35_p8 = por %p34_p4, %p33_p1  ;;  %p7069_p10 = scmp.eq.s32.totalorder %s6370_s13, 1 }
  0x2d   : > { %s123_s18 = sand.u32 1, %s6311_s11   ;;  %s5386_s24 = sshll.u32 %s6315_s12, 7 }
  0x2e   : > { %p6440_p12 = por %p7069_p10, %p33_p1  ;;  %s5385_s25 = sshll.u32 %s123_s18, 3 }
  0x2f   : > { %s6449_s27 = scalar_lea.hbm %s7059_s0, %s5386_s24  ;;  %s127_s19 = scalar_lea.vmem [#allocation2], %s5385_s25 }
  0x30   : > { %s134_s22 = sshll.u32 %s127_s19, 4  ;;  %p6451_p11 = pnand %p6057_p6, %p35_p8  ;;  %s6455_s22 = int_to_ptr.vmem [resolvable:$true] %s134_s22 }
  0x31   : > { %s124_s28 = scalar_lea.sflag [#allocation3], %s123_s18  ;;  %s6215_s29 = scalar_lea.hbm %s6449_s27, 128 }
  0x32   : > { %p6216_p13 = scmp.ne.s32.totalorder %s6449_s27, %s6215_s29  ;;  %p6217_p0 = pneg %p6451_p11 }
  0x33   : > { %s6220_s4 = scalar_lea.hbm %s7059_s0, 256  ;;  %p6221_p7 = scmp.lt.u32.totalorder %s6449_s27, %s7059_s0 }
  0x34   : > { %p6218_p3 = pnand %p6217_p0, %p6216_p13  ;;  %p6222_p9 = scmp.lt.u32.totalorder %s6220_s4, %s6215_s29 }
  0x35   : > { %p6224_p1 = scmp.lt.u32.totalorder %s6215_s29, %s6449_s27 }
  0x36   : > { %p6219_p5 = pneg %p6218_p3  ;;  %p6223_p2 = por %p6222_p9, %p6221_p7 }
  0x38   : > { %p6225_p4 = por %p6224_p1, %p6223_p2 }
  0x3a   : > { %p6226_p6 = pnand %p6225_p4, %p6219_p5 }
  0x3c   : > { %6229 = shalt.err (!%p6226_p6)
}
  0x3d   : > { %s6230_s7 = scalar_lea.vmem %s6455_s22, 128  ;;  %s6320_s18 = smov [#allocation2]  }
  0x3e   : > { %p6231_p8 = scmp.ne.s32.totalorder %s6455_s22, %s6230_s7  ;;  %s6235_s24 = sshll.u32 %s6320_s18, 4  ;;  %s6236_s24 = int_to_ptr.vmem [resolvable:$false] %s6235_s24 }
  0x3f   : > { %s6237_s25 = scalar_lea.vmem %s6236_s24, 256  ;;  %p6238_p3 = scmp.lt.s32.totalorder %s6455_s22, %s6236_s24 }
  0x40   : > { %p6233_p10 = pnand %p6231_p8, %p6217_p0  ;;  %p6239_p7 = scmp.lt.s32.totalorder %s6237_s25, %s6230_s7 }
  0x42   : > { %p6234_p13 = pneg %p6233_p10  ;;  %p6240_p9 = por %p6239_p7, %p6238_p3 }
  0x44   : > { %p6241_p2 = pnand %p6240_p9, %p6234_p13 }
  0x46   : > { %6244 = shalt.err (!%p6241_p2)
}
  0x47   : > { %6051 = dma.hbm_to_vmem [thread:$0]  (!%p6451_p11), %s6449_s27, 128, %s6455_s22, %s124_s28  }
  0x48   : > { %p7072_p5 = scmp.ne.s32.totalorder %s7067_s17, 0 }
  0x49   : > { %s6485_s20 = sand.u32 (!%p7072_p5), 1, %s6307_s10   ;;  %p7073_p0 = scmp.ne.s32.totalorder (!%p7072_p5), %s7065_s15, 0 }
  0x4a   : > { %143 = sbr.rel (%p7072_p5) target bundleno = 8107 (0x1fab), region = 28  ;;  %s5388_s26 = sshll.u32 (!%p7072_p5), %s6485_s20, 3 }
  0x4b   : > { %s146_s19 = scalar_lea.sflag (!%p7072_p5), [#allocation3], %s6485_s20  ;;  %s149_s29 = scalar_lea.vmem (!%p7072_p5), [#allocation2], %s5388_s26 }
  0x51   : > { %6290 = dma.done.wait (%p7073_p0), %s146_s19, 128  }
  0x52   : > { %6292 = vsyncadd (%p7073_p0), %s146_s19, 4294967168  ;;  %p7074_p11 = scmp.eq.s32.totalorder %s6370_s13, 0 }
  0x54   : > { %6294 = dma.done.wait (%p7074_p11), [#allocation6], 9728   ;;  %p7075_p1 = pmov %p7074_p11 }
  0x55   : > { %v6321_v0 = vmov 0.0   ;;  %vm6322_vm0 = vmmov 0   ;;  %vm175_vm1 = vcmask 261120   ;;  %v6505_v1 = vld [vmem:[%s149_s29] sm:$0xff]  ;;  %v254_v2 = vld [vmem:[#allocation5] sm:$0xff]  ;;  %v255_v3 = vld [vmem:[#allocation5 + $0x8] sm:$0xff]  ;;  %v682_v19 = vlaneseq }
  0x56   : > { %6296 = vsyncadd (%p7075_p1), [#allocation6], 4294957568  ;;  %5627 = vmatprep.subr.mxu1 %v6321_v0  ;;  %5629 = vmatprep.mubr.msk.f32.mxu1 %vm6322_vm0, %v6321_v0  ;;  %v5977_v4 = vpack.c.bf16 %v255_v3, %v254_v2  ;;  %v6323_v5 = vmov 0.0|0.0   ;;  %v256_v6 = vld [vmem:[#allocation5 + $0x10] sm:$0xff]  ;;  %v257_v7 = vld [vmem:[#allocation5 + $0x18] sm:$0xff]  ;;  %v6324_v8 = vmov 1.0  }
  0x57   : > { %5643 = vmatprep.subr.mxu0 %v6321_v0  ;;  %5645 = vmatprep.mubr.msk.f32.mxu0 %vm6322_vm0, %v6321_v0  ;;  %v5980_v9 = vpack.c.bf16 %v257_v7, %v256_v6  ;;  %v5393_v12 = vld [vmem:[#allocation5 + $0x20] ss:$0 sm:$0xff]  ;;  %s6325_s15 = smov 112   ;;  %s6326_s17 = smov 96   ;;  %vm375_vm2 = vcmask 64512   ;;  %v6541_v20 = vshrl.u32 %v682_v19, 7 }
  0x58   : > { %5628 = vmatpush3.xpose.msk.msra.mxu1 %vm175_vm1, %v6505_v1  ;;  %s6327_s27 = smov 104   ;;  %s6328_s22 = smov 120   ;;  %vm2674_vm4 = vcmask 523264  }
  0x59   : > { %5976 = vmatprep.subr.bf16.mxu1 %v6323_v5  ;;  %v6544_v21 = vsub.s32 0, %v6541_v20  ;;  %s6329_s23 = smov 64   ;;  %s6330_s28 = smov 80  }
  0x5a   : > { %s6331_s30 = smov 88   ;;  %s6332_s3 = smov 72  }
  0x5b   : > { %5630 = vmatmul.mubr.msk.f32.vlgmr.msra.gmra.mrb[0].mxu1 %vm175_vm1, %v6324_v8  ;;  %s5478_s4 = sshll.u32 %s6370_s13, 7  ;;  %s173_s5 = scalar_lea.vmem [#allocation7], %s5388_s26 }
  0x5c   : > { %5978 = vmatpush3.bf16.msra.mxu1 %v5977_v4  ;;  %5640 = vmatprep.mubr.msk.f32.mxu1 %vm6322_vm0, %v6321_v0  ;;  %v259_v4 = vld [vmem:[#allocation5 + $0x28] sm:$0xff]  ;;  %s5301_s6 = sshll.u32 %s173_s5, 4  ;;  %s7014_s24 = scalar_lea.hbm %s7061_s2, %s5478_s4  ;;  %s7016_s6 = int_to_ptr.vmem [resolvable:$true] %s5301_s6 }
  0x5d   : > { %5979 = vmatprep.subr.bf16.mxu1 %v6323_v5  ;;  %s5288_s25 = scalar_lea.sflag [#allocation4], %s6485_s20  ;;  %s6245_s19 = scalar_lea.vmem %s7016_s6, 128 }
  0x5e   : > { %p6246_p4 = scmp.ne.s32.totalorder %s7016_s6, %s6245_s19  ;;  %s6333_s13 = smov [#allocation7]  }
  0x5f   : > { %s6249_s26 = sshll.u32 %s6333_s13, 4  ;;  %s6250_s26 = int_to_ptr.vmem [resolvable:$false] %s6249_s26 }
  0x60   : > { %5981 = vmatpush3.bf16.msra.mxu1 %v5980_v9  ;;  %p6247_p6 = pnand %p6246_p4, %p6440_p12  ;;  %s6251_s29 = scalar_lea.vmem %s6250_s26, 256 }
  0x61   : > { %5653 = vmatprep.subr.mxu1 %v6321_v0  ;;  %p6252_p10 = scmp.lt.s32.totalorder %s7016_s6, %s6250_s26  ;;  %p6253_p13 = scmp.lt.s32.totalorder %s6251_s29, %s6245_s19 }
  0x62   : > { %p6248_p8 = pneg %p6247_p6 }
  0x63   : > { %5641 = vmatmul.mubr.msk.f32.vlgmr.msra.gmra.mrb[2].mxu1 %vm175_vm1, %v6505_v1  ;;  %p6254_p3 = por %p6253_p13, %p6252_p10 }
  0x64   : > { %5655 = vmatprep.mubr.msk.f32.mxu1 %vm6322_vm0, %v6321_v0 }
  0x65   : > { %p6255_p7 = pnand %p6254_p3, %p6248_p8 }
 0x12e   : > { %v248_v10 = vpop.f32.mrb[0].mxu1 }
 0x12f   : > { %v5631_v11 = vpop.f32.mrb[1].mxu1  ;;  %vm252_vm3 = vcmp.eq.f32.partialorder %v248_v10, 0.0 }
 0x130   : > { %v253_v22 = vsel %vm252_vm3, -1e+30, %v6321_v0 }
 0x131   : > { %v6548_v24 = vrot.slane %v253_v22, %v6544_v21  ;;  %v267_v22 = vld [vmem:[#allocation5 + $0x68] sm:$0xff] }
 0x136   : > { %v362_v13 = vpop.f32.mrb[2].mxu1 }
 0x137   : > { %v6519_v14 = vadd.f32 %v5393_v12, %v362_v13  ;;  %v5642_v15 = vpop.f32.mrb[3].mxu1  ;;  %v261_v12 = vld [vmem:[#allocation5 + $0x38] sm:$0xff] }
 0x138   : > { %v265_v15 = vld [vmem:[#allocation5 + $0x58] sm:$0xff] }
 0x139   : > { %369 = vrot.lane.b32.xlu0 %v6519_v14, %s6325_s15 }
 0x13d   : > { %373 = vrot.lane.b32.xlu0 %v6519_v14, %s6326_s17 }
 0x141   : > { %371 = vrot.lane.b32.xlu0 %v6519_v14, %s6327_s27 }
 0x1ab   : > { %v370_v16 = vpop.permute.xlu0 %369 }
 0x1ac   : > { %526 = vrot.lane.b32.xlu1 %v370_v16, %s6326_s17 }
 0x1af   : > { %v374_v17 = vpop.permute.xlu0 %373 }
 0x1b0   : > { %367 = vrot.lane.b32.xlu1 %v6519_v14, %s6328_s22  ;;  %5644 = vmatpush3.xpose.msk.msra.mxu0 %vm375_vm2, %v374_v17 }
 0x1b1   : > { %5648 = vmatprep.subr.mxu0 %v6321_v0 }
 0x1b3   : > { %5646 = vmatmul.mubr.msk.f32.vlgmr.msra.gmra.mrb[0].mxu0 %vm375_vm2, %v6519_v14  ;;  %v6552_v29 = vpop.permute.xlu0 %371 }
 0x1b4   : > { %5650 = vmatprep.mubr.msk.f32.mxu0 %vm6322_vm0, %v6321_v0 }
 0x21e   : > { %v527_v18 = vpop.permute.xlu1 %526 }
 0x21f   : > { %5654 = vmatpush3.xpose.msk.msra.mxu1 %vm375_vm2, %v527_v18 }
 0x220   : > { %5663 = vmatprep.subr.mxu1 %v6321_v0 }
 0x222   : > { %5656 = vmatmul.mubr.msk.f32.vlgmr.msra.gmra.mrb[4].mxu1 %vm375_vm2, %v370_v16  ;;  %v6558_v35 = vpop.permute.xlu1 %367 }
 0x223   : > { %5665 = vmatprep.mubr.msk.f32.mxu1 %vm6322_vm0, %v6321_v0 }
 0x286   : > { %v446_v23 = vpop.f32.mrb[0].mxu0 }
 0x287   : > { %v678_v25 = vmul.f32 0.35355338, %v446_v23  ;;  %v5647_v26 = vpop.f32.mrb[1].mxu0  ;;  %v268_v23 = vld [vmem:[#allocation5 + $0x70] sm:$0xff] }
 0x289   : > { %v686_v27 = vadd.f32 %v6548_v24, %v678_v25 }
 0x28b   : > { %v690_v28 = vsel %vm375_vm2, %v686_v27, -inf }
 0x28c   : > { %691 = vmax.xlane.f32.xlu1 %v690_v28  ;;  %v5986_v28 = vpack.c.bf16 %v268_v23, %v267_v22 }
 0x29d   : > { %602 = vrot.lane.b32.xlu1 %v6552_v29, %s6326_s17 }
 0x2f5   : > { %v598_v30 = vpop.f32.mrb[4].mxu1 }
 0x2f6   : > { %v680_v31 = vmul.f32 0.35355338, %v598_v30  ;;  %v5657_v32 = vpop.f32.mrb[5].mxu1 }
 0x2f8   : > { %v688_v33 = vadd.f32 %v6548_v24, %v680_v31 }
 0x2fa   : > { %v696_v34 = vsel %vm375_vm2, %v688_v33, -inf }
 0x2fb   : > { %697 = vmax.xlane.f32.xlu0 %v696_v34 }
 0x311   : > { %450 = vrot.lane.b32.xlu0 %v6558_v35, %s6326_s17 }
 0x319   : > { %v692_v36 = vpop.xlane.xlu1 %691 }
 0x31a   : > { %v702_v37 = vsub.f32 %v686_v27, %v692_v36 }
 0x31c   : > { %v706_v38 = vmul.f32 1.442695, %v702_v37 }
 0x31d   : > { %v603_v45 = vpop.permute.xlu1 %602 }
 0x31e   : > { %6107 = vpow2.f32 %v706_v38 }
 0x328   : > { %v6108_v39 = vpop.eup %6107 }
 0x329   : > { %v714_v40 = vsel %vm375_vm2, %v6108_v39, 0.0 }
 0x32a   : > { %715 = vadd.xlane.f32.xlu1 %v714_v40 }
 0x33b   : > { %886 = vrot.lane.b32.xlu1 %v370_v16, %s6329_s23  ;;  %v266_v16 = vld [vmem:[#allocation5 + $0x60] sm:$0xff] }
 0x33c   : > { %v5983_v18 = vpack.c.bf16 %v266_v16, %v265_v15 }
 0x388   : > { %v698_v41 = vpop.xlane.xlu0 %697 }
 0x389   : > { %v704_v42 = vsub.f32 %v688_v33, %v698_v41 }
 0x38b   : > { %v710_v43 = vmul.f32 1.442695, %v704_v42  ;;  %v5412_v42 = vld [vmem:[#allocation5 + $0x78] ss:$0 sm:$0xff] }
 0x38c   : > { %v451_v44 = vpop.permute.xlu0 %450 }
 0x38d   : > { %6109 = vpow2.f32 %v710_v43  ;;  %5649 = vmatpush3.xpose.msk.msra.mxu0 %vm375_vm2, %v451_v44 }
 0x38e   : > { %5658 = vmatprep.subr.mxu0 %v6321_v0 }
 0x390   : > { %5651 = vmatmul.mubr.msk.f32.vlgmr.msra.gmra.mrb[2].mxu0 %vm375_vm2, %v6558_v35 }
 0x391   : > { %5659 = vmatpush3.xpose.msk.msra.mxu0 %vm375_vm2, %v603_v45  ;;  %5660 = vmatprep.mubr.msk.f32.mxu0 %vm6322_vm0, %v6321_v0 }
 0x392   : > { %5668 = vmatprep.subr.mxu0 %v6321_v0 }
 0x394   : > { %5661 = vmatmul.mubr.msk.f32.vlgmr.msra.gmra.mrb[4].mxu0 %vm375_vm2, %v6552_v29 }
 0x395   : > { %5670 = vmatprep.mubr.msk.f32.mxu0 %vm6322_vm0, %v6321_v0 }
 0x397   : > { %v6110_v46 = vpop.eup %6109 }
 0x398   : > { %v720_v47 = vsel %vm375_vm2, %v6110_v46, 0.0 }
 0x399   : > { %721 = vadd.xlane.f32.xlu0 %v720_v47 }
 0x3af   : > { %734 = vrot.lane.b32.xlu0 %v6519_v14, %s6329_s23 }
 0x3b7   : > { %v716_v48 = vpop.xlane.xlu1 %715 }
 0x3b8   : > { %6111 = vrcp.f32 %v716_v48 }
 0x3bb   : > { %v887_v53 = vpop.permute.xlu1 %886 }
 0x3c2   : > { %v6112_v50 = vpop.eup %6111 }
 0x3c3   : > { %v730_v51 = vmul.f32 %v6112_v50, %v6108_v39 }
 0x426   : > { %v722_v49 = vpop.xlane.xlu0 %721 }
 0x427   : > { %6113 = vrcp.f32 %v722_v49 }
 0x42a   : > { %v735_v52 = vpop.permute.xlu0 %734 }
 0x42b   : > { %5664 = vmatpush3.msra.mxu1 %v735_v52  ;;  %v262_v52 = vld [vmem:[#allocation5 + $0x40] sm:$0xff] }
 0x42c   : > { %5666 = vmatmul.mubr.msk.f32.vlgmr.msra.gmra.mrb[6].mxu1 %vm375_vm2, %v730_v51  ;;  %5673 = vmatprep.subr.mxu1 %v6321_v0 }
 0x42d   : > { %5674 = vmatpush3.msra.mxu1 %v887_v53  ;;  %5675 = vmatprep.mubr.msk.f32.mxu1 %vm6322_vm0, %v6321_v0 }
 0x42e   : > { %5683 = vmatprep.subr.mxu1 %v6321_v0 }
 0x431   : > { %v6114_v54 = vpop.eup %6113 }
 0x432   : > { %v732_v55 = vmul.f32 %v6114_v54, %v6110_v46  ;;  %v260_v46 = vld [vmem:[#allocation5 + $0x30] sm:$0xff] }
 0x434   : > { %5676 = vmatmul.mubr.msk.f32.vlgmr.msra.gmra.mrb[8].mxu1 %vm375_vm2, %v732_v55 }
 0x435   : > { %5685 = vmatprep.mubr.msk.f32.mxu1 %vm6322_vm0, %v6321_v0  ;;  %5684 = vmatpush3.msra.mxu1 %v259_v4 }
 0x436   : > { %5693 = vmatprep.subr.mxu1 %v6321_v0 }
 0x463   : > { %v522_v56 = vpop.f32.mrb[2].mxu0 }
 0x464   : > { %v679_v57 = vmul.f32 0.35355338, %v522_v56  ;;  %v5652_v58 = vpop.f32.mrb[3].mxu0 }
 0x466   : > { %v687_v59 = vadd.f32 %v6548_v24, %v679_v57 }
 0x467   : > { %v674_v60 = vpop.f32.mrb[4].mxu0 }
 0x468   : > { %v681_v61 = vmul.f32 0.35355338, %v674_v60  ;;  %v5662_v62 = vpop.f32.mrb[5].mxu0  ;;  %v693_v63 = vsel %vm375_vm2, %v687_v59, -inf }
 0x469   : > { %694 = vmax.xlane.f32.xlu1 %v693_v63 }
 0x46a   : > { %v689_v2 = vadd.f32 %v6548_v24, %v681_v61 }
 0x46c   : > { %v699_v3 = vsel %vm375_vm2, %v689_v2, -inf }
 0x46d   : > { %700 = vmax.xlane.f32.xlu0 %v699_v3 }
 0x4f6   : > { %v695_v6 = vpop.xlane.xlu1 %694 }
 0x4f7   : > { %v703_v7 = vsub.f32 %v687_v59, %v695_v6 }
 0x4f9   : > { %v708_v8 = vmul.f32 1.442695, %v703_v7 }
 0x4fa   : > { %v701_v9 = vpop.xlane.xlu0 %700 }
 0x4fb   : > { %6115 = vpow2.f32 %v708_v8  ;;  %v705_v10 = vsub.f32 %v689_v2, %v701_v9 }
 0x4fd   : > { %v712_v11 = vmul.f32 1.442695, %v705_v10 }
 0x4ff   : > { %6117 = vpow2.f32 %v712_v11  ;;  %v806_v13 = vpop.f32.mrb[6].mxu1 }
 0x500   : > { %v5667_v14 = vpop.f32.mrb[7].mxu1  ;;  %5686 = vmatmul.mubr.msk.f32.vlgmr.msra.gmra.mrb[10].mxu1 %vm375_vm2, %v806_v13 }
 0x501   : > { %5694 = vmatpush3.msra.mxu1 %v261_v12  ;;  %5695 = vmatprep.mubr.msk.f32.mxu1 %vm6322_vm0, %v6321_v0 }
 0x502   : > { %5982 = vmatprep.subr.bf16.mxu1 %v6323_v5 }
 0x505   : > { %v6116_v17 = vpop.eup %6115 }
 0x506   : > { %v717_v19 = vsel %vm375_vm2, %v6116_v17, 0.0 }
 0x507   : > { %718 = vadd.xlane.f32.xlu0 %v717_v19  ;;  %v958_v25 = vpop.f32.mrb[8].mxu1 }
 0x508   : > { %v5677_v26 = vpop.f32.mrb[9].mxu1  ;;  %5696 = vmatmul.mubr.msk.f32.vlgmr.msra.gmra.mrb[12].mxu1 %vm375_vm2, %v958_v25 }
 0x509   : > { %v6118_v27 = vpop.eup %6117  ;;  %5984 = vmatpush3.bf16.msra.mxu1 %v5983_v18  ;;  %5711 = vmatprep.mubr.msk.f32.mxu1 %vm6322_vm0, %v6321_v0 }
 0x50a   : > { %v723_v30 = vsel %vm375_vm2, %v6118_v27, 0.0  ;;  %5985 = vmatprep.subr.bf16.mxu1 %v6323_v5 }
 0x50b   : > { %724 = vadd.xlane.f32.xlu1 %v723_v30 }
 0x50d   : > { %5987 = vmatpush3.bf16.msra.mxu1 %v5986_v28 }
 0x50e   : > { %5724 = vmatprep.subr.mxu1 %v6321_v0 }
 0x510   : > { %5712 = vmatmul.mubr.msk.f32.vlgmr.msra.gmra.mrb[14].mxu1 %vm175_vm1, %v6505_v1 }
 0x511   : > { %5726 = vmatprep.mubr.msk.f32.mxu1 %vm6322_vm0, %v6321_v0 }
 0x51c   : > { %962 = vrot.lane.b32.xlu1 %v6552_v29, %s6329_s23 }
 0x51d   : > { %810 = vrot.lane.b32.xlu0 %v6558_v35, %s6329_s23 }
 0x594   : > { %v719_v31 = vpop.xlane.xlu0 %718 }
 0x595   : > { %6119 = vrcp.f32 %v719_v31 }
 0x598   : > { %v725_v32 = vpop.xlane.xlu1 %724  ;;  %v811_v33 = vpop.permute.xlu0 %810 }
 0x599   : > { %6121 = vrcp.f32 %v725_v32  ;;  %5669 = vmatpush3.msra.mxu0 %v811_v33 }
 0x59a   : > { %5678 = vmatprep.subr.mxu0 %v6321_v0 }
 0x59c   : > { %v963_v37 = vpop.permute.xlu1 %962 }
 0x59f   : > { %v6120_v34 = vpop.eup %6119 }
 0x5a0   : > { %v731_v36 = vmul.f32 %v6120_v34, %v6116_v17 }
 0x5a2   : > { %5671 = vmatmul.mubr.msk.f32.vlgmr.msra.gmra.mrb[6].mxu0 %vm375_vm2, %v731_v36 }
 0x5a3   : > { %v6122_v38 = vpop.eup %6121  ;;  %5679 = vmatpush3.msra.mxu0 %v963_v37  ;;  %5680 = vmatprep.mubr.msk.f32.mxu0 %vm6322_vm0, %v6321_v0 }
 0x5a4   : > { %v733_v29 = vmul.f32 %v6122_v38, %v6118_v27  ;;  %5688 = vmatprep.subr.mxu0 %v6321_v0 }
 0x5a6   : > { %5681 = vmatmul.mubr.msk.f32.vlgmr.msra.gmra.mrb[8].mxu0 %vm375_vm2, %v733_v29 }
 0x5a7   : > { %5690 = vmatprep.mubr.msk.f32.mxu0 %vm6322_vm0, %v6321_v0  ;;  %5689 = vmatpush3.msra.mxu0 %v260_v46 }
 0x5a8   : > { %5698 = vmatprep.subr.mxu0 %v6321_v0 }
 0x5d3   : > { %v6619_v35 = vpop.f32.mrb[10].mxu1 }
 0x5d4   : > { %v5687_v39 = vpop.f32.mrb[11].mxu1  ;;  %v1330_v2 = vsel %vm175_vm1, %v6619_v35, 0.0 }
 0x5db   : > { %v6621_v40 = vpop.f32.mrb[12].mxu1 }
 0x5dc   : > { %v5697_v41 = vpop.f32.mrb[13].mxu1  ;;  %v1333_v7 = vsel %vm175_vm1, %v6621_v40, 0.0 }
 0x5e3   : > { %v1437_v43 = vpop.f32.mrb[14].mxu1 }
 0x5e4   : > { %v6623_v44 = vadd.f32 %v5412_v42, %v1437_v43  ;;  %v5713_v45 = vpop.f32.mrb[15].mxu1 }
 0x5e6   : > { %1444 = vrot.lane.b32.xlu0 %v6623_v44, %s6325_s15  ;;  %1442 = vrot.lane.b32.xlu1 %v6623_v44, %s6328_s22 }
 0x5ea   : > { %1480 = vrot.lane.b32.xlu0 %v6623_v44, %s6326_s17  ;;  %1446 = vrot.lane.b32.xlu1 %v6623_v44, %s6327_s27 }
 0x5ee   : > { %1698 = vrot.lane.b32.xlu0 %v6623_v44, %s6330_s28  ;;  %1589 = vrot.lane.b32.xlu1 %v6623_v44, %s6331_s30 }
 0x5f2   : > { %1807 = vrot.lane.b32.xlu1 %v6623_v44, %s6332_s3 }
 0x60c   : > { %1448 = vxpose.xlu0.b32.start.end [1/1] (short) (narrow) %v6623_v44, 8 }
 0x658   : > { %v6641_v47 = vpop.permute.xlu0 %1444  ;;  %v6643_v48 = vpop.permute.xlu1 %1442 }
 0x659   : > { %1666 = vxpose.xlu0.b32.start.end [1/1] (short) (narrow) %v6641_v47, 8  ;;  %1557 = vxpose.xlu1.b32.start.end [1/1] (short) (narrow) %v6643_v48, 8 }
 0x65c   : > { %v1481_v49 = vpop.permute.xlu0 %1480  ;;  %v6647_v50 = vpop.permute.xlu1 %1446 }
 0x65d   : > { %1775 = vxpose.xlu0.b32.start.end [1/1] (short) (narrow) %v6647_v50, 8 }
 0x660   : > { %v1699_v51 = vpop.permute.xlu0 %1698  ;;  %v1590_v58 = vpop.permute.xlu1 %1589 }
 0x661   : > { %5725 = vmatpush3.msra.mxu1 %v1699_v51 }
 0x662   : > { %5734 = vmatprep.subr.mxu1 %v6321_v0 }
 0x664   : > { %v1808_v59 = vpop.permute.xlu1 %1807 }
 0x675   : > { %v882_v53 = vpop.f32.mrb[6].mxu0 }
 0x676   : > { %v5672_v54 = vpop.f32.mrb[7].mxu0  ;;  %5691 = vmatmul.mubr.msk.f32.vlgmr.msra.gmra.mrb[10].mxu0 %vm375_vm2, %v882_v53 }
 0x677   : > { %5699 = vmatpush3.msra.mxu0 %v262_v52  ;;  %5700 = vmatprep.mubr.msk.f32.mxu0 %vm6322_vm0, %v6321_v0 }
 0x678   : > { %5714 = vmatprep.subr.mxu0 %v6321_v0 }
 0x679   : > { %v1034_v55 = vpop.f32.mrb[8].mxu0 }
 0x67a   : > { %v5682_v56 = vpop.f32.mrb[9].mxu0  ;;  %5701 = vmatmul.mubr.msk.f32.vlgmr.msra.gmra.mrb[12].mxu0 %vm375_vm2, %v1034_v55  ;;  %v5411_v55 = vld [vmem:[#allocation5 + $0x48] ss:$0 sm:$0xff] }
 0x67b   : > { %5715 = vmatpush3.msra.mxu0 %v1481_v49  ;;  %5716 = vmatprep.mubr.msk.f32.mxu0 %vm6322_vm0, %v6321_v0 }
 0x67c   : > { %5719 = vmatprep.subr.mxu0 %v6321_v0 }
 0x68c   : > { %v1464_v57 = vpop.trf.xlu0 }
 0x68d   : > { %5717 = vmatmul.mubr.msk.f32.vlgmr.msra.gmra.mrb[14].mxu0 %vm375_vm2, %v1464_v57 }
 0x68e   : > { %5720 = vmatpush3.msra.mxu0 %v1590_v58  ;;  %5721 = vmatprep.mubr.msk.f32.mxu0 %vm6322_vm0, %v6321_v0 }
 0x68f   : > { %5729 = vmatprep.subr.mxu0 %v6321_v0 }
 0x6d9   : > { %v1682_v60 = vpop.trf.xlu0  ;;  %v1573_v61 = vpop.trf.xlu1 }
 0x6da   : > { %5722 = vmatmul.mubr.msk.f32.vlgmr.msra.gmra.mrb[16].mxu0 %vm375_vm2, %v1573_v61  ;;  %5727 = vmatmul.mubr.msk.f32.vlgmr.msra.gmra.mrb[16].mxu1 %vm375_vm2, %v1682_v60 }
 0x6db   : > { %5730 = vmatpush3.msra.mxu0 %v1808_v59  ;;  %5731 = vmatprep.mubr.msk.f32.mxu0 %vm6322_vm0, %v6321_v0 }
 0x6dc   : > { %5736 = vmatprep.mubr.msk.f32.mxu1 %vm6322_vm0, %v6321_v0  ;;  %5739 = vmatprep.subr.mxu0 %v6321_v0 }
 0x6dd   : > { %v1791_v62 = vpop.trf.xlu0 }
 0x6de   : > { %5732 = vmatmul.mubr.msk.f32.vlgmr.msra.gmra.mrb[18].mxu0 %vm375_vm2, %v1791_v62 }
 0x6df   : > { %5741 = vmatprep.mubr.msk.f32.mxu0 %vm6322_vm0, %v6321_v0 }
 0x749   : > { %v1180_v63 = vpop.f32.mrb[10].mxu0 }
 0x74a   : > { %v1331_v3 = vsel %vm175_vm1, %v1180_v63, 0.0  ;;  %v5692_v4 = vpop.f32.mrb[11].mxu0 }
 0x74b   : > { %v1332_v6 = vadd.f32 %v1331_v3, %v1330_v2 }
 0x74d   : > { %v1326_v8 = vpop.f32.mrb[12].mxu0  ;;  %v1334_v9 = vadd.f32 %v1333_v7, %v1332_v6 }
 0x74e   : > { %v1335_v10 = vsel %vm175_vm1, %v1326_v8, 0.0  ;;  %v5702_v11 = vpop.f32.mrb[13].mxu0 }
 0x74f   : > { %v1336_v12 = vadd.f32 %v1335_v10, %v1334_v9  ;;  %v270_v11 = vld [vmem:[#allocation5 + $0x80] sm:$0xff] }
 0x751   : > { %v1341_v56 = vadd.f32 %v5411_v55, %v1336_v12 }
 0x753   : > { %v1342_v57 = vadd.f32 %v1341_v56, %v6505_v1 }
 0x755   : > { %v1343_v58 = vsel %vm175_vm1, %v1342_v57, 0.0 }
 0x760   : > { %v1552_v13 = vpop.f32.mrb[14].mxu0 }
 0x761   : > { %v1883_v14 = vmul.f32 0.35355338, %v1552_v13  ;;  %v5718_v15 = vpop.f32.mrb[15].mxu0 }
 0x763   : > { %v1887_v16 = vsel %vm375_vm2, %v1883_v14, -inf }
 0x764   : > { %1888 = vmax.xlane.f32.xlu0 %v1887_v16 }
 0x7ad   : > { %v1661_v17 = vpop.f32.mrb[16].mxu0  ;;  %v1770_v18 = vpop.f32.mrb[16].mxu1 }
 0x7ae   : > { %v1884_v19 = vmul.f32 0.35355338, %v1661_v17  ;;  %v5723_v22 = vpop.f32.mrb[17].mxu0  ;;  %v5728_v23 = vpop.f32.mrb[17].mxu1  ;;  %v1885_v25 = vmul.f32 0.35355338, %v1770_v18 }
 0x7af   : > { %v271_v17 = vld [vmem:[#allocation5 + $0x88] sm:$0xff]  ;;  %v272_v18 = vld [vmem:[#allocation5 + $0x90] sm:$0xff]  ;;  %v273_v23 = vld [vmem:[#allocation5 + $0x98] sm:$0xff] }
 0x7b0   : > { %v1890_v26 = vsel %vm375_vm2, %v1884_v19, -inf  ;;  %v1893_v32 = vsel %vm375_vm2, %v1885_v25, -inf }
 0x7b1   : > { %1891 = vmax.xlane.f32.xlu1 %v1890_v26  ;;  %v1879_v27 = vpop.f32.mrb[18].mxu0 }
 0x7b2   : > { %v1886_v28 = vmul.f32 0.35355338, %v1879_v27  ;;  %v5733_v30 = vpop.f32.mrb[19].mxu0 }
 0x7b4   : > { %v1896_v31 = vsel %vm375_vm2, %v1886_v28, -inf }
 0x7b5   : > { %1897 = vmax.xlane.f32.xlu0 %v1896_v31  ;;  %1894 = vmax.xlane.f32.xlu1 %v1893_v32 }
 0x7c6   : > { %1931 = vrot.lane.b32.xlu1 %v6623_v44, %s6329_s23 }
 0x7f1   : > { %v1889_v33 = vpop.xlane.xlu0 %1888 }
 0x7f2   : > { %v1899_v34 = vsub.f32 %v1883_v14, %v1889_v33 }
 0x7f4   : > { %v1903_v36 = vmul.f32 1.442695, %v1899_v34 }
 0x7f6   : > { %6123 = vpow2.f32 %v1903_v36 }
 0x800   : > { %v6124_v37 = vpop.eup %6123 }
 0x801   : > { %v1911_v38 = vsel %vm375_vm2, %v6124_v37, 0.0 }
 0x802   : > { %1912 = vadd.xlane.f32.xlu1 %v1911_v38 }
 0x83e   : > { %v1892_v29 = vpop.xlane.xlu1 %1891 }
 0x83f   : > { %v1900_v35 = vsub.f32 %v1884_v19, %v1892_v29 }
 0x841   : > { %v1905_v39 = vmul.f32 1.442695, %v1900_v35 }
 0x842   : > { %v1898_v40 = vpop.xlane.xlu0 %1897  ;;  %v1895_v41 = vpop.xlane.xlu1 %1894 }
 0x843   : > { %6125 = vpow2.f32 %v1905_v39  ;;  %v1902_v42 = vsub.f32 %v1886_v28, %v1898_v40  ;;  %v1901_v43 = vsub.f32 %v1885_v25, %v1895_v41 }
 0x845   : > { %v1909_v45 = vmul.f32 1.442695, %v1902_v42  ;;  %v1907_v46 = vmul.f32 1.442695, %v1901_v43 }
 0x846   : > { %v1932_v59 = vpop.permute.xlu1 %1931 }
 0x847   : > { %6127 = vpow2.f32 %v1909_v45  ;;  %v5430_v45 = vld [vmem:[#allocation5 + $0xa0] ss:$0 sm:$0xff] }
 0x848   : > { %6129 = vpow2.f32 %v1907_v46 }
 0x84d   : > { %v6126_v44 = vpop.eup %6125 }
 0x84e   : > { %v1914_v49 = vsel %vm375_vm2, %v6126_v44, 0.0 }
 0x84f   : > { %1915 = vadd.xlane.f32.xlu0 %v1914_v49 }
 0x851   : > { %v6128_v51 = vpop.eup %6127 }
 0x852   : > { %v6130_v52 = vpop.eup %6129  ;;  %v1920_v53 = vsel %vm375_vm2, %v6128_v51, 0.0 }
 0x853   : > { %1921 = vadd.xlane.f32.xlu0 %v1920_v53  ;;  %v1917_v54 = vsel %vm375_vm2, %v6130_v52, 0.0 }
 0x854   : > { %1918 = vadd.xlane.f32.xlu1 %v1917_v54 }
 0x865   : > { %2085 = vrot.lane.b32.xlu1 %v6641_v47, %s6329_s23 }
 0x869   : > { %2162 = vrot.lane.b32.xlu1 %v6647_v50, %s6329_s23  ;;  %2008 = vrot.lane.b32.xlu0 %v6643_v48, %s6329_s23 }
 0x888   : > { %1344 = vadd.xlane.f32.xlu0 %v1343_v58 }
 0x88f   : > { %v1913_v60 = vpop.xlane.xlu1 %1912 }
 0x890   : > { %6131 = vrcp.f32 %v1913_v60 }
 0x89a   : > { %v6132_v61 = vpop.eup %6131 }
 0x89b   : > { %v1927_v62 = vmul.f32 %v6132_v61, %v6124_v37 }
 0x89d   : > { %5735 = vmatpush3.xpose.msk.msra.mxu1 %vm375_vm2, %v1927_v62 }
 0x89e   : > { %5744 = vmatprep.subr.mxu1 %v6321_v0 }
 0x8a0   : > { %5737 = vmatmul.mubr.msk.f32.vlgmr.msra.gmra.mrb[18].mxu1 %vm375_vm2, %v1932_v59 }
 0x8a1   : > { %5746 = vmatprep.mubr.msk.f32.mxu1 %vm6322_vm0, %v6321_v0 }
 0x8dc   : > { %v1916_v47 = vpop.xlane.xlu0 %1915 }
 0x8dd   : > { %6133 = vrcp.f32 %v1916_v47 }
 0x8e0   : > { %v1922_v48 = vpop.xlane.xlu0 %1921 }
 0x8e1   : > { %6135 = vrcp.f32 %v1922_v48  ;;  %v1919_v50 = vpop.xlane.xlu1 %1918 }
 0x8e2   : > { %6137 = vrcp.f32 %v1919_v50  ;;  %v264_v50 = vld [vmem:[#allocation5 + $0x50] sm:$0x3] }
 0x8e4   : > { %v2009_v8 = vpop.permute.xlu0 %2008 }
 0x8e5   : > { %v2086_v3 = vpop.permute.xlu1 %2085 }
 0x8e7   : > { %v6134_v63 = vpop.eup %6133 }
 0x8e8   : > { %v1928_v2 = vmul.f32 %v6134_v63, %v6126_v44 }
 0x8e9   : > { %v2163_v10 = vpop.permute.xlu1 %2162 }
 0x8ea   : > { %5740 = vmatpush3.xpose.msk.msra.mxu0 %vm375_vm2, %v1928_v2  ;;  %v1360_v2 = vrot.slane %v264_v50, %v6544_v21 }
 0x8eb   : > { %v6136_v4 = vpop.eup %6135  ;;  %5749 = vmatprep.subr.mxu0 %v6321_v0 }
 0x8ec   : > { %v6138_v6 = vpop.eup %6137  ;;  %v1930_v7 = vmul.f32 %v6136_v4, %v6128_v51  ;;  %v275_v4 = vld [vmem:[#allocation5 + $0xa8] sm:$0x3] }
 0x8ed   : > { %v1929_v9 = vmul.f32 %v6138_v6, %v6130_v52  ;;  %5742 = vmatmul.mubr.msk.f32.vlgmr.msra.gmra.mrb[20].mxu0 %vm375_vm2, %v2009_v8  ;;  %v2560_v8 = vrot.slane %v275_v4, %v6544_v21 }
 0x8ee   : > { %5750 = vmatpush3.xpose.msk.msra.mxu0 %vm375_vm2, %v1930_v7  ;;  %5751 = vmatprep.mubr.msk.f32.mxu0 %vm6322_vm0, %v6321_v0 }
 0x8ef   : > { %5745 = vmatpush3.xpose.msk.msra.mxu1 %vm375_vm2, %v1929_v9  ;;  %5759 = vmatprep.subr.mxu0 %v6321_v0 }
 0x8f0   : > { %5754 = vmatprep.subr.mxu1 %v6321_v0 }
 0x8f1   : > { %5752 = vmatmul.mubr.msk.f32.vlgmr.msra.gmra.mrb[22].mxu0 %vm375_vm2, %v2163_v10 }
 0x8f2   : > { %5747 = vmatmul.mubr.msk.f32.vlgmr.msra.gmra.mrb[20].mxu1 %vm375_vm2, %v2086_v3  ;;  %5761 = vmatprep.mubr.msk.f32.mxu0 %vm6322_vm0, %v6321_v0  ;;  %v6748_v3 = vsub.s32 1, %v6541_v20 }
 0x8f3   : > { %5756 = vmatprep.mubr.msk.f32.mxu1 %vm6322_vm0, %v6321_v0  ;;  %5755 = vmatpush3.msra.mxu1 %v270_v11 }
 0x8f4   : > { %5764 = vmatprep.subr.mxu1 %v6321_v0  ;;  %5760 = vmatpush3.msra.mxu0 %v271_v17  ;;  %v1365_v7 = vrot.slane %v264_v50, %v6748_v3 }
 0x8f5   : > { %5769 = vmatprep.subr.mxu0 %v6321_v0 }
 0x915   : > { %v1345_v12 = vpop.xlane.xlu0 %1344 }
 0x916   : > { %v1347_v13 = vmul.f32 0.03125, %v1345_v12  ;;  %v2565_v12 = vrot.slane %v275_v4, %v6748_v3 }
 0x918   : > { %v6718_v14 = vsub.f32 %v1342_v57, %v1347_v13 }
 0x91a   : > { %v1349_v15 = vmul.f32 %v6718_v14, %v6718_v14 }
 0x91c   : > { %v1350_v16 = vsel %vm175_vm1, %v1349_v15, 0.0 }
 0x91d   : > { %1351 = vadd.xlane.f32.xlu0 %v1350_v16 }
 0x973   : > { %v2004_v19 = vpop.f32.mrb[18].mxu1 }
 0x974   : > { %v5738_v22 = vpop.f32.mrb[19].mxu1  ;;  %5757 = vmatmul.mubr.msk.f32.vlgmr.msra.gmra.mrb[22].mxu1 %vm375_vm2, %v2004_v19 }
 0x975   : > { %5765 = vmatpush3.msra.mxu1 %v272_v18  ;;  %5766 = vmatprep.mubr.msk.f32.mxu1 %vm6322_vm0, %v6321_v0 }
 0x976   : > { %5988 = vmatprep.subr.bf16.mxu1 %v6323_v5 }
 0x9aa   : > { %v1352_v58 = vpop.xlane.xlu0 %1351 }
 0x9ab   : > { %v1353_v59 = vmul.f32 0.03125, %v1352_v58 }
 0x9ad   : > { %v1354_v60 = vadd.f32 1e-05, %v1353_v59 }
 0x9af   : > { %6139 = vrsqrt.f32 %v1354_v60  ;;  %v5433_v60 = vld [vmem:[#allocation5 + $0x120] ss:$0 sm:$0xff] }
 0x9b9   : > { %v6140_v48 = vpop.eup %6139 }
 0x9ba   : > { %v1356_v63 = vmul.f32 %v6140_v48, %v6718_v14 }
 0x9bc   : > { %v1361_v6 = vmul.f32 %v1360_v2, %v1356_v63 }
 0x9be   : > { %v1366_v10 = vadd.f32 %v1365_v7, %v1361_v6 }
 0x9c0   : > { %v2081_v25 = vpop.f32.mrb[20].mxu0  ;;  %v2567_v14 = vadd.f32 %v1366_v10, %v6505_v1 }
 0x9c1   : > { %v5743_v26 = vpop.f32.mrb[21].mxu0  ;;  %5762 = vmatmul.mubr.msk.f32.vlgmr.msra.gmra.mrb[24].mxu0 %vm375_vm2, %v2081_v25  ;;  %v277_v25 = vld [vmem:[#allocation5 + $0xb8] sm:$0xff] }
 0x9c2   : > { %5770 = vmatpush3.msra.mxu0 %v273_v23  ;;  %5771 = vmatprep.mubr.msk.f32.mxu0 %vm6322_vm0, %v6321_v0  ;;  %v278_v26 = vld [vmem:[#allocation5 + $0xc0] sm:$0xff] }
 0x9c3   : > { %5994 = vmatprep.subr.bf16.mxu0 %v6323_v5 }
 0x9c4   : > { %v2235_v27 = vpop.f32.mrb[22].mxu0 }
 0x9c5   : > { %v2158_v28 = vpop.f32.mrb[20].mxu1  ;;  %v5753_v30 = vpop.f32.mrb[23].mxu0  ;;  %5772 = vmatmul.mubr.msk.f32.vlgmr.msra.gmra.mrb[26].mxu0 %vm375_vm2, %v2235_v27  ;;  %v5989_v27 = vpack.c.bf16 %v278_v26, %v277_v25  ;;  %v5435_v26 = vld [vmem:[#allocation5 + $0x150] ss:$0 sm:$0xff] }
 0x9c6   : > { %v5748_v31 = vpop.f32.mrb[21].mxu1  ;;  %5767 = vmatmul.mubr.msk.f32.vlgmr.msra.gmra.mrb[24].mxu1 %vm375_vm2, %v2158_v28  ;;  %5801 = vmatprep.mubr.msk.f32.mxu0 %vm6322_vm0, %v6321_v0  ;;  %v279_v28 = vld [vmem:[#allocation5 + $0xc8] sm:$0xff]  ;;  %v280_v30 = vld [vmem:[#allocation5 + $0xd0] sm:$0xff] }
 0x9c7   : > { %5782 = vmatprep.mubr.msk.f32.mxu1 %vm6322_vm0, %v6321_v0  ;;  %5990 = vmatpush3.bf16.msra.mxu1 %v5989_v27  ;;  %v282_v31 = vld [vmem:[#allocation5 + $0xe0] sm:$0xff] }
 0x9c8   : > { %5991 = vmatprep.subr.bf16.mxu1 %v6323_v5 }
 0xa47   : > { %v2308_v32 = vpop.f32.mrb[22].mxu1 }
 0xa48   : > { %v5758_v33 = vpop.f32.mrb[23].mxu1  ;;  %v2531_v36 = vsel %vm175_vm1, %v2308_v32, 0.0  ;;  %v283_v32 = vld [vmem:[#allocation5 + $0xe8] sm:$0xff] }
 0xa49   : > { %v284_v33 = vld [vmem:[#allocation5 + $0xf0] sm:$0xff] }
 0xa94   : > { %v2381_v34 = vpop.f32.mrb[24].mxu0 }
 0xa95   : > { %v2532_v37 = vsel %vm175_vm1, %v2381_v34, 0.0  ;;  %v5763_v38 = vpop.f32.mrb[25].mxu0  ;;  %v5995_v34 = vpack.c.bf16 %v283_v32, %v282_v31 }
 0xa96   : > { %v2533_v29 = vadd.f32 %v2532_v37, %v2531_v36  ;;  %v285_v36 = vld [vmem:[#allocation5 + $0xf8] sm:$0xff]  ;;  %v286_v38 = vld [vmem:[#allocation5 + $0x100] sm:$0xff] }
 0xa97   : > { %5996 = vmatpush3.bf16.msra.mxu0 %v5995_v34  ;;  %v5998_v37 = vpack.c.bf16 %v285_v36, %v284_v33 }
 0xa98   : > { %v2527_v35 = vpop.f32.mrb[26].mxu0  ;;  %5997 = vmatprep.subr.bf16.mxu0 %v6323_v5 }
 0xa99   : > { %v2454_v39 = vpop.f32.mrb[24].mxu1  ;;  %v5773_v40 = vpop.f32.mrb[27].mxu0  ;;  %v2536_v46 = vsel %vm175_vm1, %v2527_v35, 0.0 }
 0xa9a   : > { %v2534_v41 = vsel %vm175_vm1, %v2454_v39, 0.0  ;;  %v5768_v42 = vpop.f32.mrb[25].mxu1 }
 0xa9b   : > { %v2535_v43 = vadd.f32 %v2534_v41, %v2533_v29  ;;  %v287_v29 = vld [vmem:[#allocation5 + $0x108] sm:$0xff]  ;;  %5999 = vmatpush3.bf16.msra.mxu0 %v5998_v37  ;;  %v276_v42 = vld [vmem:[#allocation5 + $0xb0] sm:$0x3] }
 0xa9c   : > { %v6001_v35 = vpack.c.bf16 %v287_v29, %v286_v38  ;;  %6000 = vmatprep.subr.bf16.mxu0 %v6323_v5 }
 0xa9d   : > { %v2537_v44 = vadd.f32 %v2536_v46, %v2535_v43  ;;  %v2585_v43 = vrot.slane %v276_v42, %v6544_v21 }
 0xa9f   : > { %v2542_v49 = vadd.f32 %v5430_v45, %v2537_v44  ;;  %6002 = vmatpush3.bf16.msra.mxu0 %v6001_v35  ;;  %v2590_v44 = vrot.slane %v276_v42, %v6748_v3 }
 0xaa0   : > { %6003 = vmatprep.subr.bf16.mxu0 %v6323_v5 }
 0xaa1   : > { %v2543_v51 = vadd.f32 %v2542_v49, %v6505_v1  ;;  %v5992_v1 = vpack.c.bf16 %v280_v30, %v279_v28 }
 0xaa3   : > { %v2544_v52 = vsel %vm175_vm1, %v2543_v51, 0.0  ;;  %5993 = vmatpush3.bf16.msra.mxu1 %v5992_v1 }
 0xaa4   : > { %2545 = vadd.xlane.f32.xlu1 %v2544_v52  ;;  %6006 = vmatprep.subr.bf16.mxu1 %v6323_v5  ;;  %v288_v52 = vld [vmem:[#allocation5 + $0x110] sm:$0xff] }
 0xb31   : > { %v2546_v53 = vpop.xlane.xlu1 %2545 }
 0xb32   : > { %v2547_v54 = vmul.f32 0.03125, %v2546_v53  ;;  %v289_v53 = vld [vmem:[#allocation5 + $0x118] sm:$0xff] }
 0xb34   : > { %v2548_v55 = vsub.f32 %v2543_v51, %v2547_v54  ;;  %v6004_v54 = vpack.c.bf16 %v289_v53, %v288_v52 }
 0xb36   : > { %v2549_v56 = vmul.f32 %v2548_v55, %v2548_v55  ;;  %6005 = vmatpush3.bf16.msra.mxu0 %v6004_v54 }
 0xb37   : > { %5820 = vmatprep.subr.mxu0 %v6321_v0 }
 0xb38   : > { %v2550_v57 = vsel %vm175_vm1, %v2549_v56, 0.0 }
 0xb39   : > { %2551 = vadd.xlane.f32.xlu0 %v2550_v57 }
 0xbc6   : > { %v2552_v61 = vpop.xlane.xlu0 %2551 }
 0xbc7   : > { %v2553_v62 = vmul.f32 0.03125, %v2552_v61 }
 0xbc9   : > { %v2554_v47 = vadd.f32 1e-05, %v2553_v62 }
 0xbcb   : > { %6141 = vrsqrt.f32 %v2554_v47 }
 0xbd5   : > { %v6142_v9 = vpop.eup %6141 }
 0xbd6   : > { %v2556_v11 = vmul.f32 %v6142_v9, %v2548_v55  ;;  %v5431_v55 = vld [vmem:[#allocation5 + $0xd8] ss:$0 sm:$0xff] }
 0xbd7   : > { %v2773_v9 = vld [vmem:[#allocation5 + $0x138] sm:$0xff] }
 0xbd8   : > { %v2561_v13 = vmul.f32 %v2560_v8, %v2556_v11  ;;  %v2772_v8 = vld [vmem:[#allocation5 + $0x130] sm:$0xff]  ;;  %v2774_v11 = vld [vmem:[#allocation5 + $0x140] sm:$0xff] }
 0xbd9   : > { %v6007_v10 = vpack.c.bf16 %v2773_v9, %v2772_v8 }
 0xbda   : > { %v2566_v15 = vadd.f32 %v2565_v12, %v2561_v13  ;;  %v2775_v12 = vld [vmem:[#allocation5 + $0x148] sm:$0xff] }
 0xbdb   : > { %v6010_v13 = vpack.c.bf16 %v2775_v12, %v2774_v11 }
 0xbdc   : > { %v2568_v16 = vadd.f32 %v2567_v14, %v2566_v15 }
 0xbde   : > { %v2569_v17 = vsel %vm175_vm1, %v2568_v16, 0.0 }
 0xbdf   : > { %2570 = vadd.xlane.f32.xlu1 %v2569_v17  ;;  %v291_v17 = vld [vmem:[#allocation5 + $0x128] sm:$0x3] }
 0xc6c   : > { %v2571_v20 = vpop.xlane.xlu1 %2570 }
 0xc6d   : > { %v2572_v18 = vmul.f32 0.03125, %v2571_v20  ;;  %v2765_v20 = vrot.slane %v291_v17, %v6544_v21 }
 0xc6f   : > { %v2573_v19 = vsub.f32 %v2568_v16, %v2572_v18 }
 0xc71   : > { %v2574_v22 = vmul.f32 %v2573_v19, %v2573_v19 }
 0xc73   : > { %v2575_v23 = vsel %vm175_vm1, %v2574_v22, 0.0  ;;  %v2770_v22 = vrot.slane %v291_v17, %v6748_v3 }
 0xc74   : > { %2576 = vadd.xlane.f32.xlu0 %v2575_v23 }
 0xd01   : > { %v2577_v39 = vpop.xlane.xlu0 %2576 }
 0xd02   : > { %v2578_v40 = vmul.f32 0.03125, %v2577_v39 }
 0xd04   : > { %v2579_v41 = vadd.f32 1e-05, %v2578_v40 }
 0xd06   : > { %6143 = vrsqrt.f32 %v2579_v41 }
 0xd10   : > { %v6144_v45 = vpop.eup %6143 }
 0xd11   : > { %v2581_v46 = vmul.f32 %v6144_v45, %v2573_v19 }
 0xd13   : > { %v2586_v49 = vmul.f32 %v2585_v43, %v2581_v46 }
 0xd15   : > { %v2591_v51 = vadd.f32 %v2590_v44, %v2586_v49 }
 0xd17   : > { %5783 = vmatmul.mubr.msk.f32.vlgmr.msra.gmra.mrb[26].mxu1 %vm175_vm1, %v2591_v51 }
 0xd18   : > { %5812 = vmatprep.mubr.msk.f32.mxu1 %vm6322_vm0, %v6321_v0  ;;  %6008 = vmatpush3.bf16.msra.mxu1 %v6007_v10 }
 0xd19   : > { %6009 = vmatprep.subr.bf16.mxu1 %v6323_v5 }
 0xd1c   : > { %6011 = vmatpush3.bf16.msra.mxu1 %v6010_v13 }
 0xd1d   : > { %5815 = vmatprep.subr.mxu1 %v6321_v0 }
 0xdea   : > { %v2665_v56 = vpop.f32.mrb[26].mxu1 }
 0xdeb   : > { %v2666_v57 = vadd.f32 %v5431_v55, %v2665_v56  ;;  %v5784_v58 = vpop.f32.mrb[27].mxu1 }
 0xded   : > { %v2669_v59 = vmax.f32 %v2666_v57, 0.0 }
 0xdef   : > { %5802 = vmatmul.mubr.msk.f32.vlgmr.msra.gmra.mrb[28].mxu0 %vm2674_vm4, %v2669_v59 }
 0xdf0   : > { %5822 = vmatprep.mubr.msk.f32.mxu0 %vm6322_vm0, %v6321_v0 }
 0xec2   : > { %v2744_v61 = vpop.f32.mrb[28].mxu0 }
 0xec3   : > { %v2745_v62 = vadd.f32 %v5433_v60, %v2744_v61  ;;  %v5803_v47 = vpop.f32.mrb[29].mxu0 }
 0xec5   : > { %v2748_v48 = vadd.f32 %v2745_v62, %v2591_v51 }
 0xec7   : > { %v2749_v50 = vsel %vm175_vm1, %v2748_v48, 0.0 }
 0xec8   : > { %2750 = vadd.xlane.f32.xlu1 %v2749_v50 }
 0xf55   : > { %v2751_v63 = vpop.xlane.xlu1 %2750 }
 0xf56   : > { %v2752_v2 = vmul.f32 0.03125, %v2751_v63 }
 0xf58   : > { %v2753_v4 = vsub.f32 %v2748_v48, %v2752_v2 }
 0xf5a   : > { %v2754_v6 = vmul.f32 %v2753_v4, %v2753_v4 }
 0xf5c   : > { %v2755_v7 = vsel %vm175_vm1, %v2754_v6, 0.0 }
 0xf5d   : > { %2756 = vadd.xlane.f32.xlu0 %v2755_v7 }
 0xfea   : > { %v2757_v15 = vpop.xlane.xlu0 %2756 }
 0xfeb   : > { %v2758_v14 = vmul.f32 0.03125, %v2757_v15  ;;  %v2777_v15 = vld [vmem:[#allocation5 + $0x158] sm:$0xff] }
 0xfed   : > { %v2759_v16 = vadd.f32 1e-05, %v2758_v14 }
 0xfef   : > { %6145 = vrsqrt.f32 %v2759_v16 }
 0xff9   : > { %v6146_v18 = vpop.eup %6145 }
 0xffa   : > { %v2761_v19 = vmul.f32 %v6146_v18, %v2753_v4 }
 0xffc   : > { %v2766_v23 = vmul.f32 %v2765_v20, %v2761_v19 }
 0xffe   : > { %v6776_v25 = vadd.f32 %v2770_v22, %v2766_v23  ;;  %v2779_v22 = vld [vmem:[#allocation5 + $0x168] sm:$0xff] }
0x1000   : > { %5813 = vmatmul.mubr.msk.f32.vlgmr.msra.gmra.mrb[28].mxu1 %vm175_vm1, %v6776_v25 }
0x1001   : > { %5817 = vmatprep.mubr.msk.f32.mxu1 %vm6322_vm0, %v6321_v0 }
0x10d3   : > { %v2883_v27 = vpop.f32.mrb[28].mxu1 }
0x10d4   : > { %v2884_v28 = vadd.f32 %v5435_v26, %v2883_v27  ;;  %v5814_v30 = vpop.f32.mrb[29].mxu1  ;;  %v2784_v27 = vld [vmem:[#allocation5 + $0x190] sm:$0xff] }
0x10d6   : > { %2894 = vrot.lane.b32.xlu0 %v2884_v28, %s6326_s17  ;;  %2890 = vrot.lane.b32.xlu1 %v2884_v28, %s6325_s15 }
0x10da   : > { %2892 = vrot.lane.b32.xlu0 %v2884_v28, %s6327_s27 }
0x1148   : > { %v2895_v1 = vpop.permute.xlu0 %2894  ;;  %v2891_v31 = vpop.permute.xlu1 %2890 }
0x1149   : > { %5816 = vmatpush3.xpose.msk.msra.mxu1 %vm375_vm2, %v2895_v1  ;;  %3046 = vrot.lane.b32.xlu1 %v2891_v31, %s6326_s17 }
0x114a   : > { %5825 = vmatprep.subr.mxu1 %v6321_v0 }
0x114c   : > { %5818 = vmatmul.mubr.msk.f32.vlgmr.msra.gmra.mrb[30].mxu1 %vm375_vm2, %v2884_v28  ;;  %v6799_v29 = vpop.permute.xlu0 %2892 }
0x114d   : > { %2888 = vrot.lane.b32.xlu1 %v2884_v28, %s6328_s22  ;;  %5827 = vmatprep.mubr.msk.f32.mxu1 %vm6322_vm0, %v6321_v0 }
0x11bb   : > { %v3047_v32 = vpop.permute.xlu1 %3046 }
0x11bc   : > { %5826 = vmatpush3.xpose.msk.msra.mxu1 %vm375_vm2, %v3047_v32  ;;  %v2786_v32 = vld [vmem:[#allocation5 + $0x1a0] sm:$0xff] }
0x11bd   : > { %5835 = vmatprep.subr.mxu1 %v6321_v0 }
0x11bf   : > { %5828 = vmatmul.mubr.msk.f32.vlgmr.msra.gmra.mrb[32].mxu1 %vm375_vm2, %v2891_v31  ;;  %v6805_v43 = vpop.permute.xlu1 %2888 }
0x11c0   : > { %5837 = vmatprep.mubr.msk.f32.mxu1 %vm6322_vm0, %v6321_v0 }
0x121f   : > { %v2966_v33 = vpop.f32.mrb[30].mxu1 }
0x1220   : > { %v3198_v34 = vmul.f32 0.35355338, %v2966_v33  ;;  %v5819_v36 = vpop.f32.mrb[31].mxu1 }
0x1222   : > { %v3202_v37 = vadd.f32 %v3198_v34, %v6548_v24 }
0x1224   : > { %v3206_v38 = vsel %vm375_vm2, %v3202_v37, -inf }
0x1225   : > { %3207 = vmax.xlane.f32.xlu1 %v3206_v38 }
0x1236   : > { %3122 = vrot.lane.b32.xlu1 %v6799_v29, %s6326_s17 }
0x1292   : > { %v3118_v35 = vpop.f32.mrb[32].mxu1 }
0x1293   : > { %v3200_v39 = vmul.f32 0.35355338, %v3118_v35  ;;  %v5829_v40 = vpop.f32.mrb[33].mxu1 }
0x1295   : > { %v3204_v41 = vadd.f32 %v3200_v39, %v6548_v24 }
0x1297   : > { %v3212_v42 = vsel %vm375_vm2, %v3204_v41, -inf }
0x1298   : > { %3213 = vmax.xlane.f32.xlu0 %v3212_v42 }
0x12ae   : > { %2970 = vrot.lane.b32.xlu0 %v6805_v43, %s6326_s17 }
0x12b2   : > { %v3208_v45 = vpop.xlane.xlu1 %3207 }
0x12b3   : > { %v3218_v46 = vsub.f32 %v3202_v37, %v3208_v45 }
0x12b5   : > { %v3222_v44 = vmul.f32 1.442695, %v3218_v46 }
0x12b6   : > { %v3123_v56 = vpop.permute.xlu1 %3122 }
0x12b7   : > { %6147 = vpow2.f32 %v3222_v44 }
0x12c1   : > { %v6148_v49 = vpop.eup %6147 }
0x12c2   : > { %v3230_v51 = vsel %vm375_vm2, %v6148_v49, 0.0 }
0x12c3   : > { %3231 = vadd.xlane.f32.xlu1 %v3230_v51 }
0x12d4   : > { %3402 = vrot.lane.b32.xlu1 %v2891_v31, %s6329_s23  ;;  %v2785_v31 = vld [vmem:[#allocation5 + $0x198] sm:$0xff] }
0x12d5   : > { %v6016_v37 = vpack.c.bf16 %v2786_v32, %v2785_v31 }
0x1325   : > { %v3214_v52 = vpop.xlane.xlu0 %3213 }
0x1326   : > { %v3220_v53 = vsub.f32 %v3204_v41, %v3214_v52  ;;  %v5454_v52 = vld [vmem:[#allocation5 + $0x1a8] ss:$0 sm:$0xff] }
0x1328   : > { %v3226_v54 = vmul.f32 1.442695, %v3220_v53 }
0x1329   : > { %v2971_v55 = vpop.permute.xlu0 %2970 }
0x132a   : > { %6149 = vpow2.f32 %v3226_v54  ;;  %5821 = vmatpush3.xpose.msk.msra.mxu0 %vm375_vm2, %v2971_v55 }
0x132b   : > { %5830 = vmatprep.subr.mxu0 %v6321_v0 }
0x132d   : > { %5823 = vmatmul.mubr.msk.f32.vlgmr.msra.gmra.mrb[30].mxu0 %vm375_vm2, %v6805_v43 }
0x132e   : > { %5831 = vmatpush3.xpose.msk.msra.mxu0 %vm375_vm2, %v3123_v56  ;;  %5832 = vmatprep.mubr.msk.f32.mxu0 %vm6322_vm0, %v6321_v0  ;;  %v2778_v56 = vld [vmem:[#allocation5 + $0x160] sm:$0xff] }
0x132f   : > { %5840 = vmatprep.subr.mxu0 %v6321_v0 }
0x1331   : > { %5833 = vmatmul.mubr.msk.f32.vlgmr.msra.gmra.mrb[32].mxu0 %vm375_vm2, %v6799_v29 }
0x1332   : > { %5842 = vmatprep.mubr.msk.f32.mxu0 %vm6322_vm0, %v6321_v0 }
0x1334   : > { %v6150_v57 = vpop.eup %6149 }
0x1335   : > { %v3236_v58 = vsel %vm375_vm2, %v6150_v57, 0.0 }
0x1336   : > { %3237 = vadd.xlane.f32.xlu0 %v3236_v58 }
0x134c   : > { %3250 = vrot.lane.b32.xlu0 %v2884_v28, %s6329_s23 }
0x1350   : > { %v3232_v59 = vpop.xlane.xlu1 %3231 }
0x1351   : > { %6151 = vrcp.f32 %v3232_v59 }
0x1354   : > { %v3403_v48 = vpop.permute.xlu1 %3402 }
0x135b   : > { %v6152_v61 = vpop.eup %6151 }
0x135c   : > { %v3246_v62 = vmul.f32 %v6152_v61, %v6148_v49 }
0x13c3   : > { %v3238_v60 = vpop.xlane.xlu0 %3237 }
0x13c4   : > { %6153 = vrcp.f32 %v3238_v60 }
0x13c7   : > { %v3251_v47 = vpop.permute.xlu0 %3250 }
0x13c8   : > { %5836 = vmatpush3.msra.mxu1 %v3251_v47 }
0x13c9   : > { %5838 = vmatmul.mubr.msk.f32.vlgmr.msra.gmra.mrb[34].mxu1 %vm375_vm2, %v3246_v62  ;;  %5845 = vmatprep.subr.mxu1 %v6321_v0  ;;  %v2780_v62 = vld [vmem:[#allocation5 + $0x170] sm:$0xff] }
0x13ca   : > { %5846 = vmatpush3.msra.mxu1 %v3403_v48  ;;  %5847 = vmatprep.mubr.msk.f32.mxu1 %vm6322_vm0, %v6321_v0 }
0x13cb   : > { %5855 = vmatprep.subr.mxu1 %v6321_v0 }
0x13ce   : > { %v6154_v50 = vpop.eup %6153 }
0x13cf   : > { %v3248_v63 = vmul.f32 %v6154_v50, %v6150_v57 }
0x13d1   : > { %5848 = vmatmul.mubr.msk.f32.vlgmr.msra.gmra.mrb[36].mxu1 %vm375_vm2, %v3248_v63 }
0x13d2   : > { %5857 = vmatprep.mubr.msk.f32.mxu1 %vm6322_vm0, %v6321_v0  ;;  %5856 = vmatpush3.msra.mxu1 %v2777_v15 }
0x13d3   : > { %5865 = vmatprep.subr.mxu1 %v6321_v0 }
0x1400   : > { %v3042_v2 = vpop.f32.mrb[30].mxu0 }
0x1401   : > { %v3199_v4 = vmul.f32 0.35355338, %v3042_v2  ;;  %v5824_v6 = vpop.f32.mrb[31].mxu0 }
0x1403   : > { %v3203_v7 = vadd.f32 %v3199_v4, %v6548_v24 }
0x1404   : > { %v3194_v8 = vpop.f32.mrb[32].mxu0 }
0x1405   : > { %v3201_v9 = vmul.f32 0.35355338, %v3194_v8  ;;  %v5834_v10 = vpop.f32.mrb[33].mxu0  ;;  %v3209_v11 = vsel %vm375_vm2, %v3203_v7, -inf }
0x1406   : > { %3210 = vmax.xlane.f32.xlu1 %v3209_v11 }
0x1407   : > { %v3205_v12 = vadd.f32 %v3201_v9, %v6548_v24  ;;  %v2783_v24 = vld [vmem:[#allocation5 + $0x188] sm:$0xff] }
0x1408   : > { %v6013_v30 = vpack.c.bf16 %v2784_v27, %v2783_v24 }
0x1409   : > { %v3215_v13 = vsel %vm375_vm2, %v3205_v12, -inf }
0x140a   : > { %3216 = vmax.xlane.f32.xlu0 %v3215_v13 }
0x1493   : > { %v3211_v14 = vpop.xlane.xlu1 %3210 }
0x1494   : > { %v3219_v16 = vsub.f32 %v3203_v7, %v3211_v14 }
0x1496   : > { %v3224_v17 = vmul.f32 1.442695, %v3219_v16 }
0x1497   : > { %v3217_v20 = vpop.xlane.xlu0 %3216 }
0x1498   : > { %6155 = vpow2.f32 %v3224_v17  ;;  %v3221_v18 = vsub.f32 %v3205_v12, %v3217_v20 }
0x149a   : > { %v3228_v19 = vmul.f32 1.442695, %v3221_v18 }
0x149c   : > { %6157 = vpow2.f32 %v3228_v19  ;;  %v3322_v23 = vpop.f32.mrb[34].mxu1 }
0x149d   : > { %v5839_v26 = vpop.f32.mrb[35].mxu1  ;;  %5858 = vmatmul.mubr.msk.f32.vlgmr.msra.gmra.mrb[38].mxu1 %vm375_vm2, %v3322_v23 }
0x149e   : > { %5866 = vmatpush3.msra.mxu1 %v2779_v22  ;;  %5867 = vmatprep.mubr.msk.f32.mxu1 %vm6322_vm0, %v6321_v0 }
0x149f   : > { %6012 = vmatprep.subr.bf16.mxu1 %v6323_v5 }
0x14a2   : > { %v6156_v28 = vpop.eup %6155 }
0x14a3   : > { %v3233_v1 = vsel %vm375_vm2, %v6156_v28, 0.0 }
0x14a4   : > { %3234 = vadd.xlane.f32.xlu0 %v3233_v1  ;;  %v3474_v33 = vpop.f32.mrb[36].mxu1 }
0x14a5   : > { %v5849_v34 = vpop.f32.mrb[37].mxu1  ;;  %5868 = vmatmul.mubr.msk.f32.vlgmr.msra.gmra.mrb[40].mxu1 %vm375_vm2, %v3474_v33 }
0x14a6   : > { %v6158_v36 = vpop.eup %6157  ;;  %6014 = vmatpush3.bf16.msra.mxu1 %v6013_v30  ;;  %5883 = vmatprep.mubr.msk.f32.mxu1 %vm6322_vm0, %v6321_v0 }
0x14a7   : > { %v3239_v38 = vsel %vm375_vm2, %v6158_v36, 0.0  ;;  %6015 = vmatprep.subr.bf16.mxu1 %v6323_v5 }
0x14a8   : > { %3240 = vadd.xlane.f32.xlu1 %v3239_v38 }
0x14aa   : > { %6017 = vmatpush3.bf16.msra.mxu1 %v6016_v37 }
0x14ab   : > { %5896 = vmatprep.subr.mxu1 %v6321_v0 }
0x14ad   : > { %5884 = vmatmul.mubr.msk.f32.vlgmr.msra.gmra.mrb[42].mxu1 %vm175_vm1, %v6776_v25 }
0x14ae   : > { %5898 = vmatprep.mubr.msk.f32.mxu1 %vm6322_vm0, %v6321_v0 }
0x14b9   : > { %3478 = vrot.lane.b32.xlu1 %v6799_v29, %s6329_s23 }
0x14ba   : > { %3326 = vrot.lane.b32.xlu0 %v6805_v43, %s6329_s23 }
0x1531   : > { %v3235_v35 = vpop.xlane.xlu0 %3234 }
0x1532   : > { %6159 = vrcp.f32 %v3235_v35 }
0x1535   : > { %v3241_v39 = vpop.xlane.xlu1 %3240  ;;  %v3327_v40 = vpop.permute.xlu0 %3326 }
0x1536   : > { %6161 = vrcp.f32 %v3241_v39  ;;  %5841 = vmatpush3.msra.mxu0 %v3327_v40 }
0x1537   : > { %5850 = vmatprep.subr.mxu0 %v6321_v0 }
0x1539   : > { %v3479_v45 = vpop.permute.xlu1 %3478 }
0x153c   : > { %v6160_v41 = vpop.eup %6159 }
0x153d   : > { %v3247_v42 = vmul.f32 %v6160_v41, %v6156_v28 }
0x153f   : > { %5843 = vmatmul.mubr.msk.f32.vlgmr.msra.gmra.mrb[34].mxu0 %vm375_vm2, %v3247_v42 }
0x1540   : > { %v6162_v46 = vpop.eup %6161  ;;  %5851 = vmatpush3.msra.mxu0 %v3479_v45  ;;  %5852 = vmatprep.mubr.msk.f32.mxu0 %vm6322_vm0, %v6321_v0 }
0x1541   : > { %v3249_v29 = vmul.f32 %v6162_v46, %v6158_v36  ;;  %5860 = vmatprep.subr.mxu0 %v6321_v0 }
0x1543   : > { %5853 = vmatmul.mubr.msk.f32.vlgmr.msra.gmra.mrb[36].mxu0 %vm375_vm2, %v3249_v29 }
0x1544   : > { %5862 = vmatprep.mubr.msk.f32.mxu0 %vm6322_vm0, %v6321_v0  ;;  %5861 = vmatpush3.msra.mxu0 %v2778_v56 }
0x1545   : > { %5870 = vmatprep.subr.mxu0 %v6321_v0 }
0x1570   : > { %v3623_v43 = vpop.f32.mrb[38].mxu1 }
0x1571   : > { %v5859_v44 = vpop.f32.mrb[39].mxu1  ;;  %v3846_v11 = vsel %vm175_vm1, %v3623_v43, 0.0 }
0x1578   : > { %v6865_v49 = vpop.f32.mrb[40].mxu1 }
0x1579   : > { %v5869_v51 = vpop.f32.mrb[41].mxu1  ;;  %v3849_v14 = vsel %vm175_vm1, %v6865_v49, 0.0 }
0x1580   : > { %v3952_v53 = vpop.f32.mrb[42].mxu1 }
0x1581   : > { %v6867_v54 = vadd.f32 %v5454_v52, %v3952_v53  ;;  %v5885_v55 = vpop.f32.mrb[43].mxu1 }
0x1583   : > { %3959 = vrot.lane.b32.xlu0 %v6867_v54, %s6325_s15  ;;  %3957 = vrot.lane.b32.xlu1 %v6867_v54, %s6328_s22 }
0x1587   : > { %3995 = vrot.lane.b32.xlu0 %v6867_v54, %s6326_s17  ;;  %3961 = vrot.lane.b32.xlu1 %v6867_v54, %s6327_s27 }
0x158b   : > { %4213 = vrot.lane.b32.xlu0 %v6867_v54, %s6330_s28  ;;  %4104 = vrot.lane.b32.xlu1 %v6867_v54, %s6331_s30 }
0x158f   : > { %4322 = vrot.lane.b32.xlu1 %v6867_v54, %s6332_s3 }
0x15a9   : > { %3963 = vxpose.xlu0.b32.start.end [1/1] (short) (narrow) %v6867_v54, 8 }
0x15f5   : > { %v6885_v57 = vpop.permute.xlu0 %3959  ;;  %v6887_v58 = vpop.permute.xlu1 %3957 }
0x15f6   : > { %4181 = vxpose.xlu0.b32.start.end [1/1] (short) (narrow) %v6885_v57, 8  ;;  %4072 = vxpose.xlu1.b32.start.end [1/1] (short) (narrow) %v6887_v58, 8 }
0x15f9   : > { %v3996_v59 = vpop.permute.xlu0 %3995  ;;  %v6891_v60 = vpop.permute.xlu1 %3961 }
0x15fa   : > { %4290 = vxpose.xlu0.b32.start.end [1/1] (short) (narrow) %v6891_v60, 8 }
0x15fd   : > { %v4214_v61 = vpop.permute.xlu0 %4213  ;;  %v4105_v4 = vpop.permute.xlu1 %4104 }
0x15fe   : > { %5897 = vmatpush3.msra.mxu1 %v4214_v61 }
0x15ff   : > { %5906 = vmatprep.subr.mxu1 %v6321_v0 }
0x1601   : > { %v4323_v6 = vpop.permute.xlu1 %4322 }
0x1612   : > { %v3398_v47 = vpop.f32.mrb[34].mxu0 }
0x1613   : > { %v5844_v48 = vpop.f32.mrb[35].mxu0  ;;  %5863 = vmatmul.mubr.msk.f32.vlgmr.msra.gmra.mrb[38].mxu0 %vm375_vm2, %v3398_v47 }
0x1614   : > { %5871 = vmatpush3.msra.mxu0 %v2780_v62  ;;  %5872 = vmatprep.mubr.msk.f32.mxu0 %vm6322_vm0, %v6321_v0  ;;  %v5453_v48 = vld [vmem:[#allocation5 + $0x178] ss:$0 sm:$0xff] }
0x1615   : > { %5886 = vmatprep.subr.mxu0 %v6321_v0 }
0x1616   : > { %v3550_v50 = vpop.f32.mrb[36].mxu0 }
0x1617   : > { %v5854_v63 = vpop.f32.mrb[37].mxu0  ;;  %5873 = vmatmul.mubr.msk.f32.vlgmr.msra.gmra.mrb[40].mxu0 %vm375_vm2, %v3550_v50 }
0x1618   : > { %5887 = vmatpush3.msra.mxu0 %v3996_v59  ;;  %5888 = vmatprep.mubr.msk.f32.mxu0 %vm6322_vm0, %v6321_v0 }
0x1619   : > { %5891 = vmatprep.subr.mxu0 %v6321_v0 }
0x1629   : > { %v3979_v2 = vpop.trf.xlu0 }
0x162a   : > { %5889 = vmatmul.mubr.msk.f32.vlgmr.msra.gmra.mrb[42].mxu0 %vm375_vm2, %v3979_v2 }
0x162b   : > { %5892 = vmatpush3.msra.mxu0 %v4105_v4  ;;  %5893 = vmatprep.mubr.msk.f32.mxu0 %vm6322_vm0, %v6321_v0 }
0x162c   : > { %5901 = vmatprep.subr.mxu0 %v6321_v0 }
0x1676   : > { %v4197_v7 = vpop.trf.xlu0  ;;  %v4088_v8 = vpop.trf.xlu1 }
0x1677   : > { %5894 = vmatmul.mubr.msk.f32.vlgmr.msra.gmra.mrb[44].mxu0 %vm375_vm2, %v4088_v8  ;;  %5899 = vmatmul.mubr.msk.f32.vlgmr.msra.gmra.mrb[44].mxu1 %vm375_vm2, %v4197_v7 }
0x1678   : > { %5902 = vmatpush3.msra.mxu0 %v4323_v6  ;;  %5903 = vmatprep.mubr.msk.f32.mxu0 %vm6322_vm0, %v6321_v0 }
0x1679   : > { %5908 = vmatprep.mubr.msk.f32.mxu1 %vm6322_vm0, %v6321_v0  ;;  %5911 = vmatprep.subr.mxu0 %v6321_v0 }
0x167a   : > { %v4306_v9 = vpop.trf.xlu0 }
0x167b   : > { %5904 = vmatmul.mubr.msk.f32.vlgmr.msra.gmra.mrb[46].mxu0 %vm375_vm2, %v4306_v9 }
0x167c   : > { %5913 = vmatprep.mubr.msk.f32.mxu0 %vm6322_vm0, %v6321_v0 }
0x16e6   : > { %v3696_v10 = vpop.f32.mrb[38].mxu0 }
0x16e7   : > { %v3847_v12 = vsel %vm175_vm1, %v3696_v10, 0.0  ;;  %v5864_v13 = vpop.f32.mrb[39].mxu0 }
0x16e8   : > { %v3848_v15 = vadd.f32 %v3847_v12, %v3846_v11 }
0x16ea   : > { %v3842_v16 = vpop.f32.mrb[40].mxu0  ;;  %v3850_v17 = vadd.f32 %v3849_v14, %v3848_v15 }
0x16eb   : > { %v3851_v20 = vsel %vm175_vm1, %v3842_v16, 0.0  ;;  %v5874_v18 = vpop.f32.mrb[41].mxu0 }
0x16ec   : > { %v3852_v19 = vadd.f32 %v3851_v20, %v3850_v17  ;;  %v2788_v20 = vld [vmem:[#allocation5 + $0x1b0] sm:$0xff] }
0x16ee   : > { %v3857_v50 = vadd.f32 %v5453_v48, %v3852_v19 }
0x16f0   : > { %v3858_v63 = vadd.f32 %v3857_v50, %v6776_v25 }
0x16f2   : > { %v3859_v2 = vsel %vm175_vm1, %v3858_v63, 0.0 }
0x16fd   : > { %v4067_v22 = vpop.f32.mrb[42].mxu0 }
0x16fe   : > { %v4398_v23 = vmul.f32 0.35355338, %v4067_v22  ;;  %v5890_v26 = vpop.f32.mrb[43].mxu0 }
0x1700   : > { %v4402_v24 = vsel %vm375_vm2, %v4398_v23, -inf }
0x1701   : > { %4403 = vmax.xlane.f32.xlu0 %v4402_v24  ;;  %v2789_v24 = vld [vmem:[#allocation5 + $0x1b8] sm:$0xff] }
0x174a   : > { %v4176_v27 = vpop.f32.mrb[44].mxu0  ;;  %v4285_v28 = vpop.f32.mrb[44].mxu1 }
0x174b   : > { %v4399_v30 = vmul.f32 0.35355338, %v4176_v27  ;;  %v5895_v1 = vpop.f32.mrb[45].mxu0  ;;  %v5900_v31 = vpop.f32.mrb[45].mxu1  ;;  %v4400_v32 = vmul.f32 0.35355338, %v4285_v28 }
0x174c   : > { %v2790_v27 = vld [vmem:[#allocation5 + $0x1c0] sm:$0xff]  ;;  %v2791_v1 = vld [vmem:[#allocation5 + $0x1c8] sm:$0xff] }
0x174d   : > { %v4405_v33 = vsel %vm375_vm2, %v4399_v30, -inf  ;;  %v4408_v35 = vsel %vm375_vm2, %v4400_v32, -inf }
0x174e   : > { %4406 = vmax.xlane.f32.xlu1 %v4405_v33  ;;  %v4394_v34 = vpop.f32.mrb[46].mxu0 }
0x174f   : > { %v4401_v36 = vmul.f32 0.35355338, %v4394_v34  ;;  %v5905_v37 = vpop.f32.mrb[47].mxu0 }
0x1751   : > { %v4411_v38 = vsel %vm375_vm2, %v4401_v36, -inf }
0x1752   : > { %4412 = vmax.xlane.f32.xlu0 %v4411_v38  ;;  %4409 = vmax.xlane.f32.xlu1 %v4408_v35 }
0x1763   : > { %4446 = vrot.lane.b32.xlu1 %v6867_v54, %s6329_s23 }
0x178e   : > { %v4404_v39 = vpop.xlane.xlu0 %4403 }
0x178f   : > { %v4414_v40 = vsub.f32 %v4398_v23, %v4404_v39 }
0x1791   : > { %v4418_v41 = vmul.f32 1.442695, %v4414_v40 }
0x1793   : > { %6163 = vpow2.f32 %v4418_v41 }
0x179d   : > { %v6164_v42 = vpop.eup %6163 }
0x179e   : > { %v4426_v45 = vsel %vm375_vm2, %v6164_v42, 0.0 }
0x179f   : > { %4427 = vadd.xlane.f32.xlu1 %v4426_v45 }
0x17db   : > { %v4407_v46 = vpop.xlane.xlu1 %4406 }
0x17dc   : > { %v4415_v29 = vsub.f32 %v4399_v30, %v4407_v46 }
0x17de   : > { %v4420_v43 = vmul.f32 1.442695, %v4415_v29 }
0x17df   : > { %v4413_v44 = vpop.xlane.xlu0 %4412  ;;  %v4410_v49 = vpop.xlane.xlu1 %4409 }
0x17e0   : > { %6165 = vpow2.f32 %v4420_v43  ;;  %v4417_v51 = vsub.f32 %v4401_v36, %v4413_v44  ;;  %v4416_v52 = vsub.f32 %v4400_v32, %v4410_v49 }
0x17e2   : > { %v4424_v53 = vmul.f32 1.442695, %v4417_v51  ;;  %v4422_v55 = vmul.f32 1.442695, %v4416_v52  ;;  %v5472_v52 = vld [vmem:[#allocation5 + $0x1d0] ss:$0 sm:$0xff] }
0x17e3   : > { %v4447_v4 = vpop.permute.xlu1 %4446 }
0x17e4   : > { %6167 = vpow2.f32 %v4424_v53 }
0x17e5   : > { %6169 = vpow2.f32 %v4422_v55 }
0x17ea   : > { %v6166_v54 = vpop.eup %6165 }
0x17eb   : > { %v4429_v56 = vsel %vm375_vm2, %v6166_v54, 0.0 }
0x17ec   : > { %4430 = vadd.xlane.f32.xlu0 %v4429_v56 }
0x17ee   : > { %v6168_v59 = vpop.eup %6167 }
0x17ef   : > { %v6170_v61 = vpop.eup %6169  ;;  %v4435_v62 = vsel %vm375_vm2, %v6168_v59, 0.0 }
0x17f0   : > { %4436 = vadd.xlane.f32.xlu0 %v4435_v62  ;;  %v4432_v47 = vsel %vm375_vm2, %v6170_v61, 0.0 }
0x17f1   : > { %4433 = vadd.xlane.f32.xlu1 %v4432_v47 }
0x1802   : > { %4600 = vrot.lane.b32.xlu1 %v6885_v57, %s6329_s23 }
0x1806   : > { %4677 = vrot.lane.b32.xlu1 %v6891_v60, %s6329_s23  ;;  %4523 = vrot.lane.b32.xlu0 %v6887_v58, %s6329_s23 }
0x1825   : > { %3860 = vadd.xlane.f32.xlu0 %v3859_v2 }
0x182c   : > { %v4428_v6 = vpop.xlane.xlu1 %4427 }
0x182d   : > { %6171 = vrcp.f32 %v4428_v6 }
0x1837   : > { %v6172_v7 = vpop.eup %6171 }
0x1838   : > { %v4442_v8 = vmul.f32 %v6172_v7, %v6164_v42 }
0x183a   : > { %5907 = vmatpush3.xpose.msk.msra.mxu1 %vm375_vm2, %v4442_v8 }
0x183b   : > { %5916 = vmatprep.subr.mxu1 %v6321_v0 }
0x183d   : > { %5909 = vmatmul.mubr.msk.f32.vlgmr.msra.gmra.mrb[46].mxu1 %vm375_vm2, %v4447_v4 }
0x183e   : > { %5918 = vmatprep.mubr.msk.f32.mxu1 %vm6322_vm0, %v6321_v0 }
0x1879   : > { %v4431_v57 = vpop.xlane.xlu0 %4430 }
0x187a   : > { %6173 = vrcp.f32 %v4431_v57  ;;  %v2782_v57 = vld [vmem:[#allocation5 + $0x180] sm:$0x3] }
0x187d   : > { %v4437_v58 = vpop.xlane.xlu0 %4436 }
0x187e   : > { %6175 = vrcp.f32 %v4437_v58  ;;  %v4434_v60 = vpop.xlane.xlu1 %4433 }
0x187f   : > { %6177 = vrcp.f32 %v4434_v60  ;;  %v3875_v60 = vrot.slane %v2782_v57, %v6544_v21 }
0x1881   : > { %v4524_v14 = vpop.permute.xlu0 %4523 }
0x1882   : > { %v4601_v11 = vpop.permute.xlu1 %4600 }
0x1884   : > { %v6174_v9 = vpop.eup %6173 }
0x1885   : > { %v4443_v10 = vmul.f32 %v6174_v9, %v6166_v54  ;;  %v2793_v9 = vld [vmem:[#allocation5 + $0x1d8] sm:$0x3] }
0x1886   : > { %v4678_v17 = vpop.permute.xlu1 %4677 }
0x1887   : > { %5912 = vmatpush3.xpose.msk.msra.mxu0 %vm375_vm2, %v4443_v10 }
0x1888   : > { %v6176_v12 = vpop.eup %6175  ;;  %5921 = vmatprep.subr.mxu0 %v6321_v0 }
0x1889   : > { %v6178_v13 = vpop.eup %6177  ;;  %v4445_v15 = vmul.f32 %v6176_v12, %v6168_v59  ;;  %v5075_v12 = vrot.slane %v2793_v9, %v6544_v21 }
0x188a   : > { %v4444_v16 = vmul.f32 %v6178_v13, %v6170_v61  ;;  %5914 = vmatmul.mubr.msk.f32.vlgmr.msra.gmra.mrb[48].mxu0 %vm375_vm2, %v4524_v14 }
0x188b   : > { %5922 = vmatpush3.xpose.msk.msra.mxu0 %vm375_vm2, %v4445_v15  ;;  %5923 = vmatprep.mubr.msk.f32.mxu0 %vm6322_vm0, %v6321_v0 }
0x188c   : > { %5917 = vmatpush3.xpose.msk.msra.mxu1 %vm375_vm2, %v4444_v16  ;;  %5931 = vmatprep.subr.mxu0 %v6321_v0  ;;  %v5080_v16 = vrot.slane %v2793_v9, %v6748_v3 }
0x188d   : > { %5926 = vmatprep.subr.mxu1 %v6321_v0 }
0x188e   : > { %5924 = vmatmul.mubr.msk.f32.vlgmr.msra.gmra.mrb[50].mxu0 %vm375_vm2, %v4678_v17 }
0x188f   : > { %5919 = vmatmul.mubr.msk.f32.vlgmr.msra.gmra.mrb[48].mxu1 %vm375_vm2, %v4601_v11  ;;  %5933 = vmatprep.mubr.msk.f32.mxu0 %vm6322_vm0, %v6321_v0  ;;  %v3880_v11 = vrot.slane %v2782_v57, %v6748_v3 }
0x1890   : > { %5928 = vmatprep.mubr.msk.f32.mxu1 %vm6322_vm0, %v6321_v0  ;;  %5927 = vmatpush3.msra.mxu1 %v2788_v20 }
0x1891   : > { %5936 = vmatprep.subr.mxu1 %v6321_v0  ;;  %5932 = vmatpush3.msra.mxu0 %v2789_v24 }
0x1892   : > { %5941 = vmatprep.subr.mxu0 %v6321_v0 }
0x18b2   : > { %v3861_v18 = vpop.xlane.xlu0 %3860 }
0x18b3   : > { %v3862_v19 = vmul.f32 0.03125, %v3861_v18 }
0x18b5   : > { %v6961_v22 = vsub.f32 %v3858_v63, %v3862_v19 }
0x18b7   : > { %v3864_v23 = vmul.f32 %v6961_v22, %v6961_v22 }
0x18b9   : > { %v3865_v26 = vsel %vm175_vm1, %v3864_v23, 0.0 }
0x18ba   : > { %3866 = vadd.xlane.f32.xlu0 %v3865_v26 }
0x1910   : > { %v4519_v28 = vpop.f32.mrb[46].mxu1 }
0x1911   : > { %v5910_v30 = vpop.f32.mrb[47].mxu1  ;;  %5929 = vmatmul.mubr.msk.f32.vlgmr.msra.gmra.mrb[50].mxu1 %vm375_vm2, %v4519_v28 }
0x1912   : > { %5937 = vmatpush3.msra.mxu1 %v2790_v27  ;;  %5938 = vmatprep.mubr.msk.f32.mxu1 %vm6322_vm0, %v6321_v0  ;;  %v2795_v30 = vld [vmem:[#allocation5 + $0x1e8] sm:$0xff] }
0x1913   : > { %6018 = vmatprep.subr.bf16.mxu1 %v6323_v5 }
0x1947   : > { %v3867_v50 = vpop.xlane.xlu0 %3866 }
0x1948   : > { %v3868_v63 = vmul.f32 0.03125, %v3867_v50 }
0x194a   : > { %v3869_v2 = vadd.f32 1e-05, %v3868_v63 }
0x194c   : > { %6179 = vrsqrt.f32 %v3869_v2 }
0x1956   : > { %v6180_v8 = vpop.eup %6179 }
0x1957   : > { %v3871_v58 = vmul.f32 %v6180_v8, %v6961_v22 }
0x1959   : > { %v3876_v10 = vmul.f32 %v3875_v60, %v3871_v58 }
0x195b   : > { %v3881_v15 = vadd.f32 %v3880_v11, %v3876_v10 }
0x195d   : > { %v4596_v31 = vpop.f32.mrb[48].mxu0  ;;  %v5082_v18 = vadd.f32 %v3881_v15, %v6776_v25 }
0x195e   : > { %v5915_v32 = vpop.f32.mrb[49].mxu0  ;;  %5934 = vmatmul.mubr.msk.f32.vlgmr.msra.gmra.mrb[52].mxu0 %vm375_vm2, %v4596_v31 }
0x195f   : > { %5942 = vmatpush3.msra.mxu0 %v2791_v1  ;;  %5943 = vmatprep.mubr.msk.f32.mxu0 %vm6322_vm0, %v6321_v0  ;;  %v2796_v1 = vld [vmem:[#allocation5 + $0x1f0] sm:$0xff]  ;;  %v2797_v32 = vld [vmem:[#allocation5 + $0x1f8] sm:$0xff] }
0x1960   : > { %6024 = vmatprep.subr.bf16.mxu0 %v6323_v5  ;;  %v6019_v31 = vpack.c.bf16 %v2796_v1, %v2795_v30 }
0x1961   : > { %v4750_v33 = vpop.f32.mrb[50].mxu0 }
0x1962   : > { %v4673_v34 = vpop.f32.mrb[48].mxu1  ;;  %v5925_v36 = vpop.f32.mrb[51].mxu0  ;;  %5944 = vmatmul.mubr.msk.f32.vlgmr.msra.gmra.mrb[54].mxu0 %vm375_vm2, %v4750_v33  ;;  %v2798_v33 = vld [vmem:[#allocation5 + $0x200] sm:$0xff] }
0x1963   : > { %v5920_v37 = vpop.f32.mrb[49].mxu1  ;;  %5939 = vmatmul.mubr.msk.f32.vlgmr.msra.gmra.mrb[52].mxu1 %vm375_vm2, %v4673_v34  ;;  %5973 = vmatprep.mubr.msk.f32.mxu0 %vm6322_vm0, %v6321_v0  ;;  %v2800_v34 = vld [vmem:[#allocation5 + $0x210] sm:$0xff]  ;;  %v2801_v36 = vld [vmem:[#allocation5 + $0x218] sm:$0xff] }
0x1964   : > { %5954 = vmatprep.mubr.msk.f32.mxu1 %vm6322_vm0, %v6321_v0  ;;  %6020 = vmatpush3.bf16.msra.mxu1 %v6019_v31  ;;  %v2802_v37 = vld [vmem:[#allocation5 + $0x220] sm:$0xff] }
0x1965   : > { %6021 = vmatprep.subr.bf16.mxu1 %v6323_v5 }
0x19e4   : > { %v4823_v38 = vpop.f32.mrb[50].mxu1 }
0x19e5   : > { %v5930_v35 = vpop.f32.mrb[51].mxu1  ;;  %v5046_v40 = vsel %vm175_vm1, %v4823_v38, 0.0  ;;  %v6025_v38 = vpack.c.bf16 %v2801_v36, %v2800_v34 }
0x19e6   : > { %v2803_v35 = vld [vmem:[#allocation5 + $0x228] sm:$0xff] }
0x19e7   : > { %6026 = vmatpush3.bf16.msra.mxu0 %v6025_v38 }
0x19e8   : > { %6027 = vmatprep.subr.bf16.mxu0 %v6323_v5 }
0x1a31   : > { %v4896_v39 = vpop.f32.mrb[52].mxu0 }
0x1a32   : > { %v5047_v41 = vsel %vm175_vm1, %v4896_v39, 0.0  ;;  %v5935_v42 = vpop.f32.mrb[53].mxu0  ;;  %v6028_v39 = vpack.c.bf16 %v2803_v35, %v2802_v37 }
0x1a33   : > { %v5048_v45 = vadd.f32 %v5047_v41, %v5046_v40  ;;  %v2804_v40 = vld [vmem:[#allocation5 + $0x230] sm:$0xff]  ;;  %v2805_v41 = vld [vmem:[#allocation5 + $0x238] sm:$0xff] }
0x1a34   : > { %6029 = vmatpush3.bf16.msra.mxu0 %v6028_v39  ;;  %v6031_v42 = vpack.c.bf16 %v2805_v41, %v2804_v40 }
0x1a35   : > { %v5042_v46 = vpop.f32.mrb[54].mxu0  ;;  %6030 = vmatprep.subr.bf16.mxu0 %v6323_v5 }
0x1a36   : > { %v4969_v29 = vpop.f32.mrb[52].mxu1  ;;  %v5945_v43 = vpop.f32.mrb[55].mxu0  ;;  %v5051_v53 = vsel %vm175_vm1, %v5042_v46, 0.0 }
0x1a37   : > { %v5049_v44 = vsel %vm175_vm1, %v4969_v29, 0.0  ;;  %v5940_v49 = vpop.f32.mrb[53].mxu1  ;;  %v2794_v43 = vld [vmem:[#allocation5 + $0x1e0] sm:$0x3] }
0x1a38   : > { %v5050_v51 = vadd.f32 %v5049_v44, %v5048_v45  ;;  %6032 = vmatpush3.bf16.msra.mxu0 %v6031_v42  ;;  %v5100_v44 = vrot.slane %v2794_v43, %v6544_v21 }
0x1a39   : > { %6033 = vmatprep.subr.bf16.mxu0 %v6323_v5  ;;  %v5473_v5 = vld [vmem:[#allocation5 + $0x208] ss:$0 sm:$0xff] }
0x1a3a   : > { %v5052_v0 = vadd.f32 %v5051_v53, %v5050_v51 }
0x1a3c   : > { %v5057_v55 = vadd.f32 %v5472_v52, %v5052_v0  ;;  %v5105_v52 = vrot.slane %v2794_v43, %v6748_v3 }
0x1a3e   : > { %v5058_v54 = vadd.f32 %v5057_v55, %v6776_v25  ;;  %v6022_v25 = vpack.c.bf16 %v2798_v33, %v2797_v32  ;;  %v2806_v55 = vld [vmem:[#allocation5 + $0x240] sm:$0xff] }
0x1a40   : > { %v5059_v56 = vsel %vm175_vm1, %v5058_v54, 0.0  ;;  %6023 = vmatpush3.bf16.msra.mxu1 %v6022_v25 }
0x1a41   : > { %5060 = vadd.xlane.f32.xlu1 %v5059_v56 }
0x1ace   : > { %v5061_v59 = vpop.xlane.xlu1 %5060 }
0x1acf   : > { %v5062_v61 = vmul.f32 0.03125, %v5061_v59 }
0x1ad1   : > { %v5063_v62 = vsub.f32 %v5058_v54, %v5062_v61  ;;  %v2807_v54 = vld [vmem:[#allocation5 + $0x248] sm:$0xff] }
0x1ad2   : > { %v6034_v56 = vpack.c.bf16 %v2807_v54, %v2806_v55 }
0x1ad3   : > { %v5064_v47 = vmul.f32 %v5063_v62, %v5063_v62 }
0x1ad4   : > { %6035 = vmatpush3.bf16.msra.mxu0 %v6034_v56 }
0x1ad5   : > { %v5065_v48 = vsel %vm175_vm1, %v5064_v47, 0.0 }
0x1ad6   : > { %5066 = vadd.xlane.f32.xlu0 %v5065_v48  ;;  %v5475_v48 = vld [vmem:[#allocation5 + $0x250] ss:$0 sm:$0xff] }
0x1b63   : > { %v5067_v4 = vpop.xlane.xlu0 %5066 }
0x1b64   : > { %v5068_v6 = vmul.f32 0.03125, %v5067_v4 }
0x1b66   : > { %v5069_v7 = vadd.f32 1e-05, %v5068_v6 }
0x1b68   : > { %6181 = vrsqrt.f32 %v5069_v7 }
0x1b72   : > { %v6182_v13 = vpop.eup %6181 }
0x1b73   : > { %v5071_v14 = vmul.f32 %v6182_v13, %v5063_v62 }
0x1b75   : > { %v5076_v17 = vmul.f32 %v5075_v12, %v5071_v14  ;;  %v2809_v12 = vld [vmem:[#allocation5 + $0x258] sm:$0x3] }
0x1b76   : > { %v5279_v13 = vrot.slane %v2809_v12, %v6544_v21 }
0x1b77   : > { %v5081_v20 = vadd.f32 %v5080_v16, %v5076_v17  ;;  %v5284_v16 = vrot.slane %v2809_v12, %v6748_v3 }
0x1b79   : > { %v5083_v19 = vadd.f32 %v5082_v18, %v5081_v20 }
0x1b7b   : > { %v5084_v22 = vsel %vm175_vm1, %v5083_v19, 0.0 }
0x1b7c   : > { %5085 = vadd.xlane.f32.xlu1 %v5084_v22 }
0x1c09   : > { %v5086_v23 = vpop.xlane.xlu1 %5085 }
0x1c0a   : > { %v5087_v26 = vmul.f32 0.03125, %v5086_v23 }
0x1c0c   : > { %v5088_v24 = vsub.f32 %v5083_v19, %v5087_v26 }
0x1c0e   : > { %v5089_v27 = vmul.f32 %v5088_v24, %v5088_v24 }
0x1c10   : > { %v5090_v28 = vsel %vm175_vm1, %v5089_v27, 0.0 }
0x1c11   : > { %5091 = vadd.xlane.f32.xlu0 %v5090_v28 }
0x1c9e   : > { %v5092_v45 = vpop.xlane.xlu0 %5091 }
0x1c9f   : > { %v5093_v46 = vmul.f32 0.03125, %v5092_v45 }
0x1ca1   : > { %v5094_v29 = vadd.f32 1e-05, %v5093_v46 }
0x1ca3   : > { %6183 = vrsqrt.f32 %v5094_v29 }
0x1cad   : > { %v6184_v49 = vpop.eup %6183 }
0x1cae   : > { %v5096_v51 = vmul.f32 %v6184_v49, %v5088_v24 }
0x1cb0   : > { %v5101_v53 = vmul.f32 %v5100_v44, %v5096_v51 }
0x1cb2   : > { %v5106_v0 = vadd.f32 %v5105_v52, %v5101_v53 }
0x1cb4   : > { %5955 = vmatmul.mubr.msk.f32.vlgmr.msra.gmra.mrb[54].mxu1 %vm175_vm1, %v5106_v0 }
0x1d87   : > { %v5180_v59 = vpop.f32.mrb[54].mxu1 }
0x1d88   : > { %v5181_v61 = vadd.f32 %v5473_v5, %v5180_v59  ;;  %v5956_v62 = vpop.f32.mrb[55].mxu1 }
0x1d8a   : > { %v5184_v47 = vmax.f32 %v5181_v61, 0.0 }
0x1d8c   : > { %5974 = vmatmul.mubr.msk.f32.vlgmr.msra.gmra.mrb[56].mxu0 %vm2674_vm4, %v5184_v47 }
0x1e5f   : > { %v5258_v50 = vpop.f32.mrb[56].mxu0 }
0x1e60   : > { %v5259_v63 = vadd.f32 %v5475_v48, %v5258_v50  ;;  %v5975_v2 = vpop.f32.mrb[57].mxu0 }
0x1e62   : > { %v5262_v4 = vadd.f32 %v5259_v63, %v5106_v0 }
0x1e64   : > { %v5263_v6 = vsel %vm175_vm1, %v5262_v4, 0.0 }
0x1e65   : > { %5264 = vadd.xlane.f32.xlu1 %v5263_v6 }
0x1ef2   : > { %v5265_v7 = vpop.xlane.xlu1 %5264 }
0x1ef3   : > { %v5266_v8 = vmul.f32 0.03125, %v5265_v7 }
0x1ef5   : > { %v5267_v57 = vsub.f32 %v5262_v4, %v5266_v8 }
0x1ef7   : > { %v5268_v58 = vmul.f32 %v5267_v57, %v5267_v57 }
0x1ef9   : > { %v5269_v60 = vsel %vm175_vm1, %v5268_v58, 0.0 }
0x1efa   : > { %5270 = vadd.xlane.f32.xlu0 %v5269_v60 }
0x1f87   : > { %v5271_v9 = vpop.xlane.xlu0 %5270 }
0x1f88   : > { %v5272_v10 = vmul.f32 0.03125, %v5271_v9 }
0x1f8a   : > { %v5273_v11 = vadd.f32 1e-05, %v5272_v10 }
0x1f8c   : > { %6185 = vrsqrt.f32 %v5273_v11 }
0x1f96   : > { %v6186_v15 = vpop.eup %6185 }
0x1f97   : > { %v5275_v14 = vmul.f32 %v6186_v15, %v5267_v57 }
0x1f99   : > { %v5280_v17 = vmul.f32 %v5279_v13, %v5275_v14 }
0x1f9b   : > { %v5285_v20 = vadd.f32 %v5284_v16, %v5280_v17 }
0x1f9d   : > { %5286 = vst.msk [vmem:[%s173_s5] sm:$0xff] %vm175_vm1, %v5285_v20 }
0x1f9e   : > { %6258 = shalt.err (!%p6255_p7)
}
0x1f9f   : > { %s6259_s20 = scalar_lea.hbm %s7014_s24, 128  ;;  %s6263_s27 = scalar_lea.hbm %s7061_s2, 256 }
0x1fa0   : > { %p6260_p9 = scmp.ne.s32.totalorder %s7014_s24, %s6259_s20  ;;  %p6264_p0 = scmp.lt.u32.totalorder %s7014_s24, %s7061_s2 }
0x1fa1   : > { %p6265_p11 = scmp.lt.u32.totalorder %s6263_s27, %s6259_s20  ;;  %p6267_p4 = scmp.lt.u32.totalorder %s6259_s20, %s7014_s24 }
0x1fa2   : > { %p6261_p2 = pnand %p6260_p9, %p6440_p12 }
0x1fa3   : > { %p6266_p1 = por %p6265_p11, %p6264_p0 }
0x1fa4   : > { %p6262_p5 = pneg %p6261_p2 }
0x1fa5   : > { %p6268_p6 = por %p6267_p4, %p6266_p1 }
0x1fa7   : > { %p6269_p8 = pnand %p6268_p6, %p6262_p5 }
0x1fa9   : > { %6272 = shalt.err (!%p6269_p8)
}
0x1faa   : > { %6042 = dma.vmem_to_hbm [thread:$0]  (%p6440_p12), %s7016_s6, 128, %s7014_s24, %s5288_s25  }
0x1fab PF: > { %s5313_s28 = sand.u32 1, %s6303_s9   ;;  %p7076_p10 = scmp.ne.s32.totalorder %s7066_s16, 0 }
0x1fac   : > { %p7077_p13 = scmp.ge.s32.totalorder %s6315_s12, 2  ;;  %s5314_s30 = scalar_lea.sflag [#allocation4], %s5313_s28 }
0x1fae   : > { %p6053_p3 = pnand %p7077_p13, %p7076_p10 }
0x1fb0   : > { %6298 = dma.done.wait (!%p6053_p3), %s5314_s30, 128  }
0x1fb1   : > { %6300 = vsyncadd (!%p6053_p3), %s5314_s30, 4294967168  ;;  %p16_p7 = scmp.ge.s32.totalorder %s6405_s21, 4   ;;  %s7078_s9 = smov %s6307_s10 }
0x1fb2   : > { %s7079_s10 = smov %s6311_s11  ;;  %s7080_s11 = smov %s6436_s8 }
0x1fb3   : > { %s7081_s12 = smov %s6405_s21  ;;  %18 = sbr.rel (!%p16_p7) target bundleno = 6 (0x6), region = 77 }
0x1fba   :  { %5319 = vsyncpa [#allocation3], 1 }
0x1fbb   :  { %5321 = vsyncpa [#allocation3 + $0x1], 1 }
0x1fbc   :  { %5322 = vsyncpa [#allocation6], 1 }
0x1fbd   :  { %5323 = vsyncpa [#allocation4], 1 }
0x1fbe   :  { %5325 = vsyncpa [#allocation4 + $0x1], 1 }

</bundles_post_ra>
